<compile_context>
chip_gen: v6e
topology: v6e:2x2x1
jax: 0.10.0
libtpu: 0.0.40
codegen_flags: <defaults>
</compile_context>

<pallas_src>
import functools

import jax
import jax.numpy as jnp
from jax import lax
from jax.experimental import pallas as pl
from jax.experimental.pallas import tpu as pltpu

BN_EPS = 1e-5


def conv_bn_add_kernel(x_ref, xsum_ref, w_ref, gamma_ref, beta_ref, res_ref,
                       o_ref, *, hw):
    # x_ref:     (Cin, HW)   f32  -- full input, constant block, single-buffered
    # xsum_ref:  (Cin, 1)    f32  -- precomputed sum_j x[:, j]
    # w_ref:     (TC,  Cin)  f32  -- this step's slice of the conv weight
    # gamma_ref: (TC,  1)    f32
    # beta_ref:  (TC,  1)    f32
    # res_ref:   (TC,  HW)   f32
    # o_ref:     (TC,  HW)   f32
    x = x_ref[...]
    w = w_ref[...]

    # 1x1 conv == matmul on the MXU: (TC, Cin) @ (Cin, HW) -> (TC, HW)
    y = jnp.dot(w, x, preferred_element_type=jnp.float32)

    inv_hw = jnp.float32(1.0 / hw)

    # Per-channel mean via  sum_j y[c, j] = W[c, :] @ (sum_j x[:, j])
    # (tiny (TC,Cin)@(Cin,1) matvec; the row-sum itself is hoisted to the
    #  wrapper since it is identical for every grid step).
    mean = jnp.dot(w, xsum_ref[...], preferred_element_type=jnp.float32) * inv_hw

    # One-pass variance: E[y^2] - mean^2 (f32 accumulation), clamped at 0 to
    # guard against cancellation-induced tiny negatives -> NaN in rsqrt.
    sumsq = jnp.sum(y * y, axis=1, keepdims=True)                     # (TC, 1)
    var = jnp.maximum(sumsq * inv_hw - mean * mean, 0.0)

    # Fold BN affine into a single per-channel scale/bias (FMA-friendly epilogue).
    scale = gamma_ref[...] * lax.rsqrt(var + BN_EPS)                  # (TC, 1)
    bias = beta_ref[...] - mean * scale

    o_ref[...] = y * scale + bias + res_ref[...]


def conv_bn_add(x94, x88, w, gamma, beta, *, tile_cout=256):
    """x94: (N, 128, H, W), x88: (N, 512, H, W), w: (512, 128, 1, 1)."""
    N, Cin, H, W = x94.shape
    Cout = w.shape[0]
    HW = N * H * W

    # Channel-major 2-D views.  For N == 1 (the module's case) these are pure
    # reshapes -> no HBM relayout.
    if N == 1:
        x2d = x94.reshape(Cin, HW)
        r2d = x88.reshape(Cout, HW)
    else:
        # TODO(synk): for N > 1, switch to a 2-D grid over (N, Cout-tile) with a
        # 3-D BlockSpec reading NCHW directly instead of this HBM transpose.
        x2d = jnp.moveaxis(x94, 1, 0).reshape(Cin, HW)
        r2d = jnp.moveaxis(x88, 1, 0).reshape(Cout, HW)
    x2d = x2d.astype(jnp.float32)
    r2d = r2d.astype(jnp.float32)
    w2d = w.reshape(Cout, Cin).astype(jnp.float32)
    g2d = gamma.reshape(Cout, 1).astype(jnp.float32)
    b2d = beta.reshape(Cout, 1).astype(jnp.float32)

    # Hoisted per-channel input row-sum (identical for every grid step).
    xsum = jnp.sum(x2d, axis=1, keepdims=True)                        # (Cin, 1)

    assert Cout % tile_cout == 0, "Cout must be a multiple of the channel tile"
    grid = (Cout // tile_cout,)   # keep >= 2 steps so v7x can use both cores

    out2d = pl.pallas_call(
        functools.partial(conv_bn_add_kernel, hw=float(HW)),
        out_shape=jax.ShapeDtypeStruct((Cout, HW), jnp.float32),
        grid=grid,
        in_specs=[
            # x: resident across all steps -> single buffer (drop dead 2nd buf)
            pl.BlockSpec((Cin, HW), lambda i: (0, 0),
                         pipeline_mode=pl.Buffered(1)),
            pl.BlockSpec((Cin, 1), lambda i: (0, 0),
                         pipeline_mode=pl.Buffered(1)),               # x row-sum
            pl.BlockSpec((tile_cout, Cin), lambda i: (i, 0)),         # W slice
            pl.BlockSpec((tile_cout, 1), lambda i: (i, 0)),           # gamma
            pl.BlockSpec((tile_cout, 1), lambda i: (i, 0)),           # beta
            pl.BlockSpec((tile_cout, HW), lambda i: (i, 0)),          # residual
        ],
        out_specs=pl.BlockSpec((tile_cout, HW), lambda i: (i, 0)),
        compiler_params=pltpu.CompilerParams(
            # Independent channel tiles -> megacore can split them (v7x).
            dimension_semantics=("parallel",),
            vmem_limit_bytes=16 * 1024 * 1024,
        ),
    )(x2d, xsum, w2d, g2d, b2d, r2d)

    if N == 1:
        return out2d.reshape(1, Cout, H, W)
    return jnp.moveaxis(out2d.reshape(Cout, N, H, W), 0, 1)


if __name__ == "__main__":
    # Shapes implied by the module: N=1, Cin=128, Cout=512, 28x28 spatial.
    N, Cin, Cout, H, W = 1, 128, 512, 28, 28

    key = jax.random.PRNGKey(0)
    k1, k2, k3, k4, k5 = jax.random.split(key, 5)

    x94 = jax.random.normal(k1, (N, Cin, H, W), dtype=jnp.float32)
    x88 = jax.random.normal(k2, (N, Cout, H, W), dtype=jnp.float32)

    w = 0.05 * jax.random.normal(k3, (Cout, Cin, 1, 1), dtype=jnp.float32)
    gamma = 1.0 + 0.1 * jax.random.normal(k4, (Cout,), dtype=jnp.float32)
    beta = 0.1 * jax.random.normal(k5, (Cout,), dtype=jnp.float32)

    out = conv_bn_add(x94, x88, w, gamma, beta)
    jax.block_until_ready(out)

    # Pure-JAX reference (two-pass BN stats), same channel-major layout.
    x2d = x94.reshape(Cin, H * W)
    w2d = w.reshape(Cout, Cin)
    y_ref = w2d @ x2d
    m = jnp.mean(y_ref, axis=1, keepdims=True)
    v = jnp.mean((y_ref - m) ** 2, axis=1, keepdims=True)
    bn_ref = (y_ref - m) * lax.rsqrt(v + BN_EPS) * gamma[:, None] + beta[:, None]
    ref = (bn_ref + x88.reshape(Cout, H * W)).reshape(N, Cout, H, W)

    assert out.shape == (N, Cout, H, W)
    # Tolerance allows for the one-pass mean/var identities and MXU matmul
    # rounding differences vs. the XLA reference path.
    assert jnp.allclose(out, ref, atol=1e-3, rtol=1e-3), "mismatch vs reference"

    print("KERNEL_OK")
</pallas_src>

<mosaic_0001>
module attributes {stable_mosaic.version = 11 : i64} {
  func.func @conv_bn_add_kernel(%arg0: i32, %arg1: memref<128x784xf32, #tpu.memory_space<vmem>>, %arg2: memref<128x1xf32, #tpu.memory_space<vmem>>, %arg3: memref<256x128xf32, #tpu.memory_space<vmem>>, %arg4: memref<256x1xf32, #tpu.memory_space<vmem>>, %arg5: memref<256x1xf32, #tpu.memory_space<vmem>>, %arg6: memref<256x784xf32, #tpu.memory_space<vmem>>, %arg7: memref<256x784xf32, #tpu.memory_space<vmem>>) attributes {dimension_semantics = [#tpu.dimension_semantics<parallel>], iteration_bounds = array<i64: 2>, scalar_prefetch = 0 : i64, scratch_operands = 0 : i64, tpu.core_type = #tpu.core_type<tc>, window_params = [{pipeline_mode = #tpu.pipeline_mode<synchronous>, transform_indices = @transform_0, window_bounds = array<i64: 128, 784>}, {pipeline_mode = #tpu.pipeline_mode<synchronous>, transform_indices = @transform_1, window_bounds = array<i64: 128, 1>}, {transform_indices = @transform_2, window_bounds = array<i64: 256, 128>}, {transform_indices = @transform_3, window_bounds = array<i64: 256, 1>}, {transform_indices = @transform_4, window_bounds = array<i64: 256, 1>}, {transform_indices = @transform_5, window_bounds = array<i64: 256, 784>}, {transform_indices = @transform_6, window_bounds = array<i64: 256, 784>}]} {
    %c0 = arith.constant 0 : index
    %c0_0 = arith.constant 0 : index
    %0 = vector.load %arg1[%c0, %c0_0] : memref<128x784xf32, #tpu.memory_space<vmem>>, vector<128x784xf32>
    %c0_1 = arith.constant 0 : index
    %c0_2 = arith.constant 0 : index
    %1 = vector.load %arg3[%c0_1, %c0_2] : memref<256x128xf32, #tpu.memory_space<vmem>>, vector<256x128xf32>
    %cst = arith.constant dense<0.000000e+00> : vector<256x784xf32>
    %2 = tpu.matmul %1, %0, %cst {dimension_numbers = #tpu.dot_dimension_numbers<[1], [0], [0], [1], [0, 0, 1, 1], [], []>} : vector<256x128xf32>, vector<128x784xf32>, vector<256x784xf32> -> vector<256x784xf32>
    %c0_3 = arith.constant 0 : index
    %c0_4 = arith.constant 0 : index
    %3 = vector.load %arg2[%c0_3, %c0_4] : memref<128x1xf32, #tpu.memory_space<vmem>>, vector<128x1xf32>
    %cst_5 = arith.constant dense<0.000000e+00> : vector<256x1xf32>
    %4 = tpu.matmul %1, %3, %cst_5 {dimension_numbers = #tpu.dot_dimension_numbers<[1], [0], [0], [1], [0, 0, 1, 1], [], []>} : vector<256x128xf32>, vector<128x1xf32>, vector<256x1xf32> -> vector<256x1xf32>
    %cst_6 = arith.constant 0.00127551018 : f32
    %5 = vector.broadcast %cst_6 : f32 to vector<256x1xf32>
    %6 = arith.mulf %4, %5 : vector<256x1xf32>
    %7 = arith.mulf %2, %2 : vector<256x784xf32>
    %cst_7 = arith.constant dense<0.000000e+00> : vector<256xf32>
    %8 = vector.multi_reduction <add>, %7, %cst_7 [1] : vector<256x784xf32> to vector<256xf32>
    %9 = vector.shape_cast %8 : vector<256xf32> to vector<256x1xf32>
    %cst_8 = arith.constant 0.00127551018 : f32
    %10 = vector.broadcast %cst_8 : f32 to vector<256x1xf32>
    %11 = arith.mulf %9, %10 : vector<256x1xf32>
    %12 = arith.mulf %6, %6 : vector<256x1xf32>
    %13 = arith.subf %11, %12 : vector<256x1xf32>
    %cst_9 = arith.constant 0.000000e+00 : f32
    %14 = vector.broadcast %cst_9 : f32 to vector<256x1xf32>
    %15 = arith.maximumf %13, %14 : vector<256x1xf32>
    %c0_10 = arith.constant 0 : index
    %c0_11 = arith.constant 0 : index
    %16 = vector.load %arg4[%c0_10, %c0_11] : memref<256x1xf32, #tpu.memory_space<vmem>>, vector<256x1xf32>
    %cst_12 = arith.constant 9.99999974E-6 : f32
    %17 = vector.broadcast %cst_12 : f32 to vector<256x1xf32>
    %18 = arith.addf %15, %17 : vector<256x1xf32>
    %19 = math.rsqrt %18 : vector<256x1xf32>
    %20 = arith.mulf %16, %19 : vector<256x1xf32>
    %c0_13 = arith.constant 0 : index
    %c0_14 = arith.constant 0 : index
    %21 = vector.load %arg5[%c0_13, %c0_14] : memref<256x1xf32, #tpu.memory_space<vmem>>, vector<256x1xf32>
    %22 = arith.mulf %6, %20 : vector<256x1xf32>
    %23 = arith.subf %21, %22 : vector<256x1xf32>
    %24 = vector.broadcast %20 : vector<256x1xf32> to vector<256x784xf32>
    %25 = arith.mulf %2, %24 : vector<256x784xf32>
    %26 = vector.broadcast %23 : vector<256x1xf32> to vector<256x784xf32>
    %27 = arith.addf %25, %26 : vector<256x784xf32>
    %c0_15 = arith.constant 0 : index
    %c0_16 = arith.constant 0 : index
    %28 = vector.load %arg6[%c0_15, %c0_16] : memref<256x784xf32, #tpu.memory_space<vmem>>, vector<256x784xf32>
    %29 = arith.addf %27, %28 : vector<256x784xf32>
    %c0_17 = arith.constant 0 : index
    %c0_18 = arith.constant 0 : index
    %30 = vector.load %arg7[%c0_17, %c0_18] : memref<256x784xf32, #tpu.memory_space<vmem>>, vector<256x784xf32>
    tpu.vector_store %arg7[%c0_17, %c0_18], %29 {strides = array<i32>} : memref<256x784xf32, #tpu.memory_space<vmem>>, vector<256x784xf32>,
    return
  }
  func.func @transform_0(%arg0: i32) -> (i32, i32) {
    %c0_i32 = arith.constant 0 : i32
    %c0_i32_0 = arith.constant 0 : i32
    %c0_i32_1 = arith.constant 0 : i32
    return %c0_i32, %c0_i32_0 : i32, i32
  }
  func.func @transform_1(%arg0: i32) -> (i32, i32) {
    %c0_i32 = arith.constant 0 : i32
    %c0_i32_0 = arith.constant 0 : i32
    %c0_i32_1 = arith.constant 0 : i32
    return %c0_i32, %c0_i32_0 : i32, i32
  }
  func.func @transform_2(%arg0: i32) -> (i32, i32) {
    %c0_i32 = arith.constant 0 : i32
    %c0_i32_0 = arith.constant 0 : i32
    return %arg0, %c0_i32 : i32, i32
  }
  func.func @transform_3(%arg0: i32) -> (i32, i32) {
    %c0_i32 = arith.constant 0 : i32
    %c0_i32_0 = arith.constant 0 : i32
    return %arg0, %c0_i32 : i32, i32
  }
  func.func @transform_4(%arg0: i32) -> (i32, i32) {
    %c0_i32 = arith.constant 0 : i32
    %c0_i32_0 = arith.constant 0 : i32
    return %arg0, %c0_i32 : i32, i32
  }
  func.func @transform_5(%arg0: i32) -> (i32, i32) {
    %c0_i32 = arith.constant 0 : i32
    %c0_i32_0 = arith.constant 0 : i32
    return %arg0, %c0_i32 : i32, i32
  }
  func.func @transform_6(%arg0: i32) -> (i32, i32) {
    %c0_i32 = arith.constant 0 : i32
    %c0_i32_0 = arith.constant 0 : i32
    return %arg0, %c0_i32 : i32, i32
  }
}

</mosaic_0001>

<bundles_post_ra>
// kernel: tpu_custom_call.1
= control target key start
LH: loop header
LB: loop body
LE: loop exit
PB: predicated region body
PF: predicated region fallthrough
CT: control target
= control target key end

     0   :  { %s4533_s21 = smov 0   ;;  %s7561_s0 = inlined_call_operand.vmem [shape: f32[128,784], index: 0, kind: input, shape index: {}]   ;;  %s7562_s1 = inlined_call_operand.vmem [shape: f32[128,1], index: 1, kind: input, shape index: {}]   ;;  %s7563_s2 = inlined_call_operand.vmem [shape: f32[512,128], index: 2, kind: input, shape index: {}]   ;;  %s7564_s3 = inlined_call_operand.vmem [shape: f32[512,1], index: 3, kind: input, shape index: {}]   ;;  %s7565_s4 = inlined_call_operand.vmem [shape: f32[512,1], index: 4, kind: input, shape index: {}]   ;;  %s7566_s5 = inlined_call_operand.vmem [shape: f32[512,784], index: 5, kind: input, shape index: {}]   ;;  %s7567_s6 = inlined_call_operand.vmem [shape: f32[512,784], index: 6, kind: output, shape index: {}]  }
   0x1 LB: > { %s4138_s22 = sadd.s32 4294967295, %s4494_s21   ;;  %p4142_p0 = scmp.ge.s32.totalorder %s4494_s21, 1  ;;  %s4494_s21 = sphi %s4533_s21, %s16_s21  }
   0x2   : > { %p247_p1 = scmp.lt.s32.totalorder %s4494_s21, 3 }
   0x4   : > { %p248_p2 = pnand %p4142_p0, %p247_p1 }
   0x6   : > { %251 = sbr.rel (%p248_p2) target bundleno = 860 (0x35c), region = 44 }
   0xb   : > { %v432_v0 = vld [vmem:[%s7561_s0 + $0x350] sm:$0xff]  ;;  %v434_v1 = vld [vmem:[%s7561_s0 + $0x360] sm:$0xff]  ;;  %v431_v2 = vld [vmem:[%s7561_s0 + $0x348] sm:$0xff]  ;;  %s4645_s25 = sshll.u32 %s4138_s22, 5  ;;  %vm1968_vm0 = vcmask 130048  }
   0xc   : > { %470 = vmatprep.subr.mxu0 %v432_v0  ;;  %727 = vmatprep.subr.mxu1 %v434_v1  ;;  %v433_v3 = vld [vmem:[%s7561_s0 + $0x358] sm:$0xff]  ;;  %v427_v5 = vld [vmem:[%s7561_s0 + $0x328] sm:$0xff]  ;;  %v424_v6 = vld [vmem:[%s7561_s0 + $0x310] sm:$0xff]  ;;  %p295_p3 = scmp.lt.s32.totalorder %s4645_s25, 63  ;;  %v4496_v1 = vmov 0.0  }
   0xd   : > { %v425_v4 = vld [vmem:[%s7561_s0 + $0x318] sm:$0xff]  ;;  %471 = vmatpush1.msra.mxu0 %v431_v2  ;;  %728 = vmatpush1.msra.mxu1 %v433_v3  ;;  %v426_v7 = vld [vmem:[%s7561_s0 + $0x320] sm:$0xff]  ;;  %v420_v9 = vld [vmem:[%s7561_s0 + $0x2f0] sm:$0xff] }
   0xe   : > { %v418_v8 = vld [vmem:[%s7561_s0 + $0x2e0] sm:$0xff]  ;;  %472 = vmatprep.subr.mxu0 %v425_v4  ;;  %729 = vmatprep.subr.mxu1 %v427_v5  ;;  %v417_v10 = vld [vmem:[%s7561_s0 + $0x2d8] sm:$0xff]  ;;  %v419_v11 = vld [vmem:[%s7561_s0 + $0x2e8] sm:$0xff]  ;;  %s8235_s25 = smov (!%p295_p3, %s4645_s25), 63 }
   0xf   : > { %473 = vmatpush1.msra.mxu0 %v424_v6  ;;  %730 = vmatpush1.msra.mxu1 %v426_v7  ;;  %v411_v12 = vld [vmem:[%s7561_s0 + $0x2a8] sm:$0xff]  ;;  %v413_v13 = vld [vmem:[%s7561_s0 + $0x2b8] sm:$0xff]  ;;  %v410_v14 = vld [vmem:[%s7561_s0 + $0x2a0] sm:$0xff]  ;;  %s4720_s26 = sshll.u32 %s8235_s25, 3 }
  0x10   : > { %474 = vmatprep.subr.mxu0 %v418_v8  ;;  %731 = vmatprep.subr.mxu1 %v420_v9  ;;  %v412_v15 = vld [vmem:[%s7561_s0 + $0x2b0] sm:$0xff]  ;;  %v406_v17 = vld [vmem:[%s7561_s0 + $0x280] sm:$0xff]  ;;  %v403_v18 = vld [vmem:[%s7561_s0 + $0x268] sm:$0xff]  ;;  %s4744_s16 = scalar_lea.vmem %s7563_s2, %s4720_s26  ;;  %s6250_s22 = scalar_lea.vmem %s7564_s3, %s4720_s26 }
  0x11   : > { %475 = vmatpush1.msra.mxu0 %v417_v10  ;;  %732 = vmatpush1.msra.mxu1 %v419_v11  ;;  %v404_v16 = vld [vmem:[%s7561_s0 + $0x270] sm:$0xff]  ;;  %v405_v19 = vld [vmem:[%s7561_s0 + $0x278] sm:$0xff]  ;;  %v399_v21 = vld [vmem:[%s7561_s0 + $0x248] sm:$0xff]  ;;  %s6264_s11 = scalar_lea.vmem %s7565_s4, %s4720_s26  ;;  %s4411_s26 = smul.u32 56, %s8235_s25 }
  0x12   : > { %476 = vmatprep.subr.mxu0 %v411_v12  ;;  %733 = vmatprep.subr.mxu1 %v413_v13  ;;  %v397_v20 = vld [vmem:[%s7561_s0 + $0x238] sm:$0xff]  ;;  %v396_v22 = vld [vmem:[%s7561_s0 + $0x230] sm:$0xff]  ;;  %v398_v23 = vld [vmem:[%s7561_s0 + $0x240] sm:$0xff] }
  0x13   : > { %477 = vmatpush1.msra.mxu0 %v410_v14  ;;  %734 = vmatpush1.msra.mxu1 %v412_v15  ;;  %v390_v24 = vld [vmem:[%s7561_s0 + $0x200] sm:$0xff]  ;;  %v392_v25 = vld [vmem:[%s7561_s0 + $0x210] sm:$0xff]  ;;  %v389_v26 = vld [vmem:[%s7561_s0 + $0x1f8] sm:$0xff]  ;;  %s6466_s14 = scalar_lea.vmem %s7566_s5, %s4411_s26  ;;  %s6498_s18 = scalar_lea.vmem %s7567_s6, %s4411_s26 }
  0x14   : > { %478 = vmatprep.subr.mxu0 %v404_v16  ;;  %735 = vmatprep.subr.mxu1 %v406_v17  ;;  %v391_v27 = vld [vmem:[%s7561_s0 + $0x208] sm:$0xff]  ;;  %v385_v29 = vld [vmem:[%s7561_s0 + $0x1d8] sm:$0xff]  ;;  %v382_v30 = vld [vmem:[%s7561_s0 + $0x1c0] sm:$0xff] }
  0x15   : > { %479 = vmatpush1.msra.mxu0 %v403_v18  ;;  %736 = vmatpush1.msra.mxu1 %v405_v19  ;;  %v383_v28 = vld [vmem:[%s7561_s0 + $0x1c8] sm:$0xff]  ;;  %v384_v31 = vld [vmem:[%s7561_s0 + $0x1d0] sm:$0xff]  ;;  %v378_v33 = vld [vmem:[%s7561_s0 + $0x1a0] sm:$0xff] }
  0x16   : > { %480 = vmatprep.subr.mxu0 %v397_v20  ;;  %737 = vmatprep.subr.mxu1 %v399_v21  ;;  %v376_v32 = vld [vmem:[%s7561_s0 + $0x190] sm:$0xff]  ;;  %v375_v34 = vld [vmem:[%s7561_s0 + $0x188] sm:$0xff]  ;;  %v377_v35 = vld [vmem:[%s7561_s0 + $0x198] sm:$0xff] }
  0x17   : > { %481 = vmatpush1.msra.mxu0 %v396_v22  ;;  %738 = vmatpush1.msra.mxu1 %v398_v23  ;;  %v369_v36 = vld [vmem:[%s7561_s0 + $0x158] sm:$0xff]  ;;  %v371_v37 = vld [vmem:[%s7561_s0 + $0x168] sm:$0xff]  ;;  %v368_v38 = vld [vmem:[%s7561_s0 + $0x150] sm:$0xff] }
  0x18   : > { %482 = vmatprep.subr.mxu0 %v390_v24  ;;  %739 = vmatprep.subr.mxu1 %v392_v25  ;;  %v370_v39 = vld [vmem:[%s7561_s0 + $0x160] sm:$0xff]  ;;  %v364_v41 = vld [vmem:[%s7561_s0 + $0x130] sm:$0xff]  ;;  %v361_v42 = vld [vmem:[%s7561_s0 + $0x118] sm:$0xff] }
  0x19   : > { %483 = vmatpush1.msra.mxu0 %v389_v26  ;;  %740 = vmatpush1.msra.mxu1 %v391_v27  ;;  %v362_v40 = vld [vmem:[%s7561_s0 + $0x120] sm:$0xff]  ;;  %v363_v43 = vld [vmem:[%s7561_s0 + $0x128] sm:$0xff]  ;;  %v357_v45 = vld [vmem:[%s7561_s0 + $0xf8] sm:$0xff] }
  0x1a   : > { %484 = vmatprep.subr.mxu0 %v383_v28  ;;  %741 = vmatprep.subr.mxu1 %v385_v29  ;;  %v355_v44 = vld [vmem:[%s7561_s0 + $0xe8] sm:$0xff]  ;;  %v354_v46 = vld [vmem:[%s7561_s0 + $0xe0] sm:$0xff]  ;;  %v356_v47 = vld [vmem:[%s7561_s0 + $0xf0] sm:$0xff] }
  0x1b   : > { %485 = vmatpush1.msra.mxu0 %v382_v30  ;;  %742 = vmatpush1.msra.mxu1 %v384_v31  ;;  %v348_v48 = vld [vmem:[%s7561_s0 + $0xb0] sm:$0xff]  ;;  %v350_v49 = vld [vmem:[%s7561_s0 + $0xc0] sm:$0xff]  ;;  %v347_v50 = vld [vmem:[%s7561_s0 + $0xa8] sm:$0xff] }
  0x1c   : > { %486 = vmatprep.subr.mxu0 %v376_v32  ;;  %743 = vmatprep.subr.mxu1 %v378_v33  ;;  %v349_v51 = vld [vmem:[%s7561_s0 + $0xb8] sm:$0xff]  ;;  %v343_v53 = vld [vmem:[%s7561_s0 + $0x88] sm:$0xff]  ;;  %v340_v54 = vld [vmem:[%s7561_s0 + $0x70] sm:$0xff] }
  0x1d   : > { %487 = vmatpush1.msra.mxu0 %v375_v34  ;;  %744 = vmatpush1.msra.mxu1 %v377_v35  ;;  %v341_v52 = vld [vmem:[%s7561_s0 + $0x78] sm:$0xff]  ;;  %v342_v55 = vld [vmem:[%s7561_s0 + $0x80] sm:$0xff]  ;;  %v336_v57 = vld [vmem:[%s7561_s0 + $0x50] sm:$0xff] }
  0x1e   : > { %488 = vmatprep.subr.mxu0 %v369_v36  ;;  %745 = vmatprep.subr.mxu1 %v371_v37  ;;  %v334_v56 = vld [vmem:[%s7561_s0 + $0x40] sm:$0xff]  ;;  %v333_v58 = vld [vmem:[%s7561_s0 + $0x38] sm:$0xff]  ;;  %v335_v59 = vld [vmem:[%s7561_s0 + $0x48] sm:$0xff] }
  0x1f   : > { %489 = vmatpush1.msra.mxu0 %v368_v38  ;;  %746 = vmatpush1.msra.mxu1 %v370_v39  ;;  %v327_v60 = vld [vmem:[%s7561_s0 + $0x8] sm:$0xff]  ;;  %v329_v61 = vld [vmem:[%s7561_s0 + $0x18] sm:$0xff]  ;;  %v326_v62 = vld [vmem:[%s7561_s0] sm:$0xff] }
  0x20   : > { %490 = vmatprep.subr.mxu0 %v362_v40  ;;  %747 = vmatprep.subr.mxu1 %v364_v41  ;;  %v328_v63 = vld [vmem:[%s7561_s0 + $0x10] sm:$0xff]  ;;  %v4753_v0 = vld [vmem:[%s4744_s16] sm:$0xff]  ;;  %v437_v3 = vld [vmem:[%s7561_s0 + $0x378] sm:$0xff] }
  0x21   : > { %491 = vmatpush1.msra.mxu0 %v361_v42  ;;  %748 = vmatpush1.msra.mxu1 %v363_v43  ;;  %v436_v2 = vld [vmem:[%s7561_s0 + $0x370] sm:$0xff]  ;;  %v435_v4 = vld [vmem:[%s7561_s0 + $0x368] sm:$0xff]  ;;  %v429_v6 = vld [vmem:[%s7561_s0 + $0x338] sm:$0xff] }
  0x22   : > { %492 = vmatprep.subr.mxu0 %v355_v44  ;;  %749 = vmatprep.subr.mxu1 %v357_v45  ;;  %v4769_v5 = vld [vmem:[%s4744_s16 + $0x8] sm:$0xff]  ;;  %v430_v7 = vld [vmem:[%s7561_s0 + $0x340] sm:$0xff]  ;;  %v428_v8 = vld [vmem:[%s7561_s0 + $0x330] sm:$0xff] }
  0x23   : > { %493 = vmatpush1.msra.mxu0 %v354_v46  ;;  %750 = vmatpush1.msra.mxu1 %v356_v47  ;;  %v4787_v9 = vld [vmem:[%s4744_s16 + $0x10] sm:$0xff]  ;;  %v422_v10 = vld [vmem:[%s7561_s0 + $0x300] sm:$0xff]  ;;  %v423_v11 = vld [vmem:[%s7561_s0 + $0x308] sm:$0xff] }
  0x24   : > { %494 = vmatprep.subr.mxu0 %v348_v48  ;;  %751 = vmatprep.subr.mxu1 %v350_v49  ;;  %v421_v12 = vld [vmem:[%s7561_s0 + $0x2f8] sm:$0xff]  ;;  %v415_v14 = vld [vmem:[%s7561_s0 + $0x2c8] sm:$0xff]  ;;  %v416_v15 = vld [vmem:[%s7561_s0 + $0x2d0] sm:$0xff] }
  0x25   : > { %495 = vmatpush1.msra.mxu0 %v347_v50  ;;  %752 = vmatpush1.msra.mxu1 %v349_v51  ;;  %v4803_v13 = vld [vmem:[%s4744_s16 + $0x18] sm:$0xff]  ;;  %v414_v16 = vld [vmem:[%s7561_s0 + $0x2c0] sm:$0xff]  ;;  %v408_v18 = vld [vmem:[%s7561_s0 + $0x290] sm:$0xff] }
  0x26   : > { %496 = vmatprep.subr.mxu0 %v341_v52  ;;  %753 = vmatprep.subr.mxu1 %v343_v53  ;;  %v4819_v17 = vld [vmem:[%s4744_s16 + $0x20] sm:$0xff]  ;;  %v409_v19 = vld [vmem:[%s7561_s0 + $0x298] sm:$0xff]  ;;  %v407_v20 = vld [vmem:[%s7561_s0 + $0x288] sm:$0xff] }
  0x27   : > { %497 = vmatpush1.msra.mxu0 %v340_v54  ;;  %754 = vmatpush1.msra.mxu1 %v342_v55  ;;  %v4835_v21 = vld [vmem:[%s4744_s16 + $0x28] sm:$0xff]  ;;  %v401_v22 = vld [vmem:[%s7561_s0 + $0x258] sm:$0xff]  ;;  %v402_v23 = vld [vmem:[%s7561_s0 + $0x260] sm:$0xff] }
  0x28   : > { %498 = vmatprep.subr.mxu0 %v334_v56  ;;  %755 = vmatprep.subr.mxu1 %v336_v57  ;;  %v400_v24 = vld [vmem:[%s7561_s0 + $0x250] sm:$0xff]  ;;  %v394_v26 = vld [vmem:[%s7561_s0 + $0x220] sm:$0xff]  ;;  %v395_v27 = vld [vmem:[%s7561_s0 + $0x228] sm:$0xff] }
  0x29   : > { %499 = vmatpush1.msra.mxu0 %v333_v58  ;;  %756 = vmatpush1.msra.mxu1 %v335_v59  ;;  %v4851_v25 = vld [vmem:[%s4744_s16 + $0x30] sm:$0xff]  ;;  %v393_v28 = vld [vmem:[%s7561_s0 + $0x218] sm:$0xff]  ;;  %v387_v30 = vld [vmem:[%s7561_s0 + $0x1e8] sm:$0xff] }
  0x2a   : > { %500 = vmatprep.subr.mxu0 %v327_v60  ;;  %757 = vmatprep.subr.mxu1 %v329_v61  ;;  %v4867_v29 = vld [vmem:[%s4744_s16 + $0x38] sm:$0xff]  ;;  %v388_v31 = vld [vmem:[%s7561_s0 + $0x1f0] sm:$0xff]  ;;  %v386_v32 = vld [vmem:[%s7561_s0 + $0x1e0] sm:$0xff] }
  0x2b   : > { %501 = vmatpush1.msra.mxu0 %v326_v62  ;;  %534 = vmatprep.mubr.f32.mxu0 %v4496_v1  ;;  %v4883_v33 = vld [vmem:[%s4744_s16 + $0x40] sm:$0xff]  ;;  %v380_v34 = vld [vmem:[%s7561_s0 + $0x1b0] sm:$0xff]  ;;  %v381_v35 = vld [vmem:[%s7561_s0 + $0x1b8] sm:$0xff] }
  0x2c   : > { %758 = vmatpush1.msra.mxu1 %v328_v63  ;;  %791 = vmatprep.mubr.f32.mxu1 %v4496_v1  ;;  %v379_v36 = vld [vmem:[%s7561_s0 + $0x1a8] sm:$0xff]  ;;  %v373_v38 = vld [vmem:[%s7561_s0 + $0x178] sm:$0xff]  ;;  %v374_v39 = vld [vmem:[%s7561_s0 + $0x180] sm:$0xff] }
  0x2d   : > { %535 = vmatmul.mubr.f32.vlgmr.msra.gmra.mxu0 %v4753_v0  ;;  %792 = vmatmul.mubr.f32.vlgmr.msra.gmra.mxu1 %v4753_v0  ;;  %v4899_v37 = vld [vmem:[%s4744_s16 + $0x48] sm:$0xff]  ;;  %v372_v40 = vld [vmem:[%s7561_s0 + $0x170] sm:$0xff]  ;;  %v366_v42 = vld [vmem:[%s7561_s0 + $0x140] sm:$0xff] }
  0x2e   : > { %984 = vmatprep.subr.mxu0 %v436_v2  ;;  %4251 = vmatprep.subr.mxu1 %v437_v3  ;;  %v4915_v41 = vld [vmem:[%s4744_s16 + $0x50] sm:$0xff]  ;;  %v367_v43 = vld [vmem:[%s7561_s0 + $0x148] sm:$0xff]  ;;  %v365_v44 = vld [vmem:[%s7561_s0 + $0x138] sm:$0xff] }
  0x2f   : > { %985 = vmatpush1.msra.mxu0 %v435_v4  ;;  %4252 = vmatpush3.msra.mxu1 %v437_v3  ;;  %v4931_v45 = vld [vmem:[%s4744_s16 + $0x58] sm:$0xff]  ;;  %v359_v46 = vld [vmem:[%s7561_s0 + $0x108] sm:$0xff]  ;;  %v360_v47 = vld [vmem:[%s7561_s0 + $0x110] sm:$0xff] }
  0x30   : > { %540 = vmatprep.mubr.f32.mxu0 %v4496_v1  ;;  %797 = vmatprep.mubr.f32.mxu1 %v4496_v1  ;;  %v358_v48 = vld [vmem:[%s7561_s0 + $0x100] sm:$0xff]  ;;  %v352_v50 = vld [vmem:[%s7561_s0 + $0xd0] sm:$0xff]  ;;  %v353_v51 = vld [vmem:[%s7561_s0 + $0xd8] sm:$0xff] }
  0x31   : > { %541 = vmatmul.mubr.f32.gmra.mxu0 %v4769_v5  ;;  %798 = vmatmul.mubr.f32.gmra.mxu1 %v4769_v5  ;;  %v4947_v49 = vld [vmem:[%s4744_s16 + $0x60] sm:$0xff]  ;;  %v351_v52 = vld [vmem:[%s7561_s0 + $0xc8] sm:$0xff]  ;;  %v345_v54 = vld [vmem:[%s7561_s0 + $0x98] sm:$0xff] }
  0x32   : > { %546 = vmatprep.mubr.f32.mxu0 %v4496_v1  ;;  %803 = vmatprep.mubr.f32.mxu1 %v4496_v1  ;;  %v4963_v53 = vld [vmem:[%s4744_s16 + $0x68] sm:$0xff]  ;;  %v346_v55 = vld [vmem:[%s7561_s0 + $0xa0] sm:$0xff]  ;;  %v344_v56 = vld [vmem:[%s7561_s0 + $0x90] sm:$0xff] }
  0x33   : > { %986 = vmatprep.subr.mxu0 %v429_v6  ;;  %4253 = vmatprep.subr.mxu1 %v430_v7  ;;  %v4979_v57 = vld [vmem:[%s4744_s16 + $0x70] sm:$0xff]  ;;  %v338_v58 = vld [vmem:[%s7561_s0 + $0x60] sm:$0xff]  ;;  %v339_v59 = vld [vmem:[%s7561_s0 + $0x68] sm:$0xff] }
  0x34   : > { %987 = vmatpush1.msra.mxu0 %v428_v8  ;;  %4254 = vmatpush3.msra.mxu1 %v430_v7  ;;  %v337_v60 = vld [vmem:[%s7561_s0 + $0x58] sm:$0xff]  ;;  %v331_v62 = vld [vmem:[%s7561_s0 + $0x28] sm:$0xff]  ;;  %v332_v63 = vld [vmem:[%s7561_s0 + $0x30] sm:$0xff] }
  0x35   : > { %547 = vmatmul.mubr.f32.gmra.mxu0 %v4787_v9  ;;  %804 = vmatmul.mubr.f32.gmra.mxu1 %v4787_v9  ;;  %v4995_v61 = vld [vmem:[%s4744_s16 + $0x78] sm:$0xff]  ;;  %v330_v2 = vld [vmem:[%s7561_s0 + $0x20] sm:$0xff]  ;;  %v5018_v4 = vld [vmem:[%s4744_s16 + $0x88] sm:$0xff] }
  0x36   : > { %552 = vmatprep.mubr.f32.mxu0 %v4496_v1  ;;  %809 = vmatprep.mubr.f32.mxu1 %v4496_v1  ;;  %v5011_v3 = vld [vmem:[%s4744_s16 + $0x80] sm:$0xff]  ;;  %v5025_v6 = vld [vmem:[%s4744_s16 + $0x90] sm:$0xff]  ;;  %v5032_v7 = vld [vmem:[%s4744_s16 + $0x98] sm:$0xff] }
  0x37   : > { %988 = vmatprep.subr.mxu0 %v422_v10  ;;  %4255 = vmatprep.subr.mxu1 %v423_v11  ;;  %v5039_v8 = vld [vmem:[%s4744_s16 + $0xa0] sm:$0xff]  ;;  %v5046_v10 = vld [vmem:[%s4744_s16 + $0xa8] sm:$0xff] }
  0x38   : > { %989 = vmatpush1.msra.mxu0 %v421_v12  ;;  %4256 = vmatpush3.msra.mxu1 %v423_v11  ;;  %v5053_v11 = vld [vmem:[%s4744_s16 + $0xb0] sm:$0xff]  ;;  %v5060_v12 = vld [vmem:[%s4744_s16 + $0xb8] sm:$0xff] }
  0x39   : > { %553 = vmatmul.mubr.f32.gmra.mxu0 %v4803_v13  ;;  %810 = vmatmul.mubr.f32.gmra.mxu1 %v4803_v13 }
  0x3a   : > { %558 = vmatprep.mubr.f32.mxu0 %v4496_v1  ;;  %815 = vmatprep.mubr.f32.mxu1 %v4496_v1 }
  0x3b   : > { %990 = vmatprep.subr.mxu0 %v415_v14  ;;  %4257 = vmatprep.subr.mxu1 %v416_v15  ;;  %v1481_v14 = vld [vmem:[%s7562_s1 + $0x78] sm:$0xff] }
  0x3c   : > { %991 = vmatpush1.msra.mxu0 %v414_v16  ;;  %4258 = vmatpush3.msra.mxu1 %v416_v15  ;;  %v5070_v15 = vld [vmem:[%s4744_s16 + $0xc0] sm:$0xff]  ;;  %v5077_v16 = vld [vmem:[%s4744_s16 + $0xc8] sm:$0xff] }
  0x3d   : > { %559 = vmatmul.mubr.f32.gmra.mxu0 %v4819_v17  ;;  %816 = vmatmul.mubr.f32.gmra.mxu1 %v4819_v17 }
  0x3e   : > { %564 = vmatprep.mubr.f32.mxu0 %v4496_v1  ;;  %821 = vmatprep.mubr.f32.mxu1 %v4496_v1 }
  0x3f   : > { %992 = vmatprep.subr.mxu0 %v408_v18  ;;  %4259 = vmatprep.subr.mxu1 %v409_v19  ;;  %v5084_v18 = vld [vmem:[%s4744_s16 + $0xd0] sm:$0xff] }
  0x40   : > { %993 = vmatpush1.msra.mxu0 %v407_v20  ;;  %4260 = vmatpush3.msra.mxu1 %v409_v19  ;;  %v5091_v19 = vld [vmem:[%s4744_s16 + $0xd8] sm:$0xff]  ;;  %v5098_v20 = vld [vmem:[%s4744_s16 + $0xe0] sm:$0xff] }
  0x41   : > { %565 = vmatmul.mubr.f32.gmra.mxu0 %v4835_v21  ;;  %822 = vmatmul.mubr.f32.gmra.mxu1 %v4835_v21 }
  0x42   : > { %570 = vmatprep.mubr.f32.mxu0 %v4496_v1  ;;  %827 = vmatprep.mubr.f32.mxu1 %v4496_v1 }
  0x43   : > { %994 = vmatprep.subr.mxu0 %v401_v22  ;;  %4261 = vmatprep.subr.mxu1 %v402_v23  ;;  %v5105_v22 = vld [vmem:[%s4744_s16 + $0xe8] sm:$0xff] }
  0x44   : > { %995 = vmatpush1.msra.mxu0 %v400_v24  ;;  %4262 = vmatpush3.msra.mxu1 %v402_v23  ;;  %v5112_v23 = vld [vmem:[%s4744_s16 + $0xf0] sm:$0xff]  ;;  %v5119_v24 = vld [vmem:[%s4744_s16 + $0xf8] sm:$0xff] }
  0x45   : > { %571 = vmatmul.mubr.f32.gmra.mxu0 %v4851_v25  ;;  %828 = vmatmul.mubr.f32.gmra.mxu1 %v4851_v25 }
  0x46   : > { %576 = vmatprep.mubr.f32.mxu0 %v4496_v1  ;;  %833 = vmatprep.mubr.f32.mxu1 %v4496_v1 }
  0x47   : > { %996 = vmatprep.subr.mxu0 %v394_v26  ;;  %4263 = vmatprep.subr.mxu1 %v395_v27  ;;  %v1480_v26 = vld [vmem:[%s7562_s1 + $0x70] sm:$0xff] }
  0x48   : > { %997 = vmatpush1.msra.mxu0 %v393_v28  ;;  %4264 = vmatpush3.msra.mxu1 %v395_v27  ;;  %v1479_v27 = vld [vmem:[%s7562_s1 + $0x68] sm:$0xff]  ;;  %v1478_v28 = vld [vmem:[%s7562_s1 + $0x60] sm:$0xff] }
  0x49   : > { %577 = vmatmul.mubr.f32.gmra.mxu0 %v4867_v29  ;;  %834 = vmatmul.mubr.f32.gmra.mxu1 %v4867_v29 }
  0x4a   : > { %582 = vmatprep.mubr.f32.mxu0 %v4496_v1  ;;  %839 = vmatprep.mubr.f32.mxu1 %v4496_v1 }
  0x4b   : > { %998 = vmatprep.subr.mxu0 %v387_v30  ;;  %4265 = vmatprep.subr.mxu1 %v388_v31  ;;  %v1477_v30 = vld [vmem:[%s7562_s1 + $0x58] sm:$0xff] }
  0x4c   : > { %999 = vmatpush1.msra.mxu0 %v386_v32  ;;  %4266 = vmatpush3.msra.mxu1 %v388_v31  ;;  %v1476_v31 = vld [vmem:[%s7562_s1 + $0x50] sm:$0xff]  ;;  %v1475_v32 = vld [vmem:[%s7562_s1 + $0x48] sm:$0xff] }
  0x4d   : > { %583 = vmatmul.mubr.f32.gmra.mxu0 %v4883_v33  ;;  %840 = vmatmul.mubr.f32.gmra.mxu1 %v4883_v33 }
  0x4e   : > { %588 = vmatprep.mubr.f32.mxu0 %v4496_v1  ;;  %845 = vmatprep.mubr.f32.mxu1 %v4496_v1 }
  0x4f   : > { %1000 = vmatprep.subr.mxu0 %v380_v34  ;;  %4267 = vmatprep.subr.mxu1 %v381_v35  ;;  %v1474_v34 = vld [vmem:[%s7562_s1 + $0x40] sm:$0xff] }
  0x50   : > { %1001 = vmatpush1.msra.mxu0 %v379_v36  ;;  %4268 = vmatpush3.msra.mxu1 %v381_v35  ;;  %v1473_v35 = vld [vmem:[%s7562_s1 + $0x38] sm:$0xff]  ;;  %v1472_v36 = vld [vmem:[%s7562_s1 + $0x30] sm:$0xff] }
  0x51   : > { %589 = vmatmul.mubr.f32.gmra.mxu0 %v4899_v37  ;;  %846 = vmatmul.mubr.f32.gmra.mxu1 %v4899_v37 }
  0x52   : > { %594 = vmatprep.mubr.f32.mxu0 %v4496_v1  ;;  %851 = vmatprep.mubr.f32.mxu1 %v4496_v1 }
  0x53   : > { %1002 = vmatprep.subr.mxu0 %v373_v38  ;;  %4269 = vmatprep.subr.mxu1 %v374_v39  ;;  %v1471_v38 = vld [vmem:[%s7562_s1 + $0x28] sm:$0xff] }
  0x54   : > { %1003 = vmatpush1.msra.mxu0 %v372_v40  ;;  %4270 = vmatpush3.msra.mxu1 %v374_v39  ;;  %v1470_v39 = vld [vmem:[%s7562_s1 + $0x20] sm:$0xff]  ;;  %v1469_v40 = vld [vmem:[%s7562_s1 + $0x18] sm:$0xff] }
  0x55   : > { %595 = vmatmul.mubr.f32.gmra.mxu0 %v4915_v41  ;;  %852 = vmatmul.mubr.f32.gmra.mxu1 %v4915_v41 }
  0x56   : > { %600 = vmatprep.mubr.f32.mxu0 %v4496_v1  ;;  %857 = vmatprep.mubr.f32.mxu1 %v4496_v1 }
  0x57   : > { %1004 = vmatprep.subr.mxu0 %v366_v42  ;;  %4271 = vmatprep.subr.mxu1 %v367_v43  ;;  %v1468_v42 = vld [vmem:[%s7562_s1 + $0x10] sm:$0xff] }
  0x58   : > { %1005 = vmatpush1.msra.mxu0 %v365_v44  ;;  %4272 = vmatpush3.msra.mxu1 %v367_v43  ;;  %v1467_v43 = vld [vmem:[%s7562_s1 + $0x8] sm:$0xff]  ;;  %v1466_v44 = vld [vmem:[%s7562_s1] sm:$0xff] }
  0x59   : > { %601 = vmatmul.mubr.f32.gmra.mxu0 %v4931_v45  ;;  %858 = vmatmul.mubr.f32.gmra.mxu1 %v4931_v45 }
  0x5a   : > { %606 = vmatprep.mubr.f32.mxu0 %v4496_v1  ;;  %863 = vmatprep.mubr.f32.mxu1 %v4496_v1 }
  0x5b   : > { %1006 = vmatprep.subr.mxu0 %v359_v46  ;;  %4273 = vmatprep.subr.mxu1 %v360_v47 }
  0x5c   : > { %1007 = vmatpush1.msra.mxu0 %v358_v48  ;;  %4274 = vmatpush3.msra.mxu1 %v360_v47 }
  0x5d   : > { %607 = vmatmul.mubr.f32.gmra.mxu0 %v4947_v49  ;;  %864 = vmatmul.mubr.f32.gmra.mxu1 %v4947_v49 }
  0x5e   : > { %612 = vmatprep.mubr.f32.mxu0 %v4496_v1  ;;  %869 = vmatprep.mubr.f32.mxu1 %v4496_v1 }
  0x5f   : > { %1008 = vmatprep.subr.mxu0 %v352_v50  ;;  %4275 = vmatprep.subr.mxu1 %v353_v51 }
  0x60   : > { %1009 = vmatpush1.msra.mxu0 %v351_v52  ;;  %4276 = vmatpush3.msra.mxu1 %v353_v51 }
  0x61   : > { %613 = vmatmul.mubr.f32.gmra.mxu0 %v4963_v53  ;;  %870 = vmatmul.mubr.f32.gmra.mxu1 %v4963_v53 }
  0x62   : > { %618 = vmatprep.mubr.f32.mxu0 %v4496_v1  ;;  %875 = vmatprep.mubr.f32.mxu1 %v4496_v1 }
  0x63   : > { %1010 = vmatprep.subr.mxu0 %v345_v54  ;;  %4277 = vmatprep.subr.mxu1 %v346_v55 }
  0x64   : > { %1011 = vmatpush1.msra.mxu0 %v344_v56  ;;  %4278 = vmatpush3.msra.mxu1 %v346_v55 }
  0x65   : > { %619 = vmatmul.mubr.f32.gmra.mxu0 %v4979_v57  ;;  %876 = vmatmul.mubr.f32.gmra.mxu1 %v4979_v57 }
  0x66   : > { %624 = vmatprep.mubr.f32.mxu0 %v4496_v1  ;;  %881 = vmatprep.mubr.f32.mxu1 %v4496_v1 }
  0x67   : > { %1012 = vmatprep.subr.mxu0 %v338_v58  ;;  %4279 = vmatprep.subr.mxu1 %v339_v59 }
  0x68   : > { %1013 = vmatpush1.msra.mxu0 %v337_v60  ;;  %4280 = vmatpush3.msra.mxu1 %v339_v59 }
  0x69   : > { %625 = vmatmul.mubr.f32.gmra.mxu0 %v4995_v61  ;;  %882 = vmatmul.mubr.f32.gmra.mxu1 %v4995_v61 }
  0x6a   : > { %630 = vmatprep.mubr.f32.mxu0 %v4496_v1  ;;  %887 = vmatprep.mubr.f32.mxu1 %v4496_v1 }
  0x6b   : > { %1014 = vmatprep.subr.mxu0 %v331_v62  ;;  %4281 = vmatprep.subr.mxu1 %v332_v63 }
  0x6c   : > { %1015 = vmatpush1.msra.mxu0 %v330_v2  ;;  %4282 = vmatpush3.msra.mxu1 %v332_v63 }
  0x6d   : > { %631 = vmatmul.mubr.f32.gmra.mxu0 %v5011_v3  ;;  %888 = vmatmul.mubr.f32.gmra.mxu1 %v5011_v3 }
  0x6e   : > { %636 = vmatprep.mubr.f32.mxu0 %v4496_v1  ;;  %893 = vmatprep.mubr.f32.mxu1 %v4496_v1 }
  0x6f   : > { %4331 = vmatprep.subr.mxu1 %v1481_v14 }
  0x71   : > { %637 = vmatmul.mubr.f32.gmra.mxu0 %v5018_v4  ;;  %894 = vmatmul.mubr.f32.gmra.mxu1 %v5018_v4 }
  0x72   : > { %642 = vmatprep.mubr.f32.mxu0 %v4496_v1  ;;  %899 = vmatprep.mubr.f32.mxu1 %v4496_v1 }
  0x75   : > { %643 = vmatmul.mubr.f32.gmra.mxu0 %v5025_v6  ;;  %900 = vmatmul.mubr.f32.gmra.mxu1 %v5025_v6 }
  0x76   : > { %648 = vmatprep.mubr.f32.mxu0 %v4496_v1  ;;  %905 = vmatprep.mubr.f32.mxu1 %v4496_v1 }
  0x79   : > { %649 = vmatmul.mubr.f32.gmra.mxu0 %v5032_v7  ;;  %906 = vmatmul.mubr.f32.gmra.mxu1 %v5032_v7 }
  0x7a   : > { %654 = vmatprep.mubr.f32.mxu0 %v4496_v1  ;;  %911 = vmatprep.mubr.f32.mxu1 %v4496_v1 }
  0x7d   : > { %655 = vmatmul.mubr.f32.gmra.mxu0 %v5039_v8  ;;  %912 = vmatmul.mubr.f32.gmra.mxu1 %v5039_v8 }
  0x7e   : > { %660 = vmatprep.mubr.f32.mxu0 %v4496_v1  ;;  %917 = vmatprep.mubr.f32.mxu1 %v4496_v1 }
  0x81   : > { %661 = vmatmul.mubr.f32.gmra.mxu0 %v5046_v10  ;;  %918 = vmatmul.mubr.f32.gmra.mxu1 %v5046_v10 }
  0x82   : > { %666 = vmatprep.mubr.f32.mxu0 %v4496_v1  ;;  %923 = vmatprep.mubr.f32.mxu1 %v4496_v1 }
  0x85   : > { %667 = vmatmul.mubr.f32.gmra.mxu0 %v5053_v11  ;;  %924 = vmatmul.mubr.f32.gmra.mxu1 %v5053_v11 }
  0x86   : > { %672 = vmatprep.mubr.f32.mxu0 %v4496_v1  ;;  %929 = vmatprep.mubr.f32.mxu1 %v4496_v1 }
  0x89   : > { %673 = vmatmul.mubr.f32.gmra.mxu0 %v5060_v12  ;;  %930 = vmatmul.mubr.f32.gmra.mxu1 %v5060_v12 }
  0x8a   : > { %678 = vmatprep.mubr.f32.mxu0 %v4496_v1  ;;  %935 = vmatprep.mubr.f32.mxu1 %v4496_v1 }
  0x8d   : > { %679 = vmatmul.mubr.f32.gmra.mxu0 %v5070_v15  ;;  %936 = vmatmul.mubr.f32.gmra.mxu1 %v5070_v15 }
  0x8e   : > { %684 = vmatprep.mubr.f32.mxu0 %v4496_v1  ;;  %941 = vmatprep.mubr.f32.mxu1 %v4496_v1 }
  0x91   : > { %685 = vmatmul.mubr.f32.gmra.mxu0 %v5077_v16  ;;  %942 = vmatmul.mubr.f32.gmra.mxu1 %v5077_v16 }
  0x92   : > { %690 = vmatprep.mubr.f32.mxu0 %v4496_v1  ;;  %947 = vmatprep.mubr.f32.mxu1 %v4496_v1 }
  0x95   : > { %691 = vmatmul.mubr.f32.gmra.mxu0 %v5084_v18  ;;  %948 = vmatmul.mubr.f32.gmra.mxu1 %v5084_v18 }
  0x96   : > { %696 = vmatprep.mubr.f32.mxu0 %v4496_v1  ;;  %953 = vmatprep.mubr.f32.mxu1 %v4496_v1 }
  0x99   : > { %697 = vmatmul.mubr.f32.gmra.mxu0 %v5091_v19  ;;  %954 = vmatmul.mubr.f32.gmra.mxu1 %v5091_v19 }
  0x9a   : > { %702 = vmatprep.mubr.f32.mxu0 %v4496_v1  ;;  %959 = vmatprep.mubr.f32.mxu1 %v4496_v1 }
  0x9d   : > { %703 = vmatmul.mubr.f32.gmra.mxu0 %v5098_v20  ;;  %960 = vmatmul.mubr.f32.gmra.mxu1 %v5098_v20 }
  0x9e   : > { %708 = vmatprep.mubr.f32.mxu0 %v4496_v1  ;;  %965 = vmatprep.mubr.f32.mxu1 %v4496_v1 }
  0xa1   : > { %709 = vmatmul.mubr.f32.gmra.mxu0 %v5105_v22  ;;  %966 = vmatmul.mubr.f32.gmra.mxu1 %v5105_v22 }
  0xa2   : > { %714 = vmatprep.mubr.f32.mxu0 %v4496_v1  ;;  %971 = vmatprep.mubr.f32.mxu1 %v4496_v1 }
  0xa5   : > { %715 = vmatmul.mubr.f32.gmra.mxu0 %v5112_v23  ;;  %972 = vmatmul.mubr.f32.gmra.mxu1 %v5112_v23 }
  0xa6   : > { %720 = vmatprep.mubr.f32.mxu0 %v4496_v1  ;;  %977 = vmatprep.mubr.f32.mxu1 %v4496_v1 }
  0xa9   : > { %721 = vmatmul.mubr.f32.gmra.mxu0 %v5119_v24  ;;  %978 = vmatmul.mubr.f32.gmra.mxu1 %v5119_v24 }
  0xaa   : > { %1048 = vmatprep.mubr.f32.mxu0 %v4496_v1  ;;  %4283 = vmatprep.mubr.f32.mxu1 %v4753_v0 }
  0xad   : > { %1049 = vmatmul.mubr.f32.vlgmr.msra.gmra.mxu0 %v4753_v0  ;;  %4284 = vmatmul.mubr.f32.vlgmr.msra.gmra.mxu1 %v4769_v5 }
  0xae   : > { %1054 = vmatprep.mubr.f32.mxu0 %v4496_v1  ;;  %4286 = vmatprep.mubr.f32.mxu1 %v4787_v9 }
  0xaf   : > { %4332 = vmatpush3.msra.mxu1 %v1481_v14 }
  0xb0   : > { %4333 = vmatprep.subr.mxu1 %v1480_v26 }
  0xb1   : > { %1055 = vmatmul.mubr.f32.gmra.mxu0 %v4769_v5  ;;  %4287 = vmatmul.mubr.f32.gmra.mxu1 %v4803_v13 }
  0xb2   : > { %1060 = vmatprep.mubr.f32.mxu0 %v4496_v1  ;;  %4289 = vmatprep.mubr.f32.mxu1 %v4819_v17 }
  0xb3   : > { %4334 = vmatpush3.msra.mxu1 %v1480_v26 }
  0xb4   : > { %4335 = vmatprep.subr.mxu1 %v1479_v27 }
  0xb5   : > { %1061 = vmatmul.mubr.f32.gmra.mxu0 %v4787_v9  ;;  %4290 = vmatmul.mubr.f32.gmra.mxu1 %v4835_v21 }
  0xb6   : > { %1066 = vmatprep.mubr.f32.mxu0 %v4496_v1  ;;  %4292 = vmatprep.mubr.f32.mxu1 %v4851_v25 }
  0xb7   : > { %4336 = vmatpush3.msra.mxu1 %v1479_v27 }
  0xb8   : > { %4337 = vmatprep.subr.mxu1 %v1478_v28 }
  0xb9   : > { %1067 = vmatmul.mubr.f32.gmra.mxu0 %v4803_v13  ;;  %4293 = vmatmul.mubr.f32.gmra.mxu1 %v4867_v29 }
  0xba   : > { %1072 = vmatprep.mubr.f32.mxu0 %v4496_v1  ;;  %4295 = vmatprep.mubr.f32.mxu1 %v4883_v33 }
  0xbb   : > { %4338 = vmatpush3.msra.mxu1 %v1478_v28 }
  0xbc   : > { %4339 = vmatprep.subr.mxu1 %v1477_v30 }
  0xbd   : > { %1073 = vmatmul.mubr.f32.gmra.mxu0 %v4819_v17  ;;  %4296 = vmatmul.mubr.f32.gmra.mxu1 %v4899_v37 }
  0xbe   : > { %1078 = vmatprep.mubr.f32.mxu0 %v4496_v1  ;;  %4298 = vmatprep.mubr.f32.mxu1 %v4915_v41 }
  0xbf   : > { %4340 = vmatpush3.msra.mxu1 %v1477_v30 }
  0xc0   : > { %4341 = vmatprep.subr.mxu1 %v1476_v31 }
  0xc1   : > { %1079 = vmatmul.mubr.f32.gmra.mxu0 %v4835_v21  ;;  %4299 = vmatmul.mubr.f32.gmra.mxu1 %v4931_v45 }
  0xc2   : > { %1084 = vmatprep.mubr.f32.mxu0 %v4496_v1  ;;  %4301 = vmatprep.mubr.f32.mxu1 %v4947_v49 }
  0xc3   : > { %4342 = vmatpush3.msra.mxu1 %v1476_v31 }
  0xc4   : > { %4343 = vmatprep.subr.mxu1 %v1475_v32 }
  0xc5   : > { %1085 = vmatmul.mubr.f32.gmra.mxu0 %v4851_v25  ;;  %4302 = vmatmul.mubr.f32.gmra.mxu1 %v4963_v53 }
  0xc6   : > { %1090 = vmatprep.mubr.f32.mxu0 %v4496_v1  ;;  %4304 = vmatprep.mubr.f32.mxu1 %v4979_v57 }
  0xc7   : > { %4344 = vmatpush3.msra.mxu1 %v1475_v32 }
  0xc8   : > { %4345 = vmatprep.subr.mxu1 %v1474_v34 }
  0xc9   : > { %1091 = vmatmul.mubr.f32.gmra.mxu0 %v4867_v29  ;;  %4305 = vmatmul.mubr.f32.gmra.mxu1 %v4995_v61 }
  0xca   : > { %1096 = vmatprep.mubr.f32.mxu0 %v4496_v1  ;;  %4307 = vmatprep.mubr.f32.mxu1 %v5011_v3 }
  0xcb   : > { %4346 = vmatpush3.msra.mxu1 %v1474_v34 }
  0xcc   : > { %4347 = vmatprep.subr.mxu1 %v1473_v35 }
  0xcd   : > { %1097 = vmatmul.mubr.f32.gmra.mxu0 %v4883_v33  ;;  %4308 = vmatmul.mubr.f32.gmra.mxu1 %v5018_v4 }
  0xce   : > { %1102 = vmatprep.mubr.f32.mxu0 %v4496_v1  ;;  %4310 = vmatprep.mubr.f32.mxu1 %v5025_v6 }
  0xcf   : > { %4348 = vmatpush3.msra.mxu1 %v1473_v35 }
  0xd0   : > { %4349 = vmatprep.subr.mxu1 %v1472_v36 }
  0xd1   : > { %1103 = vmatmul.mubr.f32.gmra.mxu0 %v4899_v37  ;;  %4311 = vmatmul.mubr.f32.gmra.mxu1 %v5032_v7 }
  0xd2   : > { %1108 = vmatprep.mubr.f32.mxu0 %v4496_v1  ;;  %4313 = vmatprep.mubr.f32.mxu1 %v5039_v8 }
  0xd3   : > { %4350 = vmatpush3.msra.mxu1 %v1472_v36 }
  0xd4   : > { %4351 = vmatprep.subr.mxu1 %v1471_v38 }
  0xd5   : > { %1109 = vmatmul.mubr.f32.gmra.mxu0 %v4915_v41  ;;  %4314 = vmatmul.mubr.f32.gmra.mxu1 %v5046_v10 }
  0xd6   : > { %1114 = vmatprep.mubr.f32.mxu0 %v4496_v1  ;;  %4316 = vmatprep.mubr.f32.mxu1 %v5053_v11 }
  0xd7   : > { %4352 = vmatpush3.msra.mxu1 %v1471_v38 }
  0xd8   : > { %4353 = vmatprep.subr.mxu1 %v1470_v39 }
  0xd9   : > { %1115 = vmatmul.mubr.f32.gmra.mxu0 %v4931_v45  ;;  %4317 = vmatmul.mubr.f32.gmra.mxu1 %v5060_v12 }
  0xda   : > { %1120 = vmatprep.mubr.f32.mxu0 %v4496_v1  ;;  %4319 = vmatprep.mubr.f32.mxu1 %v5070_v15 }
  0xdb   : > { %4354 = vmatpush3.msra.mxu1 %v1470_v39 }
  0xdc   : > { %4355 = vmatprep.subr.mxu1 %v1469_v40 }
  0xdd   : > { %1121 = vmatmul.mubr.f32.gmra.mxu0 %v4947_v49  ;;  %4320 = vmatmul.mubr.f32.gmra.mxu1 %v5077_v16 }
  0xde   : > { %1126 = vmatprep.mubr.f32.mxu0 %v4496_v1  ;;  %4322 = vmatprep.mubr.f32.mxu1 %v5084_v18 }
  0xdf   : > { %4356 = vmatpush3.msra.mxu1 %v1469_v40 }
  0xe0   : > { %4357 = vmatprep.subr.mxu1 %v1468_v42 }
  0xe1   : > { %1127 = vmatmul.mubr.f32.gmra.mxu0 %v4963_v53  ;;  %4323 = vmatmul.mubr.f32.gmra.mxu1 %v5091_v19 }
  0xe2   : > { %1132 = vmatprep.mubr.f32.mxu0 %v4496_v1  ;;  %4325 = vmatprep.mubr.f32.mxu1 %v5098_v20 }
  0xe3   : > { %4358 = vmatpush3.msra.mxu1 %v1468_v42 }
  0xe4   : > { %4359 = vmatprep.subr.mxu1 %v1467_v43 }
  0xe5   : > { %1133 = vmatmul.mubr.f32.gmra.mxu0 %v4979_v57  ;;  %4326 = vmatmul.mubr.f32.gmra.mxu1 %v5105_v22 }
  0xe6   : > { %1138 = vmatprep.mubr.f32.mxu0 %v4496_v1  ;;  %4328 = vmatprep.mubr.f32.mxu1 %v5112_v23 }
  0xe7   : > { %4360 = vmatpush3.msra.mxu1 %v1467_v43 }
  0xe8   : > { %4361 = vmatprep.subr.mxu1 %v1466_v44 }
  0xe9   : > { %1139 = vmatmul.mubr.f32.gmra.mxu0 %v4995_v61  ;;  %4329 = vmatmul.mubr.f32.gmra.mxu1 %v5119_v24 }
  0xea   : > { %1144 = vmatprep.mubr.f32.mxu0 %v4496_v1  ;;  %4362 = vmatpush3.msra.mxu1 %v1466_v44 }
  0xeb   : > { %4363 = vmatprep.mubr.f32.mxu1 %v4753_v0 }
  0xed   : > { %v5234_v46 = vpop.f32.mrf.mxu0  ;;  %v5236_v47 = vpop.f32.mrf.mxu1  ;;  %1145 = vmatmul.mubr.f32.gmra.mxu0 %v5011_v3  ;;  %4364 = vmatmul.mubr.f32.vlgmr.msra.gmra.mxu1 %v4769_v5 }
  0xee   : > { %7766 = vst [vmem:[#allocation2_spill] sm:$0xff] %v5234_v46  ;;  %7767 = vst [vmem:[#allocation3_spill] sm:$0xff] %v5236_v47  ;;  %1150 = vmatprep.mubr.f32.mxu0 %v4496_v1  ;;  %4366 = vmatprep.mubr.f32.mxu1 %v4787_v9 }
  0xef   : > { %v5242_v48 = vpop.f32.mrf.mxu0  ;;  %v5244_v50 = vpop.f32.mrf.mxu1 }
  0xf0   : > { %7768 = vst [vmem:[#allocation4_spill] sm:$0xff] %v5242_v48  ;;  %7769 = vst [vmem:[#allocation5_spill] sm:$0xff] %v5244_v50 }
  0xf1   : > { %v5246_v51 = vpop.f32.mrf.mxu0  ;;  %v5248_v52 = vpop.f32.mrf.mxu1  ;;  %1151 = vmatmul.mubr.f32.gmra.mxu0 %v5018_v4  ;;  %4367 = vmatmul.mubr.f32.gmra.mxu1 %v4803_v13 }
  0xf2   : > { %7770 = vst [vmem:[#allocation6_spill] sm:$0xff] %v5246_v51  ;;  %7771 = vst [vmem:[#allocation7_spill] sm:$0xff] %v5248_v52  ;;  %1156 = vmatprep.mubr.f32.mxu0 %v4496_v1  ;;  %4369 = vmatprep.mubr.f32.mxu1 %v4819_v17 }
  0xf3   : > { %v5254_v0 = vpop.f32.mrf.mxu0  ;;  %v5256_v5 = vpop.f32.mrf.mxu1 }
  0xf4   : > { %7772 = vst [vmem:[#allocation8_spill] sm:$0xff] %v5254_v0  ;;  %7773 = vst [vmem:[#allocation9_spill] sm:$0xff] %v5256_v5 }
  0xf5   : > { %v5258_v9 = vpop.f32.mrf.mxu0  ;;  %v5260_v54 = vpop.f32.mrf.mxu1  ;;  %1157 = vmatmul.mubr.f32.gmra.mxu0 %v5025_v6  ;;  %4370 = vmatmul.mubr.f32.gmra.mxu1 %v4835_v21 }
  0xf6   : > { %7774 = vst [vmem:[#allocation10_spill] sm:$0xff] %v5258_v9  ;;  %7775 = vst [vmem:[#allocation11_spill] sm:$0xff] %v5260_v54  ;;  %1162 = vmatprep.mubr.f32.mxu0 %v4496_v1  ;;  %4372 = vmatprep.mubr.f32.mxu1 %v4851_v25 }
  0xf7   : > { %v5265_v55 = vpop.f32.mrf.mxu0  ;;  %v5267_v13 = vpop.f32.mrf.mxu1 }
  0xf8   : > { %7776 = vst [vmem:[#allocation12_spill] sm:$0xff] %v5265_v55  ;;  %7777 = vst [vmem:[#allocation13_spill] sm:$0xff] %v5267_v13 }
  0xf9   : > { %v5270_v17 = vpop.f32.mrf.mxu0  ;;  %v5272_v56 = vpop.f32.mrf.mxu1  ;;  %1163 = vmatmul.mubr.f32.gmra.mxu0 %v5032_v7  ;;  %4373 = vmatmul.mubr.f32.gmra.mxu1 %v4867_v29 }
  0xfa   : > { %7778 = vst [vmem:[#allocation14_spill] sm:$0xff] %v5270_v17  ;;  %1168 = vmatprep.mubr.f32.mxu0 %v4496_v1  ;;  %4375 = vmatprep.mubr.f32.mxu1 %v4883_v33 }
  0xfb   : > { %v5277_v58 = vpop.f32.mrf.mxu0  ;;  %v5279_v21 = vpop.f32.mrf.mxu1 }
  0xfc   : > { %7779 = vst [vmem:[#allocation15_spill] sm:$0xff] %v5277_v58 }
  0xfd   : > { %v5282_v59 = vpop.f32.mrf.mxu0  ;;  %v5284_v60 = vpop.f32.mrf.mxu1  ;;  %1169 = vmatmul.mubr.f32.gmra.mxu0 %v5039_v8  ;;  %4376 = vmatmul.mubr.f32.gmra.mxu1 %v4899_v37 }
  0xfe   : > { %7780 = vst [vmem:[#allocation16_spill] sm:$0xff] %v5282_v59  ;;  %7781 = vst [vmem:[#allocation17_spill] sm:$0xff] %v5284_v60  ;;  %1174 = vmatprep.mubr.f32.mxu0 %v4496_v1  ;;  %4378 = vmatprep.mubr.f32.mxu1 %v4915_v41 }
  0xff   : > { %v5289_v25 = vpop.f32.mrf.mxu0  ;;  %v5291_v29 = vpop.f32.mrf.mxu1 }
 0x100   : > { %7782 = vst [vmem:[#allocation18_spill] sm:$0xff] %v5289_v25 }
 0x101   : > { %v5294_v62 = vpop.f32.mrf.mxu0  ;;  %v5296_v63 = vpop.f32.mrf.mxu1  ;;  %1175 = vmatmul.mubr.f32.gmra.mxu0 %v5046_v10  ;;  %4379 = vmatmul.mubr.f32.gmra.mxu1 %v4931_v45 }
 0x102   : > { %7783 = vst [vmem:[#allocation19_spill] sm:$0xff] %v5294_v62  ;;  %7784 = vst [vmem:[#allocation20_spill] sm:$0xff] %v5296_v63  ;;  %1180 = vmatprep.mubr.f32.mxu0 %v4496_v1  ;;  %4381 = vmatprep.mubr.f32.mxu1 %v4947_v49 }
 0x103   : > { %v5301_v33 = vpop.f32.mrf.mxu0  ;;  %v5303_v37 = vpop.f32.mrf.mxu1 }
 0x104   : > { %7785 = vst [vmem:[#allocation21_spill] sm:$0xff] %v5301_v33 }
 0x105   : > { %v5306_v2 = vpop.f32.mrf.mxu0  ;;  %v5308_v14 = vpop.f32.mrf.mxu1  ;;  %1181 = vmatmul.mubr.f32.gmra.mxu0 %v5053_v11  ;;  %4382 = vmatmul.mubr.f32.gmra.mxu1 %v4963_v53 }
 0x106   : > { %7786 = vst [vmem:[#allocation22_spill] sm:$0xff] %v5306_v2  ;;  %7787 = vst [vmem:[#allocation23_spill] sm:$0xff] %v5308_v14  ;;  %1186 = vmatprep.mubr.f32.mxu0 %v4496_v1  ;;  %4384 = vmatprep.mubr.f32.mxu1 %v4979_v57 }
 0x107   : > { %v5313_v41 = vpop.f32.mrf.mxu0  ;;  %v5315_v45 = vpop.f32.mrf.mxu1 }
 0x108   : > { %7788 = vst [vmem:[#allocation24_spill] sm:$0xff] %v5313_v41 }
 0x109   : > { %v5318_v26 = vpop.f32.mrf.mxu0  ;;  %v5320_v27 = vpop.f32.mrf.mxu1  ;;  %1187 = vmatmul.mubr.f32.gmra.mxu0 %v5060_v12  ;;  %4385 = vmatmul.mubr.f32.gmra.mxu1 %v4995_v61 }
 0x10a   : > { %7789 = vst [vmem:[#allocation25_spill] sm:$0xff] %v5318_v26  ;;  %7790 = vst [vmem:[#allocation26_spill] sm:$0xff] %v5320_v27  ;;  %1192 = vmatprep.mubr.f32.mxu0 %v4496_v1  ;;  %4387 = vmatprep.mubr.f32.mxu1 %v5011_v3 }
 0x10b   : > { %v5325_v49 = vpop.f32.mrf.mxu0  ;;  %v5327_v53 = vpop.f32.mrf.mxu1 }
 0x10c   : > { %7791 = vst [vmem:[#allocation27_spill] sm:$0xff] %v5325_v49  ;;  %7792 = vst [vmem:[#allocation28_spill] sm:$0xff] %v5327_v53 }
 0x10d   : > { %v5330_v28 = vpop.f32.mrf.mxu0  ;;  %v5332_v30 = vpop.f32.mrf.mxu1  ;;  %1193 = vmatmul.mubr.f32.gmra.mxu0 %v5070_v15  ;;  %4388 = vmatmul.mubr.f32.gmra.mxu1 %v5018_v4 }
 0x10e   : > { %7793 = vst [vmem:[#allocation29_spill] sm:$0xff] %v5330_v28  ;;  %7794 = vst [vmem:[#allocation30_spill] sm:$0xff] %v5332_v30  ;;  %1198 = vmatprep.mubr.f32.mxu0 %v4496_v1  ;;  %4390 = vmatprep.mubr.f32.mxu1 %v5025_v6 }
 0x10f   : > { %v5337_v57 = vpop.f32.mrf.mxu0  ;;  %v5339_v61 = vpop.f32.mrf.mxu1 }
 0x110   : > { %7795 = vst [vmem:[#allocation31_spill] sm:$0xff] %v5337_v57  ;;  %7796 = vst [vmem:[#allocation32_spill] sm:$0xff] %v5339_v61 }
 0x111   : > { %v5342_v31 = vpop.f32.mrf.mxu0  ;;  %v5344_v32 = vpop.f32.mrf.mxu1  ;;  %1199 = vmatmul.mubr.f32.gmra.mxu0 %v5077_v16  ;;  %4391 = vmatmul.mubr.f32.gmra.mxu1 %v5032_v7 }
 0x112   : > { %1204 = vmatprep.mubr.f32.mxu0 %v4496_v1  ;;  %4393 = vmatprep.mubr.f32.mxu1 %v5039_v8 }
 0x113   : > { %v5349_v3 = vpop.f32.mrf.mxu0  ;;  %v5351_v4 = vpop.f32.mrf.mxu1 }
 0x115   : > { %v5354_v34 = vpop.f32.mrf.mxu0  ;;  %v5356_v35 = vpop.f32.mrf.mxu1  ;;  %1205 = vmatmul.mubr.f32.gmra.mxu0 %v5084_v18  ;;  %4394 = vmatmul.mubr.f32.gmra.mxu1 %v5046_v10 }
 0x116   : > { %7797 = vst [vmem:[#allocation33_spill] sm:$0xff] %v5354_v34  ;;  %7798 = vst [vmem:[#allocation34_spill] sm:$0xff] %v5356_v35  ;;  %1210 = vmatprep.mubr.f32.mxu0 %v4496_v1  ;;  %4396 = vmatprep.mubr.f32.mxu1 %v5053_v11 }
 0x117   : > { %v5361_v6 = vpop.f32.mrf.mxu0  ;;  %v5363_v7 = vpop.f32.mrf.mxu1 }
 0x118   : > { %7799 = vst [vmem:[#allocation35_spill] sm:$0xff] %v5361_v6  ;;  %7800 = vst [vmem:[#allocation36_spill] sm:$0xff] %v5363_v7 }
 0x119   : > { %v5366_v36 = vpop.f32.mrf.mxu0  ;;  %v5368_v38 = vpop.f32.mrf.mxu1  ;;  %1211 = vmatmul.mubr.f32.gmra.mxu0 %v5091_v19  ;;  %4397 = vmatmul.mubr.f32.gmra.mxu1 %v5060_v12 }
 0x11a   : > { %7801 = vst [vmem:[#allocation37_spill] sm:$0xff] %v5366_v36  ;;  %7802 = vst [vmem:[#allocation38_spill] sm:$0xff] %v5368_v38  ;;  %1216 = vmatprep.mubr.f32.mxu0 %v4496_v1  ;;  %4399 = vmatprep.mubr.f32.mxu1 %v5070_v15 }
 0x11b   : > { %v5373_v8 = vpop.f32.mrf.mxu0  ;;  %v5375_v10 = vpop.f32.mrf.mxu1 }
 0x11c   : > { %7803 = vst [vmem:[#allocation39_spill] sm:$0xff] %v5373_v8  ;;  %7804 = vst [vmem:[#allocation40_spill] sm:$0xff] %v5375_v10 }
 0x11d   : > { %v5378_v39 = vpop.f32.mrf.mxu0  ;;  %v5380_v40 = vpop.f32.mrf.mxu1  ;;  %1217 = vmatmul.mubr.f32.gmra.mxu0 %v5098_v20  ;;  %4400 = vmatmul.mubr.f32.gmra.mxu1 %v5077_v16 }
 0x11e   : > { %7805 = vst [vmem:[#allocation41_spill] sm:$0xff] %v5378_v39  ;;  %7806 = vst [vmem:[#allocation42_spill] sm:$0xff] %v5380_v40  ;;  %1222 = vmatprep.mubr.f32.mxu0 %v4496_v1  ;;  %4402 = vmatprep.mubr.f32.mxu1 %v5084_v18 }
 0x11f   : > { %v5385_v11 = vpop.f32.mrf.mxu0  ;;  %v5387_v12 = vpop.f32.mrf.mxu1 }
 0x120   : > { %7807 = vst [vmem:[#allocation43_spill] sm:$0xff] %v5385_v11  ;;  %7808 = vst [vmem:[#allocation44_spill] sm:$0xff] %v5387_v12 }
 0x121   : > { %v5390_v42 = vpop.f32.mrf.mxu0  ;;  %v5392_v43 = vpop.f32.mrf.mxu1  ;;  %1223 = vmatmul.mubr.f32.gmra.mxu0 %v5105_v22  ;;  %4403 = vmatmul.mubr.f32.gmra.mxu1 %v5091_v19 }
 0x122   : > { %7809 = vst [vmem:[#allocation45_spill] sm:$0xff] %v5390_v42  ;;  %7810 = vst [vmem:[#allocation46_spill] sm:$0xff] %v5392_v43  ;;  %1228 = vmatprep.mubr.f32.mxu0 %v4496_v1  ;;  %4405 = vmatprep.mubr.f32.mxu1 %v5098_v20 }
 0x123   : > { %v5397_v15 = vpop.f32.mrf.mxu0  ;;  %v5399_v16 = vpop.f32.mrf.mxu1 }
 0x124   : > { %7811 = vst [vmem:[#allocation47_spill] sm:$0xff] %v5397_v15  ;;  %7812 = vst [vmem:[#allocation48_spill] sm:$0xff] %v5399_v16 }
 0x125   : > { %v5402_v44 = vpop.f32.mrf.mxu0  ;;  %v5404_v12 = vpop.f32.mrf.mxu1  ;;  %1229 = vmatmul.mubr.f32.gmra.mxu0 %v5112_v23  ;;  %4406 = vmatmul.mubr.f32.gmra.mxu1 %v5105_v22 }
 0x126   : > { %7813 = vst [vmem:[#allocation49_spill] sm:$0xff] %v5402_v44  ;;  %7814 = vst [vmem:[#allocation50_spill] sm:$0xff] %v5404_v12  ;;  %1234 = vmatprep.mubr.f32.mxu0 %v4496_v1  ;;  %4408 = vmatprep.mubr.f32.mxu1 %v5112_v23 }
 0x127   : > { %v5409_v18 = vpop.f32.mrf.mxu0  ;;  %v5411_v19 = vpop.f32.mrf.mxu1 }
 0x128   : > { %7815 = vst [vmem:[#allocation51_spill] sm:$0xff] %v5409_v18  ;;  %7816 = vst [vmem:[#allocation52_spill] sm:$0xff] %v5411_v19 }
 0x129   : > { %v5414_v43 = vpop.f32.mrf.mxu0  ;;  %v5416_v16 = vpop.f32.mrf.mxu1  ;;  %1235 = vmatmul.mubr.f32.gmra.mxu0 %v5119_v24  ;;  %4409 = vmatmul.mubr.f32.gmra.mxu1 %v5119_v24 }
 0x12a   : > { %7817 = vst [vmem:[#allocation53_spill] sm:$0xff] %v5414_v43  ;;  %7818 = vst [vmem:[#allocation54_spill] sm:$0xff] %v5416_v16 }
 0x12b   : > { %v5420_v20 = vpop.f32.mrf.mxu0  ;;  %v5422_v12 = vpop.f32.mrf.mxu1 }
 0x12c   : > { %7819 = vst [vmem:[#allocation55_spill] sm:$0xff] %v5420_v20  ;;  %7820 = vst [vmem:[#allocation56_spill] sm:$0xff] %v5422_v12 }
 0x12d   : > { %v5424_v22 = vpop.f32.mrf.mxu0  ;;  %v5426_v1 = vpop.f32.mrf.mxu1 }
 0x12e   : > { %7821 = vst [vmem:[#allocation57_spill] sm:$0xff] %v5424_v22  ;;  %7822 = vst [vmem:[#allocation58_spill] sm:$0xff] %v5426_v1 }
 0x12f   : > { %v5428_v44 = vpop.f32.mrf.mxu0  ;;  %v5430_v19 = vpop.f32.mrf.mxu1 }
 0x130   : > { %7823 = vst [vmem:[#allocation59_spill] sm:$0xff] %v5428_v44  ;;  %7824 = vst [vmem:[#allocation60_spill] sm:$0xff] %v5430_v19 }
 0x131   : > { %v5432_v23 = vpop.f32.mrf.mxu0  ;;  %v5434_v43 = vpop.f32.mrf.mxu1 }
 0x132   : > { %7825 = vst [vmem:[#allocation61_spill] sm:$0xff] %v5432_v23  ;;  %7826 = vst [vmem:[#allocation62_spill] sm:$0xff] %v5434_v43 }
 0x133   : > { %v5436_v16 = vpop.f32.mrf.mxu0  ;;  %v5438_v18 = vpop.f32.mrf.mxu1 }
 0x134   : > { %7827 = vst [vmem:[#allocation63_spill] sm:$0xff] %v5436_v16  ;;  %7828 = vst [vmem:[#allocation64_spill] sm:$0xff] %v5438_v18 }
 0x135   : > { %v5440_v24 = vpop.f32.mrf.mxu0  ;;  %v5442_v20 = vpop.f32.mrf.mxu1 }
 0x136   : > { %7829 = vst [vmem:[#allocation65_spill] sm:$0xff] %v5440_v24  ;;  %7830 = vst [vmem:[#allocation66_spill] sm:$0xff] %v5442_v20 }
 0x137   : > { %v5444_v12 = vpop.f32.mrf.mxu0  ;;  %v5446_v22 = vpop.f32.mrf.mxu1 }
 0x138   : > { %7831 = vst [vmem:[#allocation67_spill] sm:$0xff] %v5444_v12  ;;  %7832 = vst [vmem:[#allocation68_spill] sm:$0xff] %v5446_v22 }
 0x139   : > { %v5448_v1 = vpop.f32.mrf.mxu0  ;;  %v5450_v44 = vpop.f32.mrf.mxu1 }
 0x13a   : > { %7833 = vst [vmem:[#allocation69_spill] sm:$0xff] %v5448_v1  ;;  %7834 = vst [vmem:[#allocation70_spill] sm:$0xff] %v5450_v44 }
 0x13b   : > { %v5452_v19 = vpop.f32.mrf.mxu0  ;;  %v5454_v23 = vpop.f32.mrf.mxu1 }
 0x13c   : > { %7835 = vst [vmem:[#allocation71_spill] sm:$0xff] %v5452_v19  ;;  %7836 = vst [vmem:[#allocation72_spill] sm:$0xff] %v5454_v23 }
 0x13d   : > { %v5456_v43 = vpop.f32.mrf.mxu0  ;;  %v5458_v16 = vpop.f32.mrf.mxu1 }
 0x13e   : > { %7837 = vst [vmem:[#allocation73_spill] sm:$0xff] %v5456_v43  ;;  %7838 = vst [vmem:[#allocation74_spill] sm:$0xff] %v5458_v16 }
 0x13f   : > { %v5460_v18 = vpop.f32.mrf.mxu0  ;;  %v5462_v24 = vpop.f32.mrf.mxu1 }
 0x140   : > { %7839 = vst [vmem:[#allocation75_spill] sm:$0xff] %v5460_v18  ;;  %7840 = vst [vmem:[#allocation76_spill] sm:$0xff] %v5462_v24 }
 0x141   : > { %v5464_v20 = vpop.f32.mrf.mxu0  ;;  %v5466_v12 = vpop.f32.mrf.mxu1 }
 0x142   : > { %7841 = vst [vmem:[#allocation77_spill] sm:$0xff] %v5464_v20  ;;  %7842 = vst [vmem:[#allocation78_spill] sm:$0xff] %v5466_v12 }
 0x143   : > { %v5468_v22 = vpop.f32.mrf.mxu0  ;;  %v5470_v1 = vpop.f32.mrf.mxu1 }
 0x144   : > { %7843 = vst [vmem:[#allocation79_spill] sm:$0xff] %v5468_v22  ;;  %7844 = vst [vmem:[#allocation80_spill] sm:$0xff] %v5470_v1 }
 0x145   : > { %v5472_v44 = vpop.f32.mrf.mxu0  ;;  %v5474_v19 = vpop.f32.mrf.mxu1 }
 0x146   : > { %7845 = vst [vmem:[#allocation81_spill] sm:$0xff] %v5472_v44  ;;  %7846 = vst [vmem:[#allocation82_spill] sm:$0xff] %v5474_v19 }
 0x147   : > { %v5476_v23 = vpop.f32.mrf.mxu0  ;;  %v5478_v43 = vpop.f32.mrf.mxu1 }
 0x148   : > { %7847 = vst [vmem:[#allocation83_spill] sm:$0xff] %v5476_v23  ;;  %7848 = vst [vmem:[#allocation84_spill] sm:$0xff] %v5478_v43 }
 0x149   : > { %v5480_v16 = vpop.f32.mrf.mxu0  ;;  %v5482_v18 = vpop.f32.mrf.mxu1 }
 0x14a   : > { %7849 = vst [vmem:[#allocation85_spill] sm:$0xff] %v5480_v16  ;;  %7850 = vst [vmem:[#allocation86_spill] sm:$0xff] %v5482_v18 }
 0x14b   : > { %v5484_v24 = vpop.f32.mrf.mxu0  ;;  %v5486_v20 = vpop.f32.mrf.mxu1 }
 0x14c   : > { %7851 = vst [vmem:[#allocation87_spill] sm:$0xff] %v5484_v24  ;;  %7852 = vst [vmem:[#allocation88_spill] sm:$0xff] %v5486_v20 }
 0x14d   : > { %v5488_v12 = vpop.f32.mrf.mxu0  ;;  %v5490_v22 = vpop.f32.mrf.mxu1 }
 0x14e   : > { %7853 = vst [vmem:[#allocation89_spill] sm:$0xff] %v5488_v12  ;;  %7854 = vst [vmem:[#allocation90_spill] sm:$0xff] %v5490_v22 }
 0x14f   : > { %v5492_v1 = vpop.f32.mrf.mxu0  ;;  %v5494_v44 = vpop.f32.mrf.mxu1 }
 0x150   : > { %7855 = vst [vmem:[#allocation91_spill] sm:$0xff] %v5492_v1  ;;  %7856 = vst [vmem:[#allocation92_spill] sm:$0xff] %v5494_v44 }
 0x151   : > { %v5496_v19 = vpop.f32.mrf.mxu0  ;;  %v5498_v23 = vpop.f32.mrf.mxu1 }
 0x152   : > { %7857 = vst [vmem:[#allocation93_spill] sm:$0xff] %v5496_v19  ;;  %7858 = vst [vmem:[#allocation94_spill] sm:$0xff] %v5498_v23 }
 0x153   : > { %v5500_v43 = vpop.f32.mrf.mxu0  ;;  %v5502_v16 = vpop.f32.mrf.mxu1 }
 0x154   : > { %7859 = vst [vmem:[#allocation95_spill] sm:$0xff] %v5500_v43  ;;  %7860 = vst [vmem:[#allocation96_spill] sm:$0xff] %v5502_v16 }
 0x155   : > { %v5504_v18 = vpop.f32.mrf.mxu0  ;;  %v5506_v24 = vpop.f32.mrf.mxu1 }
 0x156   : > { %7861 = vst [vmem:[#allocation97_spill] sm:$0xff] %v5504_v18  ;;  %7862 = vst [vmem:[#allocation98_spill] sm:$0xff] %v5506_v24 }
 0x157   : > { %v5508_v20 = vpop.f32.mrf.mxu0  ;;  %v5510_v12 = vpop.f32.mrf.mxu1 }
 0x158   : > { %7863 = vst [vmem:[#allocation99_spill] sm:$0xff] %v5508_v20  ;;  %7864 = vst [vmem:[#allocation100_spill] sm:$0xff] %v5510_v12  ;;  %v1740_v12 = vmul.f32 %v5242_v48, %v5242_v48 }
 0x159   : > { %v5512_v22 = vpop.f32.mrf.mxu0  ;;  %v5514_v1 = vpop.f32.mrf.mxu1 }
 0x15a   : > { %7865 = vst [vmem:[#allocation101_spill] sm:$0xff] %v5512_v22  ;;  %7866 = vst [vmem:[#allocation102_spill] sm:$0xff] %v5514_v1 }
 0x15b   : > { %v5516_v44 = vpop.f32.mrf.mxu0  ;;  %v5518_v19 = vpop.f32.mrf.mxu1 }
 0x15c   : > { %7867 = vst [vmem:[#allocation103_spill] sm:$0xff] %v5516_v44  ;;  %7868 = vst [vmem:[#allocation104_spill] sm:$0xff] %v5518_v19  ;;  %v1739_v19 = vmul.f32 %v5234_v46, %v5234_v46 }
 0x15d   : > { %v5520_v23 = vpop.f32.mrf.mxu0  ;;  %v5522_v43 = vpop.f32.mrf.mxu1 }
 0x15e   : > { %7869 = vst [vmem:[#allocation105_spill] sm:$0xff] %v5520_v23  ;;  %7870 = vst [vmem:[#allocation106_spill] sm:$0xff] %v5522_v43  ;;  %v1747_v43 = vmul.f32 %v5254_v0, %v5254_v0 }
 0x15f   : > { %v5524_v16 = vpop.f32.mrf.mxu0  ;;  %v5526_v18 = vpop.f32.mrf.mxu1 }
 0x160   : > { %7871 = vst [vmem:[#allocation107_spill] sm:$0xff] %v5524_v16  ;;  %7872 = vst [vmem:[#allocation108_spill] sm:$0xff] %v5526_v18 }
 0x161   : > { %v5528_v24 = vpop.f32.mrf.mxu0  ;;  %v5530_v20 = vpop.f32.mrf.mxu1 }
 0x162   : > { %7873 = vst [vmem:[#allocation109_spill] sm:$0xff] %v5528_v24  ;;  %7874 = vst [vmem:[#allocation110_spill] sm:$0xff] %v5530_v20  ;;  %v1963_v24 = vadd.f32 %v1740_v12, %v1739_v19  ;;  %v1746_v20 = vmul.f32 %v5246_v51, %v5246_v51  ;;  %v1748_v12 = vmul.f32 %v5248_v52, %v5248_v52 }
 0x163   : > { %v5534_v1 = vpop.f32.mrf.mxu0  ;;  %v5536_v22 = vpop.f32.mrf.mxu1  ;;  %v1761_v52 = vmul.f32 %v5277_v58, %v5277_v58  ;;  %v1768_v58 = vmul.f32 %v5289_v25, %v5289_v25 }
 0x164   : > { %7875 = vst [vmem:[#allocation111_spill] sm:$0xff] %v5534_v1  ;;  %7876 = vst [vmem:[#allocation112_spill] sm:$0xff] %v5536_v22  ;;  %v1741_v22 = vmul.f32 %v5236_v47, %v5236_v47  ;;  %v1973_v1 = vadd.f32 %v1747_v43, %v1746_v20  ;;  %v1753_v43 = vmul.f32 %v5258_v9, %v5258_v9 }
 0x165   : > { %v5542_v23 = vpop.f32.mrf.mxu0  ;;  %v5544_v18 = vpop.f32.mrf.mxu1 }
 0x166   : > { %7877 = vst [vmem:[#allocation113_spill] sm:$0xff] %v5542_v23  ;;  %7878 = vst [vmem:[#allocation114_spill] sm:$0xff] %v5544_v18  ;;  %v1964_v0 = vadd.f32 %v1963_v24, %v1741_v22  ;;  %v1754_v18 = vmul.f32 %v5265_v55, %v5265_v55  ;;  %v1974_v20 = vadd.f32 %v1973_v1, %v1748_v12 }
 0x167   : > { %v5548_v16 = vpop.f32.mrf.mxu0  ;;  %v5550_v48 = vpop.f32.mrf.mxu1 }
 0x168   : > { %7879 = vst [vmem:[#allocation115_spill] sm:$0xff] %v5548_v16  ;;  %7880 = vst [vmem:[#allocation116_spill] sm:$0xff] %v5550_v48  ;;  %v1742_v48 = vmul.f32 %v5244_v50, %v5244_v50  ;;  %v1982_v55 = vadd.f32 %v1754_v18, %v1753_v43  ;;  %v1755_v50 = vmul.f32 %v5260_v54, %v5260_v54 }
 0x169   : > { %v5554_v46 = vpop.f32.mrf.mxu0  ;;  %v5556_v44 = vpop.f32.mrf.mxu1 }
 0x16a   : > { %7881 = vst [vmem:[#allocation117_spill] sm:$0xff] %v5554_v46  ;;  %7882 = vst [vmem:[#allocation118_spill] sm:$0xff] %v5556_v44  ;;  %v1965_v24 = vadd.f32 %v1964_v0, %v1742_v48  ;;  %v1760_v48 = vmul.f32 %v5270_v17, %v5270_v17 }
 0x16b   : > { %v5562_v19 = vpop.f32.mrf.mxu0  ;;  %v5564_v51 = vpop.f32.mrf.mxu1 }
 0x16c   : > { %7883 = vst [vmem:[#allocation119_spill] sm:$0xff] %v5562_v19  ;;  %7884 = vst [vmem:[#allocation120_spill] sm:$0xff] %v5564_v51  ;;  %v1749_v51 = vmul.f32 %v5256_v5, %v5256_v5  ;;  %v1991_v46 = vadd.f32 %v1761_v52, %v1760_v48 }
 0x16d   : > { %v5570_v47 = vpop.f32.mrf.mxu0  ;;  %v5572_v22 = vpop.f32.mrf.mxu1 }
 0x16e   : > { %7885 = vst [vmem:[#allocation121_spill] sm:$0xff] %v5570_v47  ;;  %7886 = vst [vmem:[#allocation122_spill] sm:$0xff] %v5572_v22  ;;  %v1743_v44 = vmul.f32 %v5570_v47, %v5570_v47  ;;  %v1975_v43 = vadd.f32 %v1974_v20, %v1749_v51  ;;  %v1983_v47 = vadd.f32 %v1982_v55, %v1755_v50 }
 0x16f   : > { %v5582_v9 = vpop.f32.mrf.mxu0  ;;  %v5584_v1 = vpop.f32.mrf.mxu1  ;;  %v1752_v51 = vmul.f32 %v5572_v22, %v5572_v22  ;;  %v1762_v50 = vmul.f32 %v5272_v56, %v5272_v56 }
 0x170   : > { %7887 = vst [vmem:[#allocation123_spill] sm:$0xff] %v5582_v9  ;;  %7888 = vst [vmem:[#allocation124_spill] sm:$0xff] %v5584_v1  ;;  %v1966_v0 = vadd.f32 %v1965_v24, %v1743_v44  ;;  %v1744_v18 = vmul.f32 %v5582_v9, %v5582_v9  ;;  %v1745_v12 = vmul.f32 %v5584_v1, %v5584_v1 }
 0x171   : > { %v5594_v54 = vpop.f32.mrf.mxu0  ;;  %v5596_v5 = vpop.f32.mrf.mxu1  ;;  %v1756_v24 = vmul.f32 %v5267_v13, %v5267_v13  ;;  %v1767_v1 = vmul.f32 %v5282_v59, %v5282_v59  ;;  %v1992_v22 = vadd.f32 %v1991_v46, %v1762_v50  ;;  %v1763_v46 = vmul.f32 %v5279_v21, %v5279_v21 }
 0x172   : > { %7889 = vst [vmem:[#allocation125_spill] sm:$0xff] %v5594_v54  ;;  %v1750_v17 = vmul.f32 %v5594_v54, %v5594_v54  ;;  %v1967_v44 = vadd.f32 %v1966_v0, %v1744_v18  ;;  %v1969_v25 = vsel %vm1968_vm0, %v1745_v12, 0.0  ;;  %v1775_v18 = vmul.f32 %v5301_v33, %v5301_v33 }
 0x173   : > { %v5606_v20 = vpop.f32.mrf.mxu0  ;;  %v5609_v9 = vpop.f32.mrf.mxu1  ;;  %v2000_v0 = vadd.f32 %v1768_v58, %v1767_v1  ;;  %v1984_v12 = vadd.f32 %v1983_v47, %v1756_v24  ;;  %v1769_v58 = vmul.f32 %v5284_v60, %v5284_v60  ;;  %v1993_v60 = vadd.f32 %v1992_v22, %v1763_v46 }
 0x174   : > { %7890 = vst [vmem:[#allocation126_spill] sm:$0xff] %v5609_v9  ;;  %v1976_v52 = vadd.f32 %v1975_v43, %v1750_v17  ;;  %v1751_v55 = vmul.f32 %v5606_v20, %v5606_v20  ;;  %v1970_v48 = vadd.f32 %v1969_v25, %v1967_v44  ;;  %v1759_v13 = vmul.f32 %v5609_v9, %v5609_v9 }
 0x175   : > { %v5617_v59 = vpop.f32.mrf.mxu0  ;;  %v5623_v43 = vpop.f32.mrf.mxu1  ;;  %v1774_v25 = vmul.f32 %v5294_v62, %v5294_v62  ;;  %v1978_v44 = vsel %vm1968_vm0, %v1752_v51, 0.0  ;;  %v1782_v62 = vmul.f32 %v5313_v41, %v5313_v41  ;;  %v1789_v41 = vmul.f32 %v5325_v49, %v5325_v49 }
 0x176   : > { %v1757_v54 = vmul.f32 %v5617_v59, %v5617_v59  ;;  %1971 = vadd.xlane.f32.xlu0 %v1970_v48  ;;  %v1977_v17 = vadd.f32 %v1976_v52, %v1751_v55  ;;  %v2001_v52 = vadd.f32 %v2000_v0, %v1769_v58  ;;  %v1987_v33 = vsel %vm1968_vm0, %v1759_v13, 0.0 }
 0x177   : > { %v5629_v1 = vpop.f32.mrf.mxu0  ;;  %v2009_v55 = vadd.f32 %v1775_v18, %v1774_v25  ;;  %v1776_v0 = vmul.f32 %v5296_v63, %v5296_v63  ;;  %v1766_v13 = vmul.f32 %v5596_v5, %v5596_v5  ;;  %v1781_v18 = vmul.f32 %v5306_v2, %v5306_v2 }
 0x178   : > { %v1985_v47 = vadd.f32 %v1984_v12, %v1757_v54  ;;  %v1758_v24 = vmul.f32 %v5629_v1, %v5629_v1  ;;  %v1979_v50 = vadd.f32 %v1978_v44, %v1977_v17  ;;  %v5643_v54 = vpop.f32.mrf.mxu1  ;;  %v1770_v12 = vmul.f32 %v5291_v29, %v5291_v29 }
 0x179   : > { %v5636_v48 = vpop.f32.mrf.mxu0  ;;  %v2010_v46 = vadd.f32 %v2009_v55, %v1776_v0  ;;  %v1788_v55 = vmul.f32 %v5318_v26, %v5318_v26 }
 0x17a   : > { %v1764_v51 = vmul.f32 %v5636_v48, %v5636_v48  ;;  %1980 = vadd.xlane.f32.xlu0 %v1979_v50  ;;  %v1986_v9 = vadd.f32 %v1985_v47, %v1758_v24  ;;  %v2002_v44 = vadd.f32 %v2001_v52, %v1770_v12  ;;  %v1773_v24 = vmul.f32 %v5643_v54, %v5643_v54 }
 0x17b   : > { %v5651_v22 = vpop.f32.mrf.mxu0  ;;  %v2018_v50 = vadd.f32 %v1782_v62, %v1781_v18  ;;  %v1996_v62 = vsel %vm1968_vm0, %v1766_v13, 0.0  ;;  %v2027_v2 = vadd.f32 %v1789_v41, %v1788_v55  ;;  %v1803_v55 = vmul.f32 %v5349_v3, %v5349_v3 }
 0x17c   : > { %v1994_v17 = vadd.f32 %v1993_v60, %v1764_v51  ;;  %v1765_v58 = vmul.f32 %v5651_v22, %v5651_v22  ;;  %v1988_v25 = vadd.f32 %v1987_v33, %v1986_v9  ;;  %v5665_v51 = vpop.f32.mrf.mxu1  ;;  %v1777_v9 = vmul.f32 %v5303_v37, %v5303_v37 }
 0x17d   : > { %v5657_v47 = vpop.f32.mrf.mxu0  ;;  %7891 = vst [vmem:[#allocation127_spill] sm:$0xff] %v5665_v51  ;;  %v1783_v33 = vmul.f32 %v5308_v14, %v5308_v14  ;;  %v2005_v14 = vsel %vm1968_vm0, %v1773_v24, 0.0  ;;  %v1790_v24 = vmul.f32 %v5320_v27, %v5320_v27 }
 0x17e   : > { %v1771_v63 = vmul.f32 %v5657_v47, %v5657_v47  ;;  %1989 = vadd.xlane.f32.xlu1 %v1988_v25  ;;  %v1995_v60 = vadd.f32 %v1994_v17, %v1765_v58  ;;  %v2011_v17 = vadd.f32 %v2010_v46, %v1777_v9  ;;  %v1796_v58 = vmul.f32 %v5337_v57, %v5337_v57  ;;  %v5687_v26 = vpop.f32.mrf.mxu1 }
 0x17f   : > { %v5671_v52 = vpop.f32.mrf.mxu0  ;;  %v1780_v25 = vmul.f32 %v5623_v43, %v5623_v43  ;;  %v2019_v13 = vadd.f32 %v2018_v50, %v1783_v33  ;;  %7892 = vst [vmem:[#allocation128_spill] sm:$0xff] %v5687_v26  ;;  %v1784_v46 = vmul.f32 %v5315_v45, %v5315_v45 }
 0x180   : > { %v2003_v12 = vadd.f32 %v2002_v44, %v1771_v63  ;;  %v1772_v0 = vmul.f32 %v5671_v52, %v5671_v52  ;;  %v1997_v18 = vadd.f32 %v1996_v62, %v1995_v60  ;;  %v1795_v60 = vmul.f32 %v5330_v28, %v5330_v28  ;;  %v5708_v27 = vpop.f32.mrf.mxu1 }
 0x181   : > { %v5682_v49 = vpop.f32.mrf.mxu0  ;;  %v2020_v57 = vadd.f32 %v2019_v13, %v1784_v46  ;;  %v2028_v28 = vadd.f32 %v2027_v2, %v1790_v24 }
 0x182   : > { %v1778_v63 = vmul.f32 %v5682_v49, %v5682_v49  ;;  %1998 = vadd.xlane.f32.xlu1 %v1997_v18  ;;  %v2004_v44 = vadd.f32 %v2003_v12, %v1772_v0  ;;  %v2036_v62 = vadd.f32 %v1796_v58, %v1795_v60  ;;  %v1787_v0 = vmul.f32 %v5687_v26, %v5687_v26 }
 0x183   : > { %v5693_v9 = vpop.f32.mrf.mxu0  ;;  %v2014_v18 = vsel %vm1968_vm0, %v1780_v25, 0.0  ;;  %v1802_v58 = vmul.f32 %v5342_v31, %v5342_v31  ;;  %v1791_v25 = vmul.f32 %v5327_v53, %v5327_v53  ;;  %v1810_v26 = vmul.f32 %v5361_v6, %v5361_v6  ;;  %v5729_v53 = vpop.f32.mrf.mxu1 }
 0x184   : > { %v2012_v50 = vadd.f32 %v2011_v17, %v1778_v63  ;;  %v1779_v41 = vmul.f32 %v5693_v9, %v5693_v9  ;;  %v2006_v33 = vadd.f32 %v2005_v14, %v2004_v44  ;;  %v1797_v14 = vmul.f32 %v5332_v30, %v5332_v30  ;;  %7894 = vst [vmem:[#allocation130_spill] sm:$0xff] %v5729_v53 }
 0x185   : > { %v5701_v12 = vpop.f32.mrf.mxu0  ;;  %v2045_v24 = vadd.f32 %v1803_v55, %v1802_v58  ;;  %v2029_v30 = vadd.f32 %v2028_v28, %v1791_v25  ;;  %v1804_v55 = vmul.f32 %v5344_v32, %v5344_v32  ;;  %v1809_v28 = vmul.f32 %v5354_v34, %v5354_v34  ;;  %v5750_v34 = vpop.f32.mrf.mxu1 }
 0x186   : > { %v1785_v17 = vmul.f32 %v5701_v12, %v5701_v12  ;;  %2007 = vadd.xlane.f32.xlu0 %v2006_v33  ;;  %v2013_v63 = vadd.f32 %v2012_v50, %v1779_v41  ;;  %v2037_v60 = vadd.f32 %v2036_v62, %v1797_v14  ;;  %v1794_v50 = vmul.f32 %v5665_v51, %v5665_v51  ;;  %v3374_v51 = vld [vmem:[%s6466_s14 + $0x10] sm:$0xff] }
 0x187   : > { %v5714_v44 = vpop.f32.mrf.mxu0  ;;  %v2023_v33 = vsel %vm1968_vm0, %v1787_v0, 0.0  ;;  %v1798_v62 = vmul.f32 %v5339_v61, %v5339_v61  ;;  %v2046_v25 = vadd.f32 %v2045_v24, %v1804_v55  ;;  %v2054_v6 = vadd.f32 %v1810_v26, %v1809_v28  ;;  %7897 = vst [vmem:[#allocation133_spill] sm:$0xff] %v5750_v34 }
 0x188   : > { %v2021_v13 = vadd.f32 %v2020_v57, %v1785_v17  ;;  %v1786_v2 = vmul.f32 %v5714_v44, %v5714_v44  ;;  %v2015_v46 = vadd.f32 %v2014_v18, %v2013_v63  ;;  %v1817_v61 = vmul.f32 %v5373_v8, %v5373_v8 }
 0x189   : > { %v5722_v41 = vpop.f32.mrf.mxu0  ;;  %v2038_v58 = vadd.f32 %v2037_v60, %v1798_v62  ;;  %v1805_v60 = vmul.f32 %v5351_v4, %v5351_v4  ;;  %v1811_v24 = vmul.f32 %v5356_v35, %v5356_v35  ;;  %v1816_v26 = vmul.f32 %v5366_v36, %v5366_v36  ;;  %v2389_v36 = vld [vmem:[%s6250_s22 + $0x48] sm:$0xff] }
 0x18a   : > { %7893 = vst [vmem:[#allocation129_spill] sm:$0xff] %v5722_v41  ;;  %v1792_v57 = vmul.f32 %v5722_v41, %v5722_v41  ;;  %2016 = vadd.xlane.f32.xlu1 %v2015_v46  ;;  %v2022_v17 = vadd.f32 %v2021_v13, %v1786_v2  ;;  %v1801_v2 = vmul.f32 %v5729_v53, %v5729_v53  ;;  %v2032_v46 = vsel %vm1968_vm0, %v1794_v50, 0.0 }
 0x18b   : > { %v5735_v18 = vpop.f32.mrf.mxu0  ;;  %v2047_v55 = vadd.f32 %v2046_v25, %v1805_v60  ;;  %v1824_v28 = vmul.f32 %v5385_v11, %v5385_v11  ;;  %v2055_v35 = vadd.f32 %v2054_v6, %v1811_v24  ;;  %v2063_v53 = vadd.f32 %v1817_v61, %v1816_v26 }
 0x18c   : > { %7895 = vst [vmem:[#allocation131_spill] sm:$0xff] %v5735_v18  ;;  %v2030_v0 = vadd.f32 %v2029_v30, %v1792_v57  ;;  %v1793_v63 = vmul.f32 %v5735_v18, %v5735_v18  ;;  %v2024_v14 = vadd.f32 %v2023_v33, %v2022_v17  ;;  %v1812_v25 = vmul.f32 %v5363_v7, %v5363_v7 }
 0x18d   : > { %v5741_v13 = vpop.f32.mrf.mxu0  ;;  %v1831_v26 = vmul.f32 %v5397_v15, %v5397_v15 }
 0x18e   : > { %7896 = vst [vmem:[#allocation132_spill] sm:$0xff] %v5741_v13  ;;  %v1799_v30 = vmul.f32 %v5741_v13, %v5741_v13  ;;  %2025 = vadd.xlane.f32.xlu0 %v2024_v14  ;;  %v2031_v57 = vadd.f32 %v2030_v0, %v1793_v63  ;;  %v1808_v0 = vmul.f32 %v5708_v27, %v5708_v27  ;;  %v2041_v14 = vsel %vm1968_vm0, %v1801_v2, 0.0 }
 0x18f   : > { %v5756_v33 = vpop.f32.mrf.mxu0  ;;  %v1818_v2 = vmul.f32 %v5368_v38, %v5368_v38  ;;  %v2056_v11 = vadd.f32 %v2055_v35, %v1812_v25  ;;  %v2387_v38 = vld [vmem:[%s6250_s22 + $0x38] sm:$0xff] }
 0x190   : > { %7898 = vst [vmem:[#allocation134_spill] sm:$0xff] %v5756_v33  ;;  %v2039_v50 = vadd.f32 %v2038_v58, %v1799_v30  ;;  %v1800_v17 = vmul.f32 %v5756_v33, %v5756_v33  ;;  %v2033_v62 = vadd.f32 %v2032_v46, %v2031_v57  ;;  %v5771_v33 = vpop.f32.mrf.mxu1  ;;  %v1823_v46 = vmul.f32 %v5378_v39, %v5378_v39 }
 0x191   : > { %v5766_v63 = vpop.f32.mrf.mxu0  ;;  %7899 = vst [vmem:[#allocation135_spill] sm:$0xff] %v5771_v33  ;;  %v2064_v39 = vadd.f32 %v2063_v53, %v1818_v2 }
 0x192   : > { %v1806_v58 = vmul.f32 %v5766_v63, %v5766_v63  ;;  %2034 = vadd.xlane.f32.xlu1 %v2033_v62  ;;  %v2040_v30 = vadd.f32 %v2039_v50, %v1800_v17  ;;  %v2072_v24 = vadd.f32 %v1824_v28, %v1823_v46  ;;  %v1815_v17 = vmul.f32 %v5771_v33, %v5771_v33  ;;  %v5792_v7 = vpop.f32.mrf.mxu1 }
 0x193   : > { %v5777_v57 = vpop.f32.mrf.mxu0  ;;  %v2050_v62 = vsel %vm1968_vm0, %v1808_v0, 0.0  ;;  %7901 = vst [vmem:[#allocation137_spill] sm:$0xff] %v5792_v7  ;;  %v1825_v28 = vmul.f32 %v5380_v40, %v5380_v40  ;;  %v1819_v0 = vmul.f32 %v5375_v10, %v5375_v10  ;;  %v4497_v46 = vmov 0   ;;  %v2383_v10 = vld [vmem:[%s6250_s22 + $0x18] sm:$0xff] }
 0x194   : > { %v2048_v6 = vadd.f32 %v2047_v55, %v1806_v58  ;;  %v1807_v61 = vmul.f32 %v5777_v57, %v5777_v57  ;;  %v2042_v60 = vadd.f32 %v2041_v14, %v2040_v30  ;;  %v1830_v14 = vmul.f32 %v5390_v42, %v5390_v42  ;;  %4422 = vset.pattern.permute.xlu0 %v4497_v46  ;;  %v7911_v42 = vld [vmem:[#allocation55_spill] sm:$0xff] }
 0x195   : > { %v5785_v50 = vpop.f32.mrf.mxu0  ;;  %v2073_v2 = vadd.f32 %v2072_v24, %v1825_v28  ;;  %v2059_v40 = vsel %vm1968_vm0, %v1815_v17, 0.0  ;;  %4423 = vset.pattern.permute.xlu1 %v4497_v46  ;;  %v2065_v33 = vadd.f32 %v2064_v39, %v1819_v0  ;;  %v7906_v24 = vld [vmem:[#allocation44_spill] sm:$0xff]  ;;  %v7907_v28 = vld [vmem:[#allocation46_spill] sm:$0xff]  ;;  %v7909_v17 = vld [vmem:[#allocation49_spill] sm:$0xff]  ;;  %v1845_v13 = vmul.f32 %v7911_v42, %v7911_v42 }
 0x196   : > { %7900 = vst [vmem:[#allocation136_spill] sm:$0xff] %v5785_v50  ;;  %v1813_v55 = vmul.f32 %v5785_v50, %v5785_v50  ;;  %2043 = vadd.xlane.f32.xlu0 %v2042_v60  ;;  %v2049_v58 = vadd.f32 %v2048_v6, %v1807_v61  ;;  %v2081_v6 = vadd.f32 %v1831_v26, %v1830_v14  ;;  %v7904_v50 = vld [vmem:[#allocation51_spill] sm:$0xff] }
 0x197   : > { %v5798_v30 = vpop.f32.mrf.mxu0  ;;  %v1822_v61 = vmul.f32 %v5750_v34, %v5750_v34  ;;  %v1826_v26 = vmul.f32 %v7906_v24, %v7906_v24  ;;  %v1832_v14 = vmul.f32 %v7907_v28, %v7907_v28  ;;  %v1837_v39 = vmul.f32 %v7909_v17, %v7909_v17 }
 0x198   : > { %7902 = vst [vmem:[#allocation138_spill] sm:$0xff] %v5798_v30  ;;  %v2057_v35 = vadd.f32 %v2056_v11, %v1813_v55  ;;  %v1814_v53 = vmul.f32 %v5798_v30, %v5798_v30  ;;  %v2051_v25 = vadd.f32 %v2050_v62, %v2049_v58  ;;  %v1838_v11 = vmul.f32 %v7904_v50, %v7904_v50  ;;  %v5813_v58 = vpop.f32.mrf.mxu1 }
 0x199   : > { %v5806_v60 = vpop.f32.mrf.mxu0  ;;  %7905 = vst [vmem:[#allocation140_spill] sm:$0xff] %v5813_v58  ;;  %v1829_v24 = vmul.f32 %v5813_v58, %v5813_v58  ;;  %v2068_v15 = vsel %vm1968_vm0, %v1822_v61, 0.0  ;;  %v7916_v61 = vld [vmem:[#allocation53_spill] sm:$0xff] }
 0x19a   : > { %7903 = vst [vmem:[#allocation139_spill] sm:$0xff] %v5806_v60  ;;  %v1820_v55 = vmul.f32 %v5806_v60, %v5806_v60  ;;  %2052 = vadd.xlane.f32.xlu1 %v2051_v25  ;;  %v2058_v62 = vadd.f32 %v2057_v35, %v1814_v53  ;;  %v2074_v25 = vadd.f32 %v2073_v2, %v1826_v26  ;;  %v5834_v17 = vpop.f32.mrf.mxu1  ;;  %v2382_v60 = vld [vmem:[%s6250_s22 + $0x10] sm:$0xff] }
 0x19b   : > { %v5819_v30 = vpop.f32.mrf.mxu0  ;;  %v2082_v35 = vadd.f32 %v2081_v6, %v1832_v14  ;;  %v2090_v28 = vadd.f32 %v1838_v11, %v1837_v39  ;;  %7912 = vst [vmem:[#allocation143_spill] sm:$0xff] %v5834_v17  ;;  %v7914_v6 = vld [vmem:[#allocation50_spill] sm:$0xff]  ;;  %v1844_v11 = vmul.f32 %v7916_v61, %v7916_v61 }
 0x19c   : > { %7908 = vst [vmem:[#allocation141_spill] sm:$0xff] %v5819_v30  ;;  %v2066_v0 = vadd.f32 %v2065_v33, %v1820_v55  ;;  %v1821_v46 = vmul.f32 %v5819_v30, %v5819_v30  ;;  %v2060_v50 = vadd.f32 %v2059_v40, %v2058_v62  ;;  %v7913_v40 = vld [vmem:[#allocation48_spill] sm:$0xff]  ;;  %v1839_v62 = vmul.f32 %v7914_v6, %v7914_v6  ;;  %v7923_v61 = vld [vmem:[#allocation54_spill] sm:$0xff] }
 0x19d   : > { %v5825_v53 = vpop.f32.mrf.mxu0  ;;  %v1833_v2 = vmul.f32 %v7913_v40, %v7913_v40  ;;  %v2077_v6 = vsel %vm1968_vm0, %v1829_v24, 0.0  ;;  %v2099_v34 = vadd.f32 %v1845_v13, %v1844_v11  ;;  %v1846_v24 = vmul.f32 %v7923_v61, %v7923_v61  ;;  %v7924_v11 = vld [vmem:[#allocation63_spill] sm:$0xff] }
 0x19e   : > { %7910 = vst [vmem:[#allocation142_spill] sm:$0xff] %v5825_v53  ;;  %v1827_v33 = vmul.f32 %v5825_v53, %v5825_v53  ;;  %2061 = vadd.xlane.f32.xlu0 %v2060_v50  ;;  %v2067_v55 = vadd.f32 %v2066_v0, %v1821_v46  ;;  %v7917_v0 = vld [vmem:[#allocation59_spill] sm:$0xff]  ;;  %v1836_v53 = vmul.f32 %v5792_v7, %v5792_v7 }
 0x19f   : > { %v5840_v26 = vpop.f32.mrf.mxu0  ;;  %v2083_v50 = vadd.f32 %v2082_v35, %v1833_v2  ;;  %v1852_v46 = vmul.f32 %v7917_v0, %v7917_v0  ;;  %v2091_v40 = vadd.f32 %v2090_v28, %v1839_v62 }
 0x1a0   : > { %7915 = vst [vmem:[#allocation144_spill] sm:$0xff] %v5840_v26  ;;  %v2075_v14 = vadd.f32 %v2074_v25, %v1827_v33  ;;  %v1828_v39 = vmul.f32 %v5840_v26, %v5840_v26  ;;  %v2069_v58 = vadd.f32 %v2068_v15, %v2067_v55  ;;  %v5855_v26 = vpop.f32.mrf.mxu1  ;;  %v7920_v15 = vld [vmem:[#allocation52_spill] sm:$0xff]  ;;  %v7921_v55 = vld [vmem:[#allocation57_spill] sm:$0xff] }
 0x1a1   : > { %v5850_v42 = vpop.f32.mrf.mxu0  ;;  %7919 = vst [vmem:[#allocation146_spill] sm:$0xff] %v5855_v26  ;;  %v1840_v35 = vmul.f32 %v7920_v15, %v7920_v15  ;;  %v1851_v2 = vmul.f32 %v7921_v55, %v7921_v55  ;;  %v1843_v15 = vmul.f32 %v5855_v26, %v5855_v26  ;;  %v2086_v55 = vsel %vm1968_vm0, %v1836_v53, 0.0  ;;  %v7930_v26 = vld [vmem:[#allocation56_spill] sm:$0xff] }
 0x1a2   : > { %7918 = vst [vmem:[#allocation145_spill] sm:$0xff] %v5850_v42  ;;  %v1834_v25 = vmul.f32 %v5850_v42, %v5850_v42  ;;  %2070 = vadd.xlane.f32.xlu1 %v2069_v58  ;;  %v2076_v33 = vadd.f32 %v2075_v14, %v1828_v39  ;;  %v1859_v14 = vmul.f32 %v7924_v11, %v7924_v11  ;;  %v5876_v61 = vpop.f32.mrf.mxu1 }
 0x1a3   : > { %v5861_v0 = vpop.f32.mrf.mxu0  ;;  %v2108_v58 = vadd.f32 %v1852_v46, %v1851_v2  ;;  %v2092_v7 = vadd.f32 %v2091_v40, %v1840_v35  ;;  %v2100_v42 = vadd.f32 %v2099_v34, %v1846_v24  ;;  %7926 = vst [vmem:[#allocation149_spill] sm:$0xff] %v5876_v61  ;;  %v1847_v53 = vmul.f32 %v7930_v26, %v7930_v26 }
 0x1a4   : > { %7922 = vst [vmem:[#allocation147_spill] sm:$0xff] %v5861_v0  ;;  %v2084_v28 = vadd.f32 %v2083_v50, %v1834_v25  ;;  %v1835_v13 = vmul.f32 %v5861_v0, %v5861_v0  ;;  %v2078_v62 = vadd.f32 %v2077_v6, %v2076_v33  ;;  %v7927_v6 = vld [vmem:[#allocation58_spill] sm:$0xff]  ;;  %v7928_v33 = vld [vmem:[#allocation61_spill] sm:$0xff] }
 0x1a5   : > { %v5869_v39 = vpop.f32.mrf.mxu0  ;;  %v1853_v46 = vmul.f32 %v7927_v6, %v7927_v6  ;;  %v1858_v2 = vmul.f32 %v7928_v33, %v7928_v33  ;;  %v2095_v6 = vsel %vm1968_vm0, %v1843_v15, 0.0  ;;  %v7932_v33 = vld [vmem:[#allocation67_spill] sm:$0xff]  ;;  %v7937_v15 = vld [vmem:[#allocation65_spill] sm:$0xff] }
 0x1a6   : > { %7925 = vst [vmem:[#allocation148_spill] sm:$0xff] %v5869_v39  ;;  %v1841_v50 = vmul.f32 %v5869_v39, %v5869_v39  ;;  %2079 = vadd.xlane.f32.xlu0 %v2078_v62  ;;  %v2085_v25 = vadd.f32 %v2084_v28, %v1835_v13  ;;  %v1850_v13 = vmul.f32 %v5834_v17, %v5834_v17 }
 0x1a7   : > { %v5882_v11 = vpop.f32.mrf.mxu0  ;;  %v2109_v24 = vadd.f32 %v2108_v58, %v1853_v46  ;;  %v2117_v28 = vadd.f32 %v1859_v14, %v1858_v2  ;;  %v2101_v39 = vadd.f32 %v2100_v42, %v1847_v53  ;;  %v1866_v0 = vmul.f32 %v7932_v33, %v7932_v33  ;;  %v7935_v14 = vld [vmem:[#allocation62_spill] sm:$0xff] }
 0x1a8   : > { %7929 = vst [vmem:[#allocation150_spill] sm:$0xff] %v5882_v11  ;;  %v2093_v40 = vadd.f32 %v2092_v7, %v1841_v50  ;;  %v1842_v34 = vmul.f32 %v5882_v11, %v5882_v11  ;;  %v2087_v35 = vadd.f32 %v2086_v55, %v2085_v25  ;;  %v5897_v11 = vpop.f32.mrf.mxu1  ;;  %v7934_v55 = vld [vmem:[#allocation60_spill] sm:$0xff]  ;;  %v1860_v25 = vmul.f32 %v7935_v14, %v7935_v14 }
 0x1a9   : > { %v5890_v62 = vpop.f32.mrf.mxu0  ;;  %7933 = vst [vmem:[#allocation152_spill] sm:$0xff] %v5897_v11  ;;  %v1854_v58 = vmul.f32 %v7934_v55, %v7934_v55  ;;  %v1865_v42 = vmul.f32 %v7937_v15, %v7937_v15  ;;  %v1857_v55 = vmul.f32 %v5897_v11, %v5897_v11  ;;  %v2104_v17 = vsel %vm1968_vm0, %v1850_v13, 0.0  ;;  %v7944_v13 = vld [vmem:[#allocation69_spill] sm:$0xff] }
 0x1aa   : > { %7931 = vst [vmem:[#allocation151_spill] sm:$0xff] %v5890_v62  ;;  %v1848_v7 = vmul.f32 %v5890_v62, %v5890_v62  ;;  %2088 = vadd.xlane.f32.xlu1 %v2087_v35  ;;  %v2094_v50 = vadd.f32 %v2093_v40, %v1842_v34  ;;  %v2118_v40 = vadd.f32 %v2117_v28, %v1860_v25  ;;  %v7939_v62 = vld [vmem:[#allocation71_spill] sm:$0xff]  ;;  %v5918_v15 = vpop.f32.mrf.mxu1  ;;  %v7942_v28 = vld [vmem:[#allocation66_spill] sm:$0xff] }
 0x1ab   : > { %v5903_v46 = vpop.f32.mrf.mxu0  ;;  %v2110_v35 = vadd.f32 %v2109_v24, %v1854_v58  ;;  %v2126_v14 = vadd.f32 %v1866_v0, %v1865_v42  ;;  %v1873_v26 = vmul.f32 %v7939_v62, %v7939_v62  ;;  %7940 = vst [vmem:[#allocation155_spill] sm:$0xff] %v5918_v15  ;;  %v1872_v0 = vmul.f32 %v7944_v13, %v7944_v13  ;;  %v7951_v13 = vld [vmem:[#allocation70_spill] sm:$0xff] }
 0x1ac   : > { %7936 = vst [vmem:[#allocation153_spill] sm:$0xff] %v5903_v46  ;;  %v2102_v2 = vadd.f32 %v2101_v39, %v1848_v7  ;;  %v1849_v53 = vmul.f32 %v5903_v46, %v5903_v46  ;;  %v2096_v33 = vadd.f32 %v2095_v6, %v2094_v50  ;;  %v7941_v6 = vld [vmem:[#allocation64_spill] sm:$0xff]  ;;  %v1867_v50 = vmul.f32 %v7942_v28, %v7942_v28 }
 0x1ad   : > { %v5909_v34 = vpop.f32.mrf.mxu0  ;;  %v1861_v24 = vmul.f32 %v7941_v6, %v7941_v6  ;;  %v2113_v28 = vsel %vm1968_vm0, %v1857_v55, 0.0  ;;  %v2135_v46 = vadd.f32 %v1873_v26, %v1872_v0  ;;  %v1874_v55 = vmul.f32 %v7951_v13, %v7951_v13  ;;  %v7952_v0 = vld [vmem:[#allocation79_spill] sm:$0xff] }
 0x1ae   : > { %7938 = vst [vmem:[#allocation154_spill] sm:$0xff] %v5909_v34  ;;  %v1855_v39 = vmul.f32 %v5909_v34, %v5909_v34  ;;  %2097 = vadd.xlane.f32.xlu0 %v2096_v33  ;;  %v2103_v7 = vadd.f32 %v2102_v2, %v1849_v53  ;;  %v7945_v2 = vld [vmem:[#allocation75_spill] sm:$0xff]  ;;  %v1864_v34 = vmul.f32 %v5876_v61, %v5876_v61 }
 0x1af   : > { %v5924_v58 = vpop.f32.mrf.mxu0  ;;  %v2119_v33 = vadd.f32 %v2118_v40, %v1861_v24  ;;  %v1880_v53 = vmul.f32 %v7945_v2, %v7945_v2  ;;  %v2127_v6 = vadd.f32 %v2126_v14, %v1867_v50 }
 0x1b0   : > { %7943 = vst [vmem:[#allocation156_spill] sm:$0xff] %v5924_v58  ;;  %v2111_v25 = vadd.f32 %v2110_v35, %v1855_v39  ;;  %v1856_v42 = vmul.f32 %v5924_v58, %v5924_v58  ;;  %v2105_v11 = vadd.f32 %v2104_v17, %v2103_v7  ;;  %v5939_v58 = vpop.f32.mrf.mxu1  ;;  %v7948_v17 = vld [vmem:[#allocation68_spill] sm:$0xff]  ;;  %v7949_v7 = vld [vmem:[#allocation73_spill] sm:$0xff] }
 0x1b1   : > { %v5934_v62 = vpop.f32.mrf.mxu0  ;;  %7947 = vst [vmem:[#allocation158_spill] sm:$0xff] %v5939_v58  ;;  %v1868_v40 = vmul.f32 %v7948_v17, %v7948_v17  ;;  %v1879_v24 = vmul.f32 %v7949_v7, %v7949_v7  ;;  %v1871_v17 = vmul.f32 %v5939_v58, %v5939_v58  ;;  %v2122_v7 = vsel %vm1968_vm0, %v1864_v34, 0.0  ;;  %v7958_v58 = vld [vmem:[#allocation72_spill] sm:$0xff] }
 0x1b2   : > { %7946 = vst [vmem:[#allocation157_spill] sm:$0xff] %v5934_v62  ;;  %v1862_v35 = vmul.f32 %v5934_v62, %v5934_v62  ;;  %2106 = vadd.xlane.f32.xlu1 %v2105_v11  ;;  %v2112_v39 = vadd.f32 %v2111_v25, %v1856_v42  ;;  %v1887_v25 = vmul.f32 %v7952_v0, %v7952_v0  ;;  %v5960_v13 = vpop.f32.mrf.mxu1 }
 0x1b3   : > { %v5945_v2 = vpop.f32.mrf.mxu0  ;;  %v2144_v11 = vadd.f32 %v1880_v53, %v1879_v24  ;;  %v2128_v61 = vadd.f32 %v2127_v6, %v1868_v40  ;;  %v2136_v62 = vadd.f32 %v2135_v46, %v1874_v55  ;;  %7954 = vst [vmem:[#allocation161_spill] sm:$0xff] %v5960_v13  ;;  %v1875_v34 = vmul.f32 %v7958_v58, %v7958_v58 }
 0x1b4   : > { %7950 = vst [vmem:[#allocation159_spill] sm:$0xff] %v5945_v2  ;;  %v2120_v14 = vadd.f32 %v2119_v33, %v1862_v35  ;;  %v1863_v26 = vmul.f32 %v5945_v2, %v5945_v2  ;;  %v2114_v50 = vadd.f32 %v2113_v28, %v2112_v39  ;;  %v7955_v28 = vld [vmem:[#allocation74_spill] sm:$0xff]  ;;  %v7956_v39 = vld [vmem:[#allocation77_spill] sm:$0xff] }
 0x1b5   : > { %v5953_v42 = vpop.f32.mrf.mxu0  ;;  %v1881_v53 = vmul.f32 %v7955_v28, %v7955_v28  ;;  %v1886_v24 = vmul.f32 %v7956_v39, %v7956_v39  ;;  %v2131_v28 = vsel %vm1968_vm0, %v1871_v17, 0.0  ;;  %v7960_v39 = vld [vmem:[#allocation83_spill] sm:$0xff]  ;;  %v7965_v17 = vld [vmem:[#allocation81_spill] sm:$0xff] }
 0x1b6   : > { %7953 = vst [vmem:[#allocation160_spill] sm:$0xff] %v5953_v42  ;;  %v1869_v33 = vmul.f32 %v5953_v42, %v5953_v42  ;;  %2115 = vadd.xlane.f32.xlu0 %v2114_v50  ;;  %v2121_v35 = vadd.f32 %v2120_v14, %v1863_v26  ;;  %v1878_v26 = vmul.f32 %v5918_v15, %v5918_v15 }
 0x1b7   : > { %v5966_v0 = vpop.f32.mrf.mxu0  ;;  %v2145_v55 = vadd.f32 %v2144_v11, %v1881_v53  ;;  %v2153_v14 = vadd.f32 %v1887_v25, %v1886_v24  ;;  %v2137_v42 = vadd.f32 %v2136_v62, %v1875_v34  ;;  %v1894_v2 = vmul.f32 %v7960_v39, %v7960_v39  ;;  %v7963_v25 = vld [vmem:[#allocation78_spill] sm:$0xff] }
 0x1b8   : > { %7957 = vst [vmem:[#allocation162_spill] sm:$0xff] %v5966_v0  ;;  %v2129_v6 = vadd.f32 %v2128_v61, %v1869_v33  ;;  %v1870_v46 = vmul.f32 %v5966_v0, %v5966_v0  ;;  %v2123_v40 = vadd.f32 %v2122_v7, %v2121_v35  ;;  %v5981_v0 = vpop.f32.mrf.mxu1  ;;  %v7962_v7 = vld [vmem:[#allocation76_spill] sm:$0xff]  ;;  %v1888_v35 = vmul.f32 %v7963_v25, %v7963_v25 }
 0x1b9   : > { %v5974_v50 = vpop.f32.mrf.mxu0  ;;  %7961 = vst [vmem:[#allocation164_spill] sm:$0xff] %v5981_v0  ;;  %v1882_v11 = vmul.f32 %v7962_v7, %v7962_v7  ;;  %v1893_v62 = vmul.f32 %v7965_v17, %v7965_v17  ;;  %v1885_v7 = vmul.f32 %v5981_v0, %v5981_v0  ;;  %v2140_v15 = vsel %vm1968_vm0, %v1878_v26, 0.0  ;;  %v7972_v26 = vld [vmem:[#allocation85_spill] sm:$0xff] }
 0x1ba   : > { %7959 = vst [vmem:[#allocation163_spill] sm:$0xff] %v5974_v50  ;;  %v1876_v61 = vmul.f32 %v5974_v50, %v5974_v50  ;;  %2124 = vadd.xlane.f32.xlu1 %v2123_v40  ;;  %v2130_v33 = vadd.f32 %v2129_v6, %v1870_v46  ;;  %v2154_v6 = vadd.f32 %v2153_v14, %v1888_v35  ;;  %v7967_v50 = vld [vmem:[#allocation87_spill] sm:$0xff]  ;;  %v6002_v17 = vpop.f32.mrf.mxu1  ;;  %v7970_v14 = vld [vmem:[#allocation82_spill] sm:$0xff] }
 0x1bb   : > { %v5987_v53 = vpop.f32.mrf.mxu0  ;;  %v2146_v40 = vadd.f32 %v2145_v55, %v1882_v11  ;;  %v2162_v25 = vadd.f32 %v1894_v2, %v1893_v62  ;;  %v1901_v58 = vmul.f32 %v7967_v50, %v7967_v50  ;;  %7968 = vst [vmem:[#allocation167_spill] sm:$0xff] %v6002_v17  ;;  %v1900_v2 = vmul.f32 %v7972_v26, %v7972_v26  ;;  %v7979_v26 = vld [vmem:[#allocation86_spill] sm:$0xff] }
 0x1bc   : > { %7964 = vst [vmem:[#allocation165_spill] sm:$0xff] %v5987_v53  ;;  %v2138_v24 = vadd.f32 %v2137_v42, %v1876_v61  ;;  %v1877_v34 = vmul.f32 %v5987_v53, %v5987_v53  ;;  %v2132_v39 = vadd.f32 %v2131_v28, %v2130_v33  ;;  %v7969_v28 = vld [vmem:[#allocation80_spill] sm:$0xff]  ;;  %v1895_v33 = vmul.f32 %v7970_v14, %v7970_v14 }
 0x1bd   : > { %v5993_v46 = vpop.f32.mrf.mxu0  ;;  %v1889_v55 = vmul.f32 %v7969_v28, %v7969_v28  ;;  %v2149_v14 = vsel %vm1968_vm0, %v1885_v7, 0.0  ;;  %v2171_v53 = vadd.f32 %v1901_v58, %v1900_v2  ;;  %v1902_v7 = vmul.f32 %v7979_v26, %v7979_v26  ;;  %v7980_v2 = vld [vmem:[#allocation95_spill] sm:$0xff] }
 0x1be   : > { %7966 = vst [vmem:[#allocation166_spill] sm:$0xff] %v5993_v46  ;;  %v1883_v42 = vmul.f32 %v5993_v46, %v5993_v46  ;;  %2133 = vadd.xlane.f32.xlu0 %v2132_v39  ;;  %v2139_v61 = vadd.f32 %v2138_v24, %v1877_v34  ;;  %v7973_v24 = vld [vmem:[#allocation91_spill] sm:$0xff]  ;;  %v1892_v46 = vmul.f32 %v5960_v13, %v5960_v13 }
 0x1bf   : > { %v6008_v11 = vpop.f32.mrf.mxu0  ;;  %v2155_v39 = vadd.f32 %v2154_v6, %v1889_v55  ;;  %v1908_v34 = vmul.f32 %v7973_v24, %v7973_v24  ;;  %v2163_v28 = vadd.f32 %v2162_v25, %v1895_v33 }
 0x1c0   : > { %7971 = vst [vmem:[#allocation168_spill] sm:$0xff] %v6008_v11  ;;  %v2147_v35 = vadd.f32 %v2146_v40, %v1883_v42  ;;  %v1884_v62 = vmul.f32 %v6008_v11, %v6008_v11  ;;  %v2141_v0 = vadd.f32 %v2140_v15, %v2139_v61  ;;  %v6023_v11 = vpop.f32.mrf.mxu1  ;;  %v7976_v15 = vld [vmem:[#allocation84_spill] sm:$0xff]  ;;  %v7977_v61 = vld [vmem:[#allocation89_spill] sm:$0xff] }
 0x1c1   : > { %v6018_v50 = vpop.f32.mrf.mxu0  ;;  %7975 = vst [vmem:[#allocation170_spill] sm:$0xff] %v6023_v11  ;;  %v1896_v6 = vmul.f32 %v7976_v15, %v7976_v15  ;;  %v1907_v55 = vmul.f32 %v7977_v61, %v7977_v61  ;;  %v1899_v15 = vmul.f32 %v6023_v11, %v6023_v11  ;;  %v2158_v61 = vsel %vm1968_vm0, %v1892_v46, 0.0  ;;  %v7986_v11 = vld [vmem:[#allocation88_spill] sm:$0xff] }
 0x1c2   : > { %7974 = vst [vmem:[#allocation169_spill] sm:$0xff] %v6018_v50  ;;  %v1890_v40 = vmul.f32 %v6018_v50, %v6018_v50  ;;  %2142 = vadd.xlane.f32.xlu1 %v2141_v0  ;;  %v2148_v42 = vadd.f32 %v2147_v35, %v1884_v62  ;;  %v1915_v35 = vmul.f32 %v7980_v2, %v7980_v2  ;;  %v6044_v26 = vpop.f32.mrf.mxu1 }
 0x1c3   : > { %v6029_v24 = vpop.f32.mrf.mxu0  ;;  %v2180_v0 = vadd.f32 %v1908_v34, %v1907_v55  ;;  %v2164_v13 = vadd.f32 %v2163_v28, %v1896_v6  ;;  %v2172_v50 = vadd.f32 %v2171_v53, %v1902_v7  ;;  %7982 = vst [vmem:[#allocation173_spill] sm:$0xff] %v6044_v26  ;;  %v1903_v46 = vmul.f32 %v7986_v11, %v7986_v11 }
 0x1c4   : > { %7978 = vst [vmem:[#allocation171_spill] sm:$0xff] %v6029_v24  ;;  %v2156_v25 = vadd.f32 %v2155_v39, %v1890_v40  ;;  %v1891_v58 = vmul.f32 %v6029_v24, %v6029_v24  ;;  %v2150_v33 = vadd.f32 %v2149_v14, %v2148_v42  ;;  %v7983_v14 = vld [vmem:[#allocation90_spill] sm:$0xff]  ;;  %v7984_v42 = vld [vmem:[#allocation93_spill] sm:$0xff] }
 0x1c5   : > { %v6037_v62 = vpop.f32.mrf.mxu0  ;;  %v1909_v34 = vmul.f32 %v7983_v14, %v7983_v14  ;;  %v1914_v55 = vmul.f32 %v7984_v42, %v7984_v42  ;;  %v2167_v14 = vsel %vm1968_vm0, %v1899_v15, 0.0  ;;  %v7988_v42 = vld [vmem:[#allocation99_spill] sm:$0xff]  ;;  %v7993_v15 = vld [vmem:[#allocation97_spill] sm:$0xff] }
 0x1c6   : > { %7981 = vst [vmem:[#allocation172_spill] sm:$0xff] %v6037_v62  ;;  %v1897_v39 = vmul.f32 %v6037_v62, %v6037_v62  ;;  %2151 = vadd.xlane.f32.xlu0 %v2150_v33  ;;  %v2157_v40 = vadd.f32 %v2156_v25, %v1891_v58  ;;  %v1906_v58 = vmul.f32 %v6002_v17, %v6002_v17 }
 0x1c7   : > { %v6050_v2 = vpop.f32.mrf.mxu0  ;;  %v2181_v7 = vadd.f32 %v2180_v0, %v1909_v34  ;;  %v2189_v25 = vadd.f32 %v1915_v35, %v1914_v55  ;;  %v2173_v62 = vadd.f32 %v2172_v50, %v1903_v46  ;;  %v1922_v24 = vmul.f32 %v7988_v42, %v7988_v42  ;;  %v7991_v35 = vld [vmem:[#allocation94_spill] sm:$0xff] }
 0x1c8   : > { %7985 = vst [vmem:[#allocation174_spill] sm:$0xff] %v6050_v2  ;;  %v2165_v28 = vadd.f32 %v2164_v13, %v1897_v39  ;;  %v1898_v53 = vmul.f32 %v6050_v2, %v6050_v2  ;;  %v2159_v6 = vadd.f32 %v2158_v61, %v2157_v40  ;;  %v6065_v2 = vpop.f32.mrf.mxu1  ;;  %v7990_v61 = vld [vmem:[#allocation92_spill] sm:$0xff]  ;;  %v1916_v40 = vmul.f32 %v7991_v35, %v7991_v35 }
 0x1c9   : > { %v6058_v33 = vpop.f32.mrf.mxu0  ;;  %7989 = vst [vmem:[#allocation176_spill] sm:$0xff] %v6065_v2  ;;  %v1910_v0 = vmul.f32 %v7990_v61, %v7990_v61  ;;  %v1921_v50 = vmul.f32 %v7993_v15, %v7993_v15  ;;  %v1913_v61 = vmul.f32 %v6065_v2, %v6065_v2  ;;  %v2176_v17 = vsel %vm1968_vm0, %v1906_v58, 0.0  ;;  %v8000_v58 = vld [vmem:[#allocation101_spill] sm:$0xff] }
 0x1ca   : > { %7987 = vst [vmem:[#allocation175_spill] sm:$0xff] %v6058_v33  ;;  %v1904_v13 = vmul.f32 %v6058_v33, %v6058_v33  ;;  %2160 = vadd.xlane.f32.xlu1 %v2159_v6  ;;  %v2166_v39 = vadd.f32 %v2165_v28, %v1898_v53  ;;  %v2190_v28 = vadd.f32 %v2189_v25, %v1916_v40  ;;  %v7995_v33 = vld [vmem:[#allocation103_spill] sm:$0xff]  ;;  %v6086_v15 = vpop.f32.mrf.mxu1  ;;  %v7998_v25 = vld [vmem:[#allocation98_spill] sm:$0xff] }
 0x1cb   : > { %v6071_v34 = vpop.f32.mrf.mxu0  ;;  %v2182_v6 = vadd.f32 %v2181_v7, %v1910_v0  ;;  %v2198_v35 = vadd.f32 %v1922_v24, %v1921_v50  ;;  %v1929_v11 = vmul.f32 %v7995_v33, %v7995_v33  ;;  %7996 = vst [vmem:[#allocation179_spill] sm:$0xff] %v6086_v15  ;;  %v1928_v24 = vmul.f32 %v8000_v58, %v8000_v58  ;;  %v8007_v58 = vld [vmem:[#allocation102_spill] sm:$0xff] }
 0x1cc   : > { %7992 = vst [vmem:[#allocation177_spill] sm:$0xff] %v6071_v34  ;;  %v2174_v55 = vadd.f32 %v2173_v62, %v1904_v13  ;;  %v1905_v46 = vmul.f32 %v6071_v34, %v6071_v34  ;;  %v2168_v42 = vadd.f32 %v2167_v14, %v2166_v39  ;;  %v7997_v14 = vld [vmem:[#allocation96_spill] sm:$0xff]  ;;  %v1923_v39 = vmul.f32 %v7998_v25, %v7998_v25 }
 0x1cd   : > { %v6077_v53 = vpop.f32.mrf.mxu0  ;;  %v1917_v7 = vmul.f32 %v7997_v14, %v7997_v14  ;;  %v2185_v25 = vsel %vm1968_vm0, %v1913_v61, 0.0  ;;  %v2207_v34 = vadd.f32 %v1929_v11, %v1928_v24  ;;  %v1930_v61 = vmul.f32 %v8007_v58, %v8007_v58  ;;  %v8008_v24 = vld [vmem:[#allocation111_spill] sm:$0xff] }
 0x1ce   : > { %7994 = vst [vmem:[#allocation178_spill] sm:$0xff] %v6077_v53  ;;  %v1911_v62 = vmul.f32 %v6077_v53, %v6077_v53  ;;  %2169 = vadd.xlane.f32.xlu0 %v2168_v42  ;;  %v2175_v13 = vadd.f32 %v2174_v55, %v1905_v46  ;;  %v8001_v55 = vld [vmem:[#allocation107_spill] sm:$0xff]  ;;  %v1920_v53 = vmul.f32 %v6044_v26, %v6044_v26 }
 0x1cf   : > { %v6092_v0 = vpop.f32.mrf.mxu0  ;;  %v2191_v42 = vadd.f32 %v2190_v28, %v1917_v7  ;;  %v1936_v46 = vmul.f32 %v8001_v55, %v8001_v55  ;;  %v2199_v14 = vadd.f32 %v2198_v35, %v1923_v39 }
 0x1d0   : > { %7999 = vst [vmem:[#allocation180_spill] sm:$0xff] %v6092_v0  ;;  %v2183_v40 = vadd.f32 %v2182_v6, %v1911_v62  ;;  %v1912_v50 = vmul.f32 %v6092_v0, %v6092_v0  ;;  %v2177_v2 = vadd.f32 %v2176_v17, %v2175_v13  ;;  %v6107_v0 = vpop.f32.mrf.mxu1  ;;  %v8004_v17 = vld [vmem:[#allocation100_spill] sm:$0xff]  ;;  %v8005_v13 = vld [vmem:[#allocation105_spill] sm:$0xff] }
 0x1d1   : > { %v6102_v33 = vpop.f32.mrf.mxu0  ;;  %8003 = vst [vmem:[#allocation182_spill] sm:$0xff] %v6107_v0  ;;  %v1924_v28 = vmul.f32 %v8004_v17, %v8004_v17  ;;  %v1935_v7 = vmul.f32 %v8005_v13, %v8005_v13  ;;  %v1927_v17 = vmul.f32 %v6107_v0, %v6107_v0  ;;  %v2194_v13 = vsel %vm1968_vm0, %v1920_v53, 0.0  ;;  %v8014_v0 = vld [vmem:[#allocation104_spill] sm:$0xff] }
 0x1d2   : > { %8002 = vst [vmem:[#allocation181_spill] sm:$0xff] %v6102_v33  ;;  %v1918_v6 = vmul.f32 %v6102_v33, %v6102_v33  ;;  %2178 = vadd.xlane.f32.xlu1 %v2177_v2  ;;  %v2184_v62 = vadd.f32 %v2183_v40, %v1912_v50  ;;  %v1943_v40 = vmul.f32 %v8008_v24, %v8008_v24  ;;  %v6128_v58 = vpop.f32.mrf.mxu1 }
 0x1d3   : > { %v6113_v55 = vpop.f32.mrf.mxu0  ;;  %v2216_v2 = vadd.f32 %v1936_v46, %v1935_v7  ;;  %v2200_v26 = vadd.f32 %v2199_v14, %v1924_v28  ;;  %v2208_v33 = vadd.f32 %v2207_v34, %v1930_v61  ;;  %8010 = vst [vmem:[#allocation185_spill] sm:$0xff] %v6128_v58  ;;  %v1931_v53 = vmul.f32 %v8014_v0, %v8014_v0 }
 0x1d4   : > { %8006 = vst [vmem:[#allocation183_spill] sm:$0xff] %v6113_v55  ;;  %v2192_v35 = vadd.f32 %v2191_v42, %v1918_v6  ;;  %v1919_v11 = vmul.f32 %v6113_v55, %v6113_v55  ;;  %v2186_v39 = vadd.f32 %v2185_v25, %v2184_v62  ;;  %v8011_v25 = vld [vmem:[#allocation106_spill] sm:$0xff]  ;;  %v8012_v62 = vld [vmem:[#allocation109_spill] sm:$0xff] }
 0x1d5   : > { %v6121_v50 = vpop.f32.mrf.mxu0  ;;  %v1937_v46 = vmul.f32 %v8011_v25, %v8011_v25  ;;  %v1942_v7 = vmul.f32 %v8012_v62, %v8012_v62  ;;  %v2203_v25 = vsel %vm1968_vm0, %v1927_v17, 0.0  ;;  %v1950_v62 = vmul.f32 %v5548_v16, %v5548_v16 }
 0x1d6   : > { %8009 = vst [vmem:[#allocation184_spill] sm:$0xff] %v6121_v50  ;;  %v1925_v42 = vmul.f32 %v6121_v50, %v6121_v50  ;;  %2187 = vadd.xlane.f32.xlu0 %v2186_v39  ;;  %v2193_v6 = vadd.f32 %v2192_v35, %v1919_v11  ;;  %v1934_v11 = vmul.f32 %v6086_v15, %v6086_v15 }
 0x1d7   : > { %v6134_v24 = vpop.f32.mrf.mxu0  ;;  %v2217_v61 = vadd.f32 %v2216_v2, %v1937_v46  ;;  %v2225_v35 = vadd.f32 %v1943_v40, %v1942_v7  ;;  %v2209_v50 = vadd.f32 %v2208_v33, %v1931_v53  ;;  %v8018_v40 = vld [vmem:[#allocation110_spill] sm:$0xff]  ;;  %v1949_v33 = vmul.f32 %v5542_v23, %v5542_v23 }
 0x1d8   : > { %8013 = vst [vmem:[#allocation186_spill] sm:$0xff] %v6134_v24  ;;  %v2201_v14 = vadd.f32 %v2200_v26, %v1925_v42  ;;  %v1926_v34 = vmul.f32 %v6134_v24, %v6134_v24  ;;  %v2195_v28 = vadd.f32 %v2194_v13, %v2193_v6  ;;  %v6149_v24 = vpop.f32.mrf.mxu1  ;;  %v8017_v13 = vld [vmem:[#allocation108_spill] sm:$0xff]  ;;  %v1944_v6 = vmul.f32 %v8018_v40, %v8018_v40 }
 0x1d9   : > { %v6142_v39 = vpop.f32.mrf.mxu0  ;;  %8016 = vst [vmem:[#allocation188_spill] sm:$0xff] %v6149_v24  ;;  %v1938_v2 = vmul.f32 %v8017_v13, %v8017_v13  ;;  %v1941_v16 = vmul.f32 %v6149_v24, %v6149_v24  ;;  %v2212_v13 = vsel %vm1968_vm0, %v1934_v11, 0.0  ;;  %v2234_v40 = vadd.f32 %v1950_v62, %v1949_v33  ;;  %v8025_v11 = vld [vmem:[#allocation117_spill] sm:$0xff] }
 0x1da   : > { %8015 = vst [vmem:[#allocation187_spill] sm:$0xff] %v6142_v39  ;;  %v1932_v26 = vmul.f32 %v6142_v39, %v6142_v39  ;;  %2196 = vadd.xlane.f32.xlu1 %v2195_v28  ;;  %v2202_v42 = vadd.f32 %v2201_v14, %v1926_v34  ;;  %v2226_v14 = vadd.f32 %v2225_v35, %v1944_v6  ;;  %v6170_v23 = vpop.f32.mrf.mxu1  ;;  %v8023_v35 = vld [vmem:[#allocation114_spill] sm:$0xff] }
 0x1db   : > { %v6155_v46 = vpop.f32.mrf.mxu0  ;;  %v2218_v28 = vadd.f32 %v2217_v61, %v1938_v2  ;;  %v1957_v15 = vmul.f32 %v5562_v19, %v5562_v19  ;;  %8021 = vst [vmem:[#allocation191_spill] sm:$0xff] %v6170_v23  ;;  %v1956_v62 = vmul.f32 %v8025_v11, %v8025_v11 }
 0x1dc   : > { %8019 = vst [vmem:[#allocation189_spill] sm:$0xff] %v6155_v46  ;;  %v2210_v17 = vadd.f32 %v2209_v50, %v1932_v26  ;;  %v1933_v7 = vmul.f32 %v6155_v46, %v6155_v46  ;;  %v2204_v53 = vadd.f32 %v2203_v25, %v2202_v42  ;;  %v8022_v25 = vld [vmem:[#allocation112_spill] sm:$0xff]  ;;  %v1951_v42 = vmul.f32 %v8023_v35, %v8023_v35  ;;  %v2381_v46 = vld [vmem:[%s6250_s22 + $0x8] sm:$0xff] }
 0x1dd   : > { %v6161_v34 = vpop.f32.mrf.mxu0  ;;  %v1945_v61 = vmul.f32 %v8022_v25, %v8022_v25  ;;  %v2243_v35 = vadd.f32 %v1957_v15, %v1956_v62 }
 0x1de   : > { %8020 = vst [vmem:[#allocation190_spill] sm:$0xff] %v6161_v34  ;;  %v1939_v50 = vmul.f32 %v6161_v34, %v6161_v34  ;;  %2205 = vadd.xlane.f32.xlu0 %v2204_v53  ;;  %v2211_v26 = vadd.f32 %v2210_v17, %v1933_v7  ;;  %v1948_v17 = vmul.f32 %v6128_v58, %v6128_v58  ;;  %v2221_v34 = vsel %vm1968_vm0, %v1941_v16, 0.0 }
 0x1df   : > { %v6176_v2 = vpop.f32.mrf.mxu0  ;;  %v2227_v53 = vadd.f32 %v2226_v14, %v1945_v61  ;;  %v2235_v19 = vadd.f32 %v2234_v40, %v1951_v42 }
 0x1e0   : > { %8024 = vst [vmem:[#allocation192_spill] sm:$0xff] %v6176_v2  ;;  %v2219_v6 = vadd.f32 %v2218_v28, %v1939_v50  ;;  %v1940_v33 = vmul.f32 %v6176_v2, %v6176_v2  ;;  %v2213_v24 = vadd.f32 %v2212_v13, %v2211_v26  ;;  %v6189_v28 = vpop.f32.mrf.mxu1  ;;  %v8028_v50 = vld [vmem:[#allocation116_spill] sm:$0xff]  ;;  %v8030_v26 = vld [vmem:[#allocation118_spill] sm:$0xff]  ;;  %v2230_v42 = vsel %vm1968_vm0, %v1948_v17, 0.0 }
 0x1e1   : > { %v6184_v7 = vpop.f32.mrf.mxu0  ;;  %8027 = vst [vmem:[#allocation194_spill] sm:$0xff] %v6189_v28  ;;  %v1952_v13 = vmul.f32 %v8028_v50, %v8028_v50  ;;  %v1958_v61 = vmul.f32 %v8030_v26, %v8030_v26  ;;  %v1962_v17 = vmul.f32 %v6170_v23, %v6170_v23 }
 0x1e2   : > { %8026 = vst [vmem:[#allocation193_spill] sm:$0xff] %v6184_v7  ;;  %v1946_v25 = vmul.f32 %v6184_v7, %v6184_v7  ;;  %2214 = vadd.xlane.f32.xlu1 %v2213_v24  ;;  %v2220_v11 = vadd.f32 %v2219_v6, %v1940_v33  ;;  %v1955_v24 = vmul.f32 %v6189_v28, %v6189_v28 }
 0x1e3   : > { %v6193_v14 = vpop.f32.mrf.mxu0  ;;  %v2236_v62 = vadd.f32 %v2235_v19, %v1952_v13  ;;  %v2244_v6 = vadd.f32 %v2243_v35, %v1958_v61 }
 0x1e4   : > { %8029 = vst [vmem:[#allocation195_spill] sm:$0xff] %v6193_v14  ;;  %v2228_v2 = vadd.f32 %v2227_v53, %v1946_v25  ;;  %v1947_v16 = vmul.f32 %v6193_v14, %v6193_v14  ;;  %v2222_v15 = vadd.f32 %v2221_v34, %v2220_v11  ;;  %v8033_v25 = vld [vmem:[#allocation120_spill] sm:$0xff]  ;;  %v2239_v35 = vsel %vm1968_vm0, %v1955_v24, 0.0  ;;  %v4365_v24 = vpop.f32.mrf.mxu1 }
 0x1e5   : > { %v6199_v40 = vpop.f32.mrf.mxu0  ;;  %v1959_v53 = vmul.f32 %v8033_v25, %v8033_v25 }
 0x1e6   : > { %8031 = vst [vmem:[#allocation196_spill] sm:$0xff] %v6199_v40  ;;  %v1953_v33 = vmul.f32 %v6199_v40, %v6199_v40  ;;  %2223 = vadd.xlane.f32.xlu0 %v2222_v15  ;;  %v2229_v50 = vadd.f32 %v2228_v2, %v1947_v16 }
 0x1e7   : > { %v6206_v26 = vpop.f32.mrf.mxu0  ;;  %v2245_v13 = vadd.f32 %v2244_v6, %v1959_v53  ;;  %v1548_v6 = vpop.f32.mrf.mxu1 }
 0x1e8   : > { %8032 = vst [vmem:[#allocation197_spill] sm:$0xff] %v6206_v26  ;;  %v2237_v34 = vadd.f32 %v2236_v62, %v1953_v33  ;;  %v1954_v11 = vmul.f32 %v6206_v26, %v6206_v26  ;;  %v2231_v58 = vadd.f32 %v2230_v42, %v2229_v50  ;;  %v2248_v42 = vsel %vm1968_vm0, %v1962_v17, 0.0 }
 0x1e9   : > { %v6214_v19 = vpop.f32.mrf.mxu0  ;;  %v6224_v53 = vmul.f32 0.0012755102, %v1548_v6  ;;  %v4368_v26 = vpop.f32.mrf.mxu1 }
 0x1ea   : > { %8034 = vst [vmem:[#allocation198_spill] sm:$0xff] %v6214_v19  ;;  %v1960_v2 = vmul.f32 %v6214_v19, %v6214_v19  ;;  %2232 = vadd.xlane.f32.xlu1 %v2231_v58  ;;  %v2238_v61 = vadd.f32 %v2237_v34, %v1954_v11 }
 0x1eb   : > { %v6219_v16 = vpop.f32.mrf.mxu0  ;;  %v2284_v58 = vmul.f32 %v6224_v53, %v6224_v53  ;;  %v1558_v11 = vpop.f32.mrf.mxu1 }
 0x1ec   : > { %8035 = vst [vmem:[#allocation199_spill] sm:$0xff] %v6219_v16  ;;  %v2246_v15 = vadd.f32 %v2245_v13, %v1960_v2  ;;  %v1961_v62 = vmul.f32 %v6219_v16, %v6219_v16  ;;  %v2240_v50 = vadd.f32 %v2239_v35, %v2238_v61  ;;  %v6228_v13 = vmul.f32 0.0012755102, %v4365_v24 }
 0x1ed   : > { %v6230_v61 = vmul.f32 0.0012755102, %v1558_v11  ;;  %v6236_v24 = vmul.f32 0.0012755102, %v4368_v26 }
 0x1ee   : > { %v2247_v33 = vadd.f32 %v2246_v15, %v1961_v62  ;;  %2241 = vadd.xlane.f32.xlu0 %v2240_v50  ;;  %v4371_v15 = vpop.f32.mrf.mxu1 }
 0x1ef   : > { %v2286_v6 = vmul.f32 %v6230_v61, %v6230_v61 }
 0x1f0   : > { %v2249_v28 = vadd.f32 %v2248_v42, %v2247_v33  ;;  %v1568_v23 = vpop.f32.mrf.mxu1 }
 0x1f1   : > { %v6238_v16 = vmul.f32 0.0012755102, %v1568_v23 }
 0x1f2   : > { %2250 = vadd.xlane.f32.xlu1 %v2249_v28  ;;  %v2285_v28 = vmul.f32 %v6228_v13, %v6228_v13 }
 0x1f3   : > { %v2288_v26 = vmul.f32 %v6238_v16, %v6238_v16 }
 0x1ff   : > { %v1972_v34 = vpop.xlane.xlu0 %1971 }
 0x200   : > { %v2252_v2 = vmul.f32 0.0012755102, %v1972_v34 }
 0x202   : > { %v2316_v35 = vsub.f32 %v2252_v2, %v2284_v58 }
 0x203   : > { %v1981_v17 = vpop.xlane.xlu0 %1980 }
 0x204   : > { %v2348_v62 = vmax.f32 %v2316_v35, 0.0  ;;  %v2253_v50 = vmul.f32 0.0012755102, %v1981_v17  ;;  %v2287_v35 = vmul.f32 %v6236_v24, %v6236_v24 }
 0x206   : > { %v2412_v42 = vadd.f32 1e-05, %v2348_v62  ;;  %v2317_v33 = vsub.f32 %v2253_v50, %v2285_v28  ;;  %v6242_v50 = vmul.f32 0.0012755102, %v4371_v15 }
 0x207   : > { %v1990_v40 = vpop.xlane.xlu1 %1989 }
 0x208   : > { %4424 = vrsqrt.f32 %v2412_v42  ;;  %v2349_v58 = vmax.f32 %v2317_v33, 0.0  ;;  %v2254_v34 = vmul.f32 0.0012755102, %v1990_v40  ;;  %v4374_v40 = vpop.f32.mrf.mxu1  ;;  %v2289_v23 = vmul.f32 %v6242_v50, %v6242_v50 }
 0x20a   : > { %v2413_v11 = vadd.f32 1e-05, %v2349_v58  ;;  %v2318_v2 = vsub.f32 %v2254_v34, %v2286_v6  ;;  %v1578_v34 = vpop.f32.mrf.mxu1 }
 0x20b   : > { %v1999_v19 = vpop.xlane.xlu1 %1998 }
 0x20c   : > { %4426 = vrsqrt.f32 %v2413_v11  ;;  %v2350_v17 = vmax.f32 %v2318_v2, 0.0  ;;  %v2255_v28 = vmul.f32 0.0012755102, %v1999_v19  ;;  %v2380_v2 = vld [vmem:[%s6250_s22] sm:$0xff]  ;;  %v4377_v14 = vpop.f32.mrf.mxu1 }
 0x20d   : > { %v6274_v30 = vmul.f32 0.0012755102, %v4377_v14 }
 0x20e   : > { %v2414_v62 = vadd.f32 1e-05, %v2350_v17  ;;  %v2319_v42 = vsub.f32 %v2255_v28, %v2287_v35  ;;  %v6255_v28 = vmul.f32 0.0012755102, %v4374_v40 }
 0x20f   : > { %v2008_v33 = vpop.xlane.xlu0 %2007 }
 0x210   : > { %v2351_v58 = vmax.f32 %v2319_v42, 0.0  ;;  %v2256_v6 = vmul.f32 0.0012755102, %v2008_v33  ;;  %4428 = vrsqrt.f32 %v2414_v62  ;;  %v6257_v42 = vmul.f32 0.0012755102, %v1578_v34 }
 0x211   : > { %v2291_v40 = vmul.f32 %v6255_v28, %v6255_v28 }
 0x212   : > { %v2415_v19 = vadd.f32 1e-05, %v2351_v58  ;;  %v2320_v15 = vsub.f32 %v2256_v6, %v2288_v26  ;;  %v2290_v58 = vmul.f32 %v6257_v42, %v6257_v42 }
 0x213   : > { %v2017_v11 = vpop.xlane.xlu1 %2016 }
 0x214   : > { %4430 = vrsqrt.f32 %v2415_v19  ;;  %v2257_v35 = vmul.f32 0.0012755102, %v2017_v11  ;;  %v2352_v33 = vmax.f32 %v2320_v15, 0.0 }
 0x215   : > { %v4425_v17 = vpop.eup %4424 }
 0x216   : > { %v2321_v25 = vsub.f32 %v2257_v35, %v2289_v23  ;;  %v2476_v62 = vmul.f32 %v4425_v17, %v2380_v2  ;;  %v2416_v23 = vadd.f32 1e-05, %v2352_v33  ;;  %v2509_v2 = vld [vmem:[%s6264_s11 + $0x8] sm:$0xff]  ;;  %v2508_v35 = vld [vmem:[%s6264_s11] sm:$0xff] }
 0x217   : > { %v2026_v7 = vpop.xlane.xlu0 %2025 }
 0x218   : > { %v2353_v39 = vmax.f32 %v2321_v25, 0.0  ;;  %2606 = vperm.xlu0 %4422, %v2476_v62   ;;  %v2258_v6 = vmul.f32 0.0012755102, %v2026_v7  ;;  %v1588_v25 = vpop.f32.mrf.mxu1  ;;  %v2540_v34 = vmul.f32 %v2476_v62, %v6224_v53 }
 0x219   : > { %v4427_v26 = vpop.eup %4426  ;;  %v6276_v7 = vmul.f32 0.0012755102, %v1588_v25 }
 0x21a   : > { %v2417_v19 = vadd.f32 1e-05, %v2353_v39  ;;  %v2477_v15 = vmul.f32 %v4427_v26, %v2381_v46  ;;  %v2322_v55 = vsub.f32 %v2258_v6, %v2290_v58  ;;  %v2572_v33 = vsub.f32 %v2508_v35, %v2540_v34  ;;  %v4380_v53 = vpop.f32.mrf.mxu1  ;;  %v2511_v34 = vld [vmem:[%s6264_s11 + $0x18] sm:$0xff] }
 0x21b   : > { %v2035_v11 = vpop.xlane.xlu1 %2034  ;;  %v2292_v14 = vmul.f32 %v6276_v7, %v6276_v7 }
 0x21c   : > { %4432 = vrsqrt.f32 %v2417_v19  ;;  %v2259_v17 = vmul.f32 0.0012755102, %v2035_v11  ;;  %2611 = vperm.xlu1 %4423, %v2477_v15   ;;  %v2541_v0 = vmul.f32 %v2477_v15, %v6228_v13  ;;  %v2354_v13 = vmax.f32 %v2322_v55, 0.0 }
 0x21d   : > { %4434 = vrsqrt.f32 %v2416_v23  ;;  %v4429_v62 = vpop.eup %4428  ;;  %v1598_v23 = vpop.f32.mrf.mxu1 }
 0x21e   : > { %v2323_v39 = vsub.f32 %v2259_v17, %v2291_v40  ;;  %v2573_v46 = vsub.f32 %v2509_v2, %v2541_v0  ;;  %v2293_v40 = vmul.f32 %v6274_v30, %v6274_v30  ;;  %v2478_v6 = vmul.f32 %v4429_v62, %v2382_v60 }
 0x21f   : > { %v2044_v26 = vpop.xlane.xlu0 %2043  ;;  %v2418_v35 = vadd.f32 1e-05, %v2354_v13  ;;  %v4383_v60 = vpop.f32.mrf.mxu1 }
 0x220   : > { %v2355_v19 = vmax.f32 %v2323_v39, 0.0  ;;  %2995 = vperm.xlu0 %4422, %v2573_v46   ;;  %2990 = vperm.xlu1 %4423, %v2572_v33   ;;  %v2260_v58 = vmul.f32 0.0012755102, %v2044_v26  ;;  %v6286_v39 = vmul.f32 0.0012755102, %v1598_v23 }
 0x221   : > { %v4431_v11 = vpop.eup %4430  ;;  %v6288_v46 = vmul.f32 0.0012755102, %v4380_v53 }
 0x222   : > { %v2419_v0 = vadd.f32 1e-05, %v2355_v19  ;;  %v2479_v15 = vmul.f32 %v4431_v11, %v2383_v10  ;;  %v2324_v17 = vsub.f32 %v2260_v58, %v2292_v14  ;;  %v2542_v10 = vmul.f32 %v2478_v6, %v6230_v61  ;;  %v2510_v19 = vld [vmem:[%s6264_s11 + $0x10] sm:$0xff]  ;;  %v2385_v11 = vld [vmem:[%s6250_s22 + $0x28] sm:$0xff] }
 0x223   : > { %v2053_v25 = vpop.xlane.xlu1 %2052  ;;  %v2294_v53 = vmul.f32 %v6286_v39, %v6286_v39  ;;  %v2295_v58 = vmul.f32 %v6288_v46, %v6288_v46 }
 0x224   : > { %4436 = vrsqrt.f32 %v2419_v0  ;;  %v2261_v2 = vmul.f32 0.0012755102, %v2053_v25  ;;  %2616 = vperm.xlu1 %4423, %v2478_v6   ;;  %v2543_v55 = vmul.f32 %v2479_v15, %v6236_v24  ;;  %v2356_v13 = vmax.f32 %v2324_v17, 0.0  ;;  %v1608_v6 = vpop.f32.mrf.mxu1 }
 0x225   : > { %4438 = vrsqrt.f32 %v2418_v35  ;;  %v2574_v61 = vsub.f32 %v2510_v19, %v2542_v10 }
 0x226   : > { %v2325_v33 = vsub.f32 %v2261_v2, %v2293_v40  ;;  %v2575_v26 = vsub.f32 %v2511_v34, %v2543_v55  ;;  %v2513_v2 = vld [vmem:[%s6264_s11 + $0x28] sm:$0xff]  ;;  %v2384_v55 = vld [vmem:[%s6250_s22 + $0x20] sm:$0xff]  ;;  %v2420_v17 = vadd.f32 1e-05, %v2356_v13 }
 0x227   : > { %v2062_v62 = vpop.xlane.xlu0 %2061 }
 0x228   : > { %v2357_v0 = vmax.f32 %v2325_v33, 0.0  ;;  %3005 = vperm.xlu0 %4422, %v2575_v26   ;;  %2621 = vperm.xlu1 %4423, %v2479_v15   ;;  %v2262_v14 = vmul.f32 0.0012755102, %v2062_v62  ;;  %v6300_v26 = vmul.f32 0.0012755102, %v4383_v60 }
 0x229   : > { %v4433_v24 = vpop.eup %4432  ;;  %v6302_v62 = vmul.f32 0.0012755102, %v1608_v6 }
 0x22a   : > { %v2421_v40 = vadd.f32 1e-05, %v2357_v0  ;;  %v2481_v23 = vmul.f32 %v4433_v24, %v2385_v11  ;;  %v4435_v25 = vpop.eup %4434  ;;  %v2326_v33 = vsub.f32 %v2262_v14, %v2294_v53  ;;  %v4386_v11 = vpop.f32.mrf.mxu1  ;;  %v2297_v60 = vmul.f32 %v6300_v26, %v6300_v26 }
 0x22b   : > { %v2071_v34 = vpop.xlane.xlu1 %2070  ;;  %v2480_v19 = vmul.f32 %v4435_v25, %v2384_v55  ;;  %v2296_v13 = vmul.f32 %v6302_v62, %v6302_v62 }
 0x22c   : > { %4440 = vrsqrt.f32 %v2421_v40  ;;  %v2263_v15 = vmul.f32 0.0012755102, %v2071_v34  ;;  %3000 = vperm.xlu1 %4423, %v2574_v61   ;;  %v2545_v35 = vmul.f32 %v2481_v23, %v6242_v50  ;;  %v2358_v50 = vmax.f32 %v2326_v33, 0.0  ;;  %v2515_v34 = vld [vmem:[%s6264_s11 + $0x38] sm:$0xff] }
 0x22d   : > { %4442 = vrsqrt.f32 %v2420_v17  ;;  %v2544_v6 = vmul.f32 %v2480_v19, %v6238_v16  ;;  %v6313_v17 = vmul.f32 0.0012755102, %v4386_v11 }
 0x22e   : > { %v2327_v0 = vsub.f32 %v2263_v15, %v2295_v58  ;;  %v2577_v10 = vsub.f32 %v2513_v2, %v2545_v35  ;;  %v1618_v58 = vpop.f32.mrf.mxu1  ;;  %v2512_v2 = vld [vmem:[%s6264_s11 + $0x20] sm:$0xff]  ;;  %v2422_v35 = vadd.f32 1e-05, %v2358_v50 }
 0x22f   : > { %v2080_v24 = vpop.xlane.xlu0 %2079  ;;  %v6315_v33 = vmul.f32 0.0012755102, %v1618_v58  ;;  %v2576_v16 = vsub.f32 %v2512_v2, %v2544_v6 }
 0x230   : > { %v2359_v8 = vmax.f32 %v2327_v0, 0.0  ;;  %3015 = vperm.xlu0 %4422, %v2577_v10   ;;  %2626 = vperm.xlu1 %4423, %v2480_v19   ;;  %v2264_v14 = vmul.f32 0.0012755102, %v2080_v24  ;;  %v4389_v19 = vpop.f32.mrf.mxu1  ;;  %v2386_v24 = vld [vmem:[%s6250_s22 + $0x30] sm:$0xff] }
 0x231   : > { %v4437_v40 = vpop.eup %4436  ;;  %v2298_v11 = vmul.f32 %v6315_v33, %v6315_v33  ;;  %v6324_v2 = vmul.f32 0.0012755102, %v4389_v19 }
 0x232   : > { %v2423_v53 = vadd.f32 1e-05, %v2359_v8  ;;  %v2483_v61 = vmul.f32 %v4437_v40, %v2387_v38  ;;  %v4439_v8 = vpop.eup %4438  ;;  %v2328_v0 = vsub.f32 %v2264_v14, %v2296_v13  ;;  %v1628_v6 = vpop.f32.mrf.mxu1 }
 0x233   : > { %v2089_v25 = vpop.xlane.xlu1 %2088  ;;  %v2482_v50 = vmul.f32 %v4439_v8, %v2386_v24 }
 0x234   : > { %4444 = vrsqrt.f32 %v2423_v53  ;;  %v2265_v55 = vmul.f32 0.0012755102, %v2089_v25  ;;  %2631 = vperm.xlu1 %4423, %v2481_v23   ;;  %v2547_v15 = vmul.f32 %v2483_v61, %v6255_v28  ;;  %v2299_v28 = vmul.f32 %v6313_v17, %v6313_v17  ;;  %v4392_v24 = vpop.f32.mrf.mxu1 }
 0x235   : > { %4446 = vrsqrt.f32 %v2422_v35  ;;  %v6327_v35 = vmul.f32 0.0012755102, %v1628_v6  ;;  %v2546_v8 = vmul.f32 %v2482_v50, %v6257_v42 }
 0x236   : > { %v2329_v38 = vsub.f32 %v2265_v55, %v2297_v60  ;;  %v2579_v10 = vsub.f32 %v2515_v34, %v2547_v15  ;;  %v2360_v60 = vmax.f32 %v2328_v0, 0.0  ;;  %v2517_v34 = vld [vmem:[%s6264_s11 + $0x48] sm:$0xff]  ;;  %v1638_v6 = vpop.f32.mrf.mxu1 }
 0x237   : > { %v2098_v40 = vpop.xlane.xlu0 %2097  ;;  %v2300_v42 = vmul.f32 %v6327_v35, %v6327_v35 }
 0x238   : > { %v2361_v53 = vmax.f32 %v2329_v38, 0.0  ;;  %3025 = vperm.xlu0 %4422, %v2579_v10   ;;  %3010 = vperm.xlu1 %4423, %v2576_v16   ;;  %v2266_v14 = vmul.f32 0.0012755102, %v2098_v40  ;;  %v2514_v40 = vld [vmem:[%s6264_s11 + $0x30] sm:$0xff] }
 0x239   : > { %v4441_v23 = vpop.eup %4440 }
 0x23a   : > { %v2425_v13 = vadd.f32 1e-05, %v2361_v53  ;;  %v2485_v58 = vmul.f32 %v4441_v23, %v2389_v36  ;;  %v4443_v0 = vpop.eup %4442  ;;  %v2424_v36 = vadd.f32 1e-05, %v2360_v60  ;;  %v2330_v38 = vsub.f32 %v2266_v14, %v2298_v11  ;;  %v2388_v53 = vld [vmem:[%s6250_s22 + $0x40] sm:$0xff]  ;;  %v2391_v23 = vld [vmem:[%s6250_s22 + $0x58] sm:$0xff] }
 0x23b   : > { %v2107_v25 = vpop.xlane.xlu1 %2106  ;;  %v2578_v11 = vsub.f32 %v2514_v40, %v2546_v8 }
 0x23c   : > { %4448 = vrsqrt.f32 %v2425_v13  ;;  %v2267_v55 = vmul.f32 0.0012755102, %v2107_v25  ;;  %2651 = vperm.xlu0 %4422, %v2485_v58   ;;  %2636 = vperm.xlu1 %4423, %v2482_v50   ;;  %v2549_v15 = vmul.f32 %v2485_v58, %v6274_v30  ;;  %v2301_v13 = vmul.f32 %v6324_v2, %v6324_v2 }
 0x23d   : > { %4450 = vrsqrt.f32 %v2424_v36  ;;  %v2362_v60 = vmax.f32 %v2330_v38, 0.0 }
 0x23e   : > { %v2331_v10 = vsub.f32 %v2267_v55, %v2299_v28  ;;  %v2581_v16 = vsub.f32 %v2517_v34, %v2549_v15  ;;  %v2484_v28 = vmul.f32 %v4443_v0, %v2388_v53  ;;  %v2519_v55 = vld [vmem:[%s6264_s11 + $0x58] sm:$0xff]  ;;  %v6338_v15 = vmul.f32 0.0012755102, %v4392_v24  ;;  %v2393_v24 = vld [vmem:[%s6250_s22 + $0x68] sm:$0xff] }
 0x23f   : > { %v2116_v19 = vpop.xlane.xlu0 %2115  ;;  %v6341_v0 = vmul.f32 0.0012755102, %v1638_v6 }
 0x240   : > { %v2363_v25 = vmax.f32 %v2331_v10, 0.0  ;;  %3035 = vperm.xlu0 %4422, %v2581_v16   ;;  %2641 = vperm.xlu1 %4423, %v2483_v61   ;;  %v2268_v50 = vmul.f32 0.0012755102, %v2116_v19  ;;  %v2548_v36 = vmul.f32 %v2484_v28, %v6276_v7  ;;  %v2426_v16 = vadd.f32 1e-05, %v2362_v60  ;;  %v4395_v19 = vpop.f32.mrf.mxu1 }
 0x241   : > { %v4445_v30 = vpop.eup %4444  ;;  %v2302_v7 = vmul.f32 %v6341_v0, %v6341_v0 }
 0x242   : > { %v2427_v14 = vadd.f32 1e-05, %v2363_v25  ;;  %v2487_v58 = vmul.f32 %v4445_v30, %v2391_v23  ;;  %v2332_v8 = vsub.f32 %v2268_v50, %v2300_v42  ;;  %v4447_v38 = vpop.eup %4446  ;;  %v2516_v23 = vld [vmem:[%s6264_s11 + $0x40] sm:$0xff]  ;;  %v2390_v30 = vld [vmem:[%s6250_s22 + $0x50] sm:$0xff]  ;;  %v1648_v6 = vpop.f32.mrf.mxu1 }
 0x243   : > { %v2125_v34 = vpop.xlane.xlu1 %2124 }
 0x244   : > { %4452 = vrsqrt.f32 %v2427_v14  ;;  %v2269_v61 = vmul.f32 0.0012755102, %v2125_v34  ;;  %2661 = vperm.xlu0 %4422, %v2487_v58   ;;  %3020 = vperm.xlu1 %4423, %v2578_v11   ;;  %v2551_v10 = vmul.f32 %v2487_v58, %v6288_v46  ;;  %v2303_v11 = vmul.f32 %v6338_v15, %v6338_v15 }
 0x245   : > { %v2364_v42 = vmax.f32 %v2332_v8, 0.0  ;;  %4454 = vrsqrt.f32 %v2426_v16  ;;  %v2486_v34 = vmul.f32 %v4447_v38, %v2390_v30  ;;  %v6355_v16 = vmul.f32 0.0012755102, %v1648_v6  ;;  %v4398_v38 = vpop.f32.mrf.mxu1 }
 0x246   : > { %v2333_v40 = vsub.f32 %v2269_v61, %v2301_v13  ;;  %v2583_v53 = vsub.f32 %v2519_v55, %v2551_v10  ;;  %v2580_v13 = vsub.f32 %v2516_v23, %v2548_v36  ;;  %v2521_v61 = vld [vmem:[%s6264_s11 + $0x68] sm:$0xff]  ;;  %v6352_v10 = vmul.f32 0.0012755102, %v4395_v19  ;;  %v2518_v19 = vld [vmem:[%s6264_s11 + $0x50] sm:$0xff] }
 0x247   : > { %v2134_v25 = vpop.xlane.xlu0 %2133  ;;  %v1658_v6 = vpop.f32.mrf.mxu1 }
 0x248   : > { %v2365_v14 = vmax.f32 %v2333_v40, 0.0  ;;  %3045 = vperm.xlu0 %4422, %v2583_v53   ;;  %2646 = vperm.xlu1 %4423, %v2484_v28   ;;  %v2270_v50 = vmul.f32 0.0012755102, %v2134_v25  ;;  %v2428_v40 = vadd.f32 1e-05, %v2364_v42  ;;  %v2550_v25 = vmul.f32 %v2486_v34, %v6286_v39 }
 0x249   : > { %v4449_v46 = vpop.eup %4448 }
 0x24a   : > { %v2429_v60 = vadd.f32 1e-05, %v2365_v14  ;;  %v2489_v58 = vmul.f32 %v4449_v46, %v2393_v24  ;;  %v2334_v36 = vsub.f32 %v2270_v50, %v2302_v7  ;;  %v4451_v24 = vpop.eup %4450  ;;  %v2395_v14 = vld [vmem:[%s6250_s22 + $0x78] sm:$0xff]  ;;  %v2392_v46 = vld [vmem:[%s6250_s22 + $0x60] sm:$0xff] }
 0x24b   : > { %v2143_v55 = vpop.xlane.xlu1 %2142 }
 0x24c   : > { %4456 = vrsqrt.f32 %v2429_v60  ;;  %v2271_v28 = vmul.f32 0.0012755102, %v2143_v55  ;;  %2671 = vperm.xlu0 %4422, %v2489_v58   ;;  %3030 = vperm.xlu1 %4423, %v2580_v13   ;;  %v2553_v8 = vmul.f32 %v2489_v58, %v6300_v26  ;;  %v2305_v13 = vmul.f32 %v6352_v10, %v6352_v10 }
 0x24d   : > { %4458 = vrsqrt.f32 %v2428_v40  ;;  %v2366_v42 = vmax.f32 %v2334_v36, 0.0  ;;  %v2582_v58 = vsub.f32 %v2518_v19, %v2550_v25  ;;  %v2488_v55 = vmul.f32 %v4451_v24, %v2392_v46  ;;  %v4401_v24 = vpop.f32.mrf.mxu1 }
 0x24e   : > { %v2335_v53 = vsub.f32 %v2271_v28, %v2303_v11  ;;  %v2585_v23 = vsub.f32 %v2521_v61, %v2553_v8  ;;  %v2304_v11 = vmul.f32 %v6355_v16, %v6355_v16  ;;  %v2523_v28 = vld [vmem:[%s6264_s11 + $0x78] sm:$0xff]  ;;  %v6366_v8 = vmul.f32 0.0012755102, %v4398_v38  ;;  %v2520_v38 = vld [vmem:[%s6264_s11 + $0x60] sm:$0xff] }
 0x24f   : > { %v2152_v30 = vpop.xlane.xlu0 %2151  ;;  %v2430_v36 = vadd.f32 1e-05, %v2366_v42 }
 0x250   : > { %v2367_v60 = vmax.f32 %v2335_v53, 0.0  ;;  %3055 = vperm.xlu0 %4422, %v2585_v23   ;;  %2656 = vperm.xlu1 %4423, %v2486_v34   ;;  %v2272_v7 = vmul.f32 0.0012755102, %v2152_v30  ;;  %v6369_v23 = vmul.f32 0.0012755102, %v1658_v6  ;;  %v1668_v6 = vpop.f32.mrf.mxu1 }
 0x251   : > { %v4453_v26 = vpop.eup %4452 }
 0x252   : > { %v2431_v39 = vadd.f32 1e-05, %v2367_v60  ;;  %v2491_v50 = vmul.f32 %v4453_v26, %v2395_v14  ;;  %v2336_v53 = vsub.f32 %v2272_v7, %v2304_v11  ;;  %v2552_v14 = vmul.f32 %v2488_v55, %v6302_v62  ;;  %v4455_v19 = vpop.eup %4454  ;;  %v2397_v60 = vld [vmem:[%s6250_s22 + $0x88] sm:$0xff]  ;;  %v2394_v26 = vld [vmem:[%s6250_s22 + $0x70] sm:$0xff] }
 0x253   : > { %v2161_v61 = vpop.xlane.xlu1 %2160 }
 0x254   : > { %4460 = vrsqrt.f32 %v2431_v39  ;;  %v2273_v34 = vmul.f32 0.0012755102, %v2161_v61  ;;  %2681 = vperm.xlu0 %4422, %v2491_v50   ;;  %3040 = vperm.xlu1 %4423, %v2582_v58   ;;  %v2555_v40 = vmul.f32 %v2491_v50, %v6313_v17  ;;  %v2307_v39 = vmul.f32 %v6366_v8, %v6366_v8 }
 0x255   : > { %4462 = vrsqrt.f32 %v2430_v36  ;;  %v2368_v42 = vmax.f32 %v2336_v53, 0.0  ;;  %v2584_v50 = vsub.f32 %v2520_v38, %v2552_v14  ;;  %v2490_v61 = vmul.f32 %v4455_v19, %v2394_v26  ;;  %v4404_v14 = vpop.f32.mrf.mxu1  ;;  %v2396_v26 = vld [vmem:[%s6250_s22 + $0x80] sm:$0xff] }
 0x256   : > { %v2337_v25 = vsub.f32 %v2273_v34, %v2305_v13  ;;  %v2587_v30 = vsub.f32 %v2523_v28, %v2555_v40  ;;  %v2306_v13 = vmul.f32 %v6369_v23, %v6369_v23  ;;  %v2525_v34 = vld [vmem:[%s6264_s11 + $0x88] sm:$0xff]  ;;  %v6380_v40 = vmul.f32 0.0012755102, %v4401_v24  ;;  %v2399_v24 = vld [vmem:[%s6250_s22 + $0x98] sm:$0xff] }
 0x257   : > { %v2170_v46 = vpop.xlane.xlu0 %2169  ;;  %v2432_v53 = vadd.f32 1e-05, %v2368_v42  ;;  %v2554_v38 = vmul.f32 %v2490_v61, %v6315_v33 }
 0x258   : > { %v2369_v58 = vmax.f32 %v2337_v25, 0.0  ;;  %3065 = vperm.xlu0 %4422, %v2587_v30   ;;  %2666 = vperm.xlu1 %4423, %v2488_v55   ;;  %v2274_v11 = vmul.f32 0.0012755102, %v2170_v46  ;;  %v6383_v30 = vmul.f32 0.0012755102, %v1668_v6 }
 0x259   : > { %v4457_v17 = vpop.eup %4456 }
 0x25a   : > { %v2433_v62 = vadd.f32 1e-05, %v2369_v58  ;;  %v2493_v7 = vmul.f32 %v4457_v17, %v2397_v60  ;;  %v2338_v25 = vsub.f32 %v2274_v11, %v2306_v13  ;;  %v4459_v46 = vpop.eup %4458  ;;  %v2522_v17 = vld [vmem:[%s6264_s11 + $0x70] sm:$0xff]  ;;  %v1678_v13 = vpop.f32.mrf.mxu1 }
 0x25b   : > { %v2179_v28 = vpop.xlane.xlu1 %2178  ;;  %v2492_v11 = vmul.f32 %v4459_v46, %v2396_v26  ;;  %v6397_v46 = vmul.f32 0.0012755102, %v4404_v14 }
 0x25c   : > { %4464 = vrsqrt.f32 %v2433_v62  ;;  %v2275_v55 = vmul.f32 0.0012755102, %v2179_v28  ;;  %2691 = vperm.xlu0 %4422, %v2493_v7   ;;  %3050 = vperm.xlu1 %4423, %v2584_v50   ;;  %v2557_v36 = vmul.f32 %v2493_v7, %v6324_v2  ;;  %v2309_v62 = vmul.f32 %v6380_v40, %v6380_v40 }
 0x25d   : > { %4466 = vrsqrt.f32 %v2432_v53  ;;  %v2370_v42 = vmax.f32 %v2338_v25, 0.0  ;;  %v2586_v28 = vsub.f32 %v2522_v17, %v2554_v38  ;;  %v4407_v25 = vpop.f32.mrf.mxu1  ;;  %v2524_v17 = vld [vmem:[%s6264_s11 + $0x80] sm:$0xff] }
 0x25e   : > { %v2339_v19 = vsub.f32 %v2275_v55, %v2307_v39  ;;  %v2589_v60 = vsub.f32 %v2525_v34, %v2557_v36  ;;  %v2308_v39 = vmul.f32 %v6383_v30, %v6383_v30  ;;  %v2527_v55 = vld [vmem:[%s6264_s11 + $0x98] sm:$0xff] }
 0x25f   : > { %v2188_v58 = vpop.xlane.xlu0 %2187 }
 0x260   : > { %v2371_v50 = vmax.f32 %v2339_v19, 0.0  ;;  %3075 = vperm.xlu0 %4422, %v2589_v60   ;;  %2676 = vperm.xlu1 %4423, %v2490_v61   ;;  %v2276_v7 = vmul.f32 0.0012755102, %v2188_v58  ;;  %v6394_v61 = vmul.f32 0.0012755102, %v1678_v13  ;;  %v2556_v60 = vmul.f32 %v2492_v11, %v6327_v35 }
 0x261   : > { %v4461_v2 = vpop.eup %4460  ;;  %v2434_v19 = vadd.f32 1e-05, %v2370_v42  ;;  %v2311_v35 = vmul.f32 %v6397_v46, %v6397_v46 }
 0x262   : > { %v2435_v33 = vadd.f32 1e-05, %v2371_v50  ;;  %v2495_v6 = vmul.f32 %v4461_v2, %v2399_v24  ;;  %v4463_v38 = vpop.eup %4462  ;;  %v2340_v26 = vsub.f32 %v2276_v7, %v2308_v39  ;;  %v2398_v50 = vld [vmem:[%s6250_s22 + $0x90] sm:$0xff]  ;;  %v2310_v13 = vmul.f32 %v6394_v61, %v6394_v61 }
 0x263   : > { %v2197_v34 = vpop.xlane.xlu1 %2196  ;;  %v2588_v42 = vsub.f32 %v2524_v17, %v2556_v60  ;;  %v6411_v60 = vmul.f32 0.0012755102, %v4407_v25 }
 0x264   : > { %4468 = vrsqrt.f32 %v2435_v33  ;;  %v2277_v36 = vmul.f32 0.0012755102, %v2197_v34  ;;  %2701 = vperm.xlu0 %4422, %v2495_v6   ;;  %3060 = vperm.xlu1 %4423, %v2586_v28   ;;  %v2559_v53 = vmul.f32 %v2495_v6, %v6338_v15  ;;  %v2401_v33 = vld [vmem:[%s6250_s22 + $0xa8] sm:$0xff]  ;;  %v1688_v15 = vpop.f32.mrf.mxu1  ;;  %v2372_v39 = vmax.f32 %v2340_v26, 0.0 }
 0x265   : > { %4470 = vrsqrt.f32 %v2434_v19 }
 0x266   : > { %v2341_v58 = vsub.f32 %v2277_v36, %v2309_v62  ;;  %v2591_v24 = vsub.f32 %v2527_v55, %v2559_v53  ;;  %v2494_v62 = vmul.f32 %v4463_v38, %v2398_v50  ;;  %v4410_v55 = vpop.f32.mrf.mxu1  ;;  %v6407_v53 = vmul.f32 0.0012755102, %v1688_v15  ;;  %v2400_v15 = vld [vmem:[%s6250_s22 + $0xa0] sm:$0xff] }
 0x267   : > { %v2206_v2 = vpop.xlane.xlu0 %2205 }
 0x268   : > { %v2373_v34 = vmax.f32 %v2341_v58, 0.0  ;;  %3085 = vperm.xlu0 %4422, %v2591_v24   ;;  %2686 = vperm.xlu1 %4423, %v2492_v11   ;;  %v2278_v6 = vmul.f32 0.0012755102, %v2206_v2  ;;  %v2529_v58 = vld [vmem:[%s6264_s11 + $0xa8] sm:$0xff]  ;;  %v2558_v38 = vmul.f32 %v2494_v62, %v6341_v0  ;;  %v2436_v24 = vadd.f32 1e-05, %v2372_v39 }
 0x269   : > { %v4465_v14 = vpop.eup %4464  ;;  %v2313_v0 = vmul.f32 %v6411_v60, %v6411_v60 }
 0x26a   : > { %v2437_v7 = vadd.f32 1e-05, %v2373_v34  ;;  %v2497_v28 = vmul.f32 %v4465_v14, %v2401_v33  ;;  %v4467_v26 = vpop.eup %4466  ;;  %v2342_v17 = vsub.f32 %v2278_v6, %v2310_v13  ;;  %v2526_v33 = vld [vmem:[%s6264_s11 + $0x90] sm:$0xff]  ;;  %v1698_v34 = vpop.f32.mrf.mxu1  ;;  %v2312_v14 = vmul.f32 %v6407_v53, %v6407_v53 }
 0x26b   : > { %v2215_v36 = vpop.xlane.xlu1 %2214  ;;  %v2590_v13 = vsub.f32 %v2526_v33, %v2558_v38  ;;  %v2496_v39 = vmul.f32 %v4467_v26, %v2400_v15  ;;  %v6425_v38 = vmul.f32 0.0012755102, %v4410_v55 }
 0x26c   : > { %4472 = vrsqrt.f32 %v2437_v7  ;;  %v2279_v11 = vmul.f32 0.0012755102, %v2215_v36  ;;  %2711 = vperm.xlu0 %4422, %v2497_v28   ;;  %3070 = vperm.xlu1 %4423, %v2588_v42   ;;  %v2561_v19 = vmul.f32 %v2497_v28, %v6352_v10  ;;  %v2403_v36 = vld [vmem:[%s6250_s22 + $0xb8] sm:$0xff]  ;;  %v2374_v6 = vmax.f32 %v2342_v17, 0.0 }
 0x26d   : > { %4474 = vrsqrt.f32 %v2436_v24  ;;  %v2560_v26 = vmul.f32 %v2496_v39, %v6355_v16  ;;  %v2315_v16 = vmul.f32 %v6425_v38, %v6425_v38 }
 0x26e   : > { %v2343_v50 = vsub.f32 %v2279_v11, %v2311_v35  ;;  %v2593_v2 = vsub.f32 %v2529_v58, %v2561_v19  ;;  %v6421_v35 = vmul.f32 0.0012755102, %v1698_v34  ;;  %v2438_v17 = vadd.f32 1e-05, %v2374_v6 }
 0x26f   : > { %v2224_v7 = vpop.xlane.xlu0 %2223 }
 0x270   : > { %v2375_v42 = vmax.f32 %v2343_v50, 0.0  ;;  %v2280_v10 = vmul.f32 0.0012755102, %v2224_v7  ;;  %3095 = vperm.xlu0 %4422, %v2593_v2   ;;  %2696 = vperm.xlu1 %4423, %v2494_v62   ;;  %v2531_v50 = vld [vmem:[%s6264_s11 + $0xb8] sm:$0xff]  ;;  %v2314_v34 = vmul.f32 %v6421_v35, %v6421_v35  ;;  %v2402_v7 = vld [vmem:[%s6250_s22 + $0xb0] sm:$0xff] }
 0x271   : > { %v4469_v25 = vpop.eup %4468 }
 0x272   : > { %v2439_v28 = vadd.f32 1e-05, %v2375_v42  ;;  %v2499_v58 = vmul.f32 %v4469_v25, %v2403_v36  ;;  %v2344_v11 = vsub.f32 %v2280_v10, %v2312_v14  ;;  %v4471_v24 = vpop.eup %4470  ;;  %v2528_v14 = vld [vmem:[%s6264_s11 + $0xa0] sm:$0xff]  ;;  %v2405_v10 = vld [vmem:[%s6250_s22 + $0xc8] sm:$0xff] }
 0x273   : > { %v2233_v19 = vpop.xlane.xlu1 %2232  ;;  %v2592_v55 = vsub.f32 %v2528_v14, %v2560_v26  ;;  %v2530_v14 = vld [vmem:[%s6264_s11 + $0xb0] sm:$0xff] }
 0x274   : > { %4476 = vrsqrt.f32 %v2439_v28  ;;  %v2281_v62 = vmul.f32 0.0012755102, %v2233_v19  ;;  %2721 = vperm.xlu0 %4422, %v2499_v58   ;;  %3080 = vperm.xlu1 %4423, %v2590_v13   ;;  %v2563_v2 = vmul.f32 %v2499_v58, %v6366_v8  ;;  %v2376_v36 = vmax.f32 %v2344_v11, 0.0 }
 0x275   : > { %4478 = vrsqrt.f32 %v2438_v17 }
 0x276   : > { %v2345_v33 = vsub.f32 %v2281_v62, %v2313_v0  ;;  %v2595_v15 = vsub.f32 %v2531_v50, %v2563_v2  ;;  %v2498_v0 = vmul.f32 %v4471_v24, %v2402_v7  ;;  %v2440_v11 = vadd.f32 1e-05, %v2376_v36  ;;  %v2533_v50 = vld [vmem:[%s6264_s11 + $0xc8] sm:$0xff]  ;;  %v2404_v7 = vld [vmem:[%s6250_s22 + $0xc0] sm:$0xff] }
 0x277   : > { %v2242_v42 = vpop.xlane.xlu0 %2241 }
 0x278   : > { %v2377_v25 = vmax.f32 %v2345_v33, 0.0  ;;  %v2282_v13 = vmul.f32 0.0012755102, %v2242_v42  ;;  %3105 = vperm.xlu0 %4422, %v2595_v15   ;;  %2706 = vperm.xlu1 %4423, %v2496_v39   ;;  %v2562_v24 = vmul.f32 %v2498_v0, %v6369_v23  ;;  %v2407_v15 = vld [vmem:[%s6250_s22 + $0xd8] sm:$0xff] }
 0x279   : > { %v4473_v8 = vpop.eup %4472  ;;  %v2535_v23 = vld [vmem:[%s6264_s11 + $0xd8] sm:$0xff] }
 0x27a   : > { %v2441_v6 = vadd.f32 1e-05, %v2377_v25  ;;  %v2346_v28 = vsub.f32 %v2282_v13, %v2314_v34  ;;  %v2501_v58 = vmul.f32 %v4473_v8, %v2405_v10  ;;  %v4475_v17 = vpop.eup %4474  ;;  %v2594_v25 = vsub.f32 %v2530_v14, %v2562_v24  ;;  %v2534_v24 = vld [vmem:[%s6264_s11 + $0xd0] sm:$0xff] }
 0x27b   : > { %v2251_v19 = vpop.xlane.xlu1 %2250  ;;  %v2500_v13 = vmul.f32 %v4475_v17, %v2404_v7  ;;  %v2411_v17 = vld [vmem:[%s6250_s22 + $0xf8] sm:$0xff]  ;;  %v2410_v7 = vld [vmem:[%s6250_s22 + $0xf0] sm:$0xff] }
 0x27c   : > { %4480 = vrsqrt.f32 %v2441_v6  ;;  %v2378_v62 = vmax.f32 %v2346_v28, 0.0  ;;  %v2283_v2 = vmul.f32 0.0012755102, %v2251_v19  ;;  %2731 = vperm.xlu0 %4422, %v2501_v58   ;;  %3090 = vperm.xlu1 %4423, %v2592_v55   ;;  %v2565_v39 = vmul.f32 %v2501_v58, %v6380_v40  ;;  %v2409_v6 = vld [vmem:[%s6250_s22 + $0xe8] sm:$0xff]  ;;  %v2532_v28 = vld [vmem:[%s6264_s11 + $0xc0] sm:$0xff]  ;;  %v2406_v58 = vld [vmem:[%s6250_s22 + $0xd0] sm:$0xff] }
 0x27d   : > { %4482 = vrsqrt.f32 %v2440_v11  ;;  %v2564_v55 = vmul.f32 %v2500_v13, %v6383_v30 }
 0x27e   : > { %v2347_v33 = vsub.f32 %v2283_v2, %v2315_v16  ;;  %v2597_v26 = vsub.f32 %v2533_v50, %v2565_v39  ;;  %v2442_v34 = vadd.f32 1e-05, %v2378_v62  ;;  %v2537_v2 = vld [vmem:[%s6264_s11 + $0xe8] sm:$0xff]  ;;  %v2408_v39 = vld [vmem:[%s6250_s22 + $0xe0] sm:$0xff] }
 0x27f   : > { %v2596_v50 = vsub.f32 %v2532_v28, %v2564_v55  ;;  %v8038_v28 = vld [vmem:[#allocation3_spill] sm:$0xff] }
 0x280   : > { %v2379_v36 = vmax.f32 %v2347_v33, 0.0  ;;  %3115 = vperm.xlu0 %4422, %v2597_v26   ;;  %2716 = vperm.xlu1 %4423, %v2498_v0   ;;  %4484 = vrsqrt.f32 %v2442_v34 }
 0x281   : > { %v4477_v42 = vpop.eup %4476 }
 0x282   : > { %v2443_v10 = vadd.f32 1e-05, %v2379_v36  ;;  %v2503_v40 = vmul.f32 %v4477_v42, %v2407_v15  ;;  %v4479_v0 = vpop.eup %4478 }
 0x283   : > { %v2502_v62 = vmul.f32 %v4479_v0, %v2406_v58  ;;  %v8037_v0 = vld [vmem:[#allocation4_spill] sm:$0xff] }
 0x284   : > { %4486 = vrsqrt.f32 %v2443_v10  ;;  %2741 = vperm.xlu0 %4422, %v2503_v40   ;;  %3100 = vperm.xlu1 %4423, %v2594_v25   ;;  %v2567_v8 = vmul.f32 %v2503_v40, %v6397_v46 }
 0x285   : > { %v2566_v26 = vmul.f32 %v2502_v62, %v6394_v61 }
 0x286   : > { %v2599_v16 = vsub.f32 %v2535_v23, %v2567_v8 }
 0x287   : > { %v2598_v36 = vsub.f32 %v2534_v24, %v2566_v26 }
 0x288   : > { %3125 = vperm.xlu0 %4422, %v2599_v16   ;;  %2726 = vperm.xlu1 %4423, %v2500_v13   ;;  %v2536_v13 = vld [vmem:[%s6264_s11 + $0xe0] sm:$0xff] }
 0x289   : > { %v4481_v11 = vpop.eup %4480  ;;  %v8036_v16 = vld [vmem:[#allocation2_spill] sm:$0xff] }
 0x28a   : > { %v2505_v19 = vmul.f32 %v4481_v11, %v2409_v6  ;;  %v4483_v46 = vpop.eup %4482  ;;  %v8039_v11 = vld [vmem:[#allocation5_spill] sm:$0xff] }
 0x28b   : > { %v2504_v15 = vmul.f32 %v4483_v46, %v2408_v39  ;;  %v8042_v46 = vld [vmem:[#allocation6_spill] sm:$0xff] }
 0x28c   : > { %2751 = vperm.xlu0 %4422, %v2505_v19   ;;  %3110 = vperm.xlu1 %4423, %v2596_v50   ;;  %v2569_v30 = vmul.f32 %v2505_v19, %v6411_v60  ;;  %v2539_v60 = vld [vmem:[%s6264_s11 + $0xf8] sm:$0xff] }
 0x28d   : > { %v4485_v34 = vpop.eup %4484  ;;  %v2568_v10 = vmul.f32 %v2504_v15, %v6407_v53  ;;  %v8040_v50 = vld [vmem:[#allocation121_spill] sm:$0xff] }
 0x28e   : > { %v2601_v33 = vsub.f32 %v2537_v2, %v2569_v30  ;;  %v6457_v40 = vmul.f32 %v4485_v34, %v2410_v7  ;;  %v8041_v2 = vld [vmem:[#allocation123_spill] sm:$0xff] }
 0x28f   : > { %v2600_v6 = vsub.f32 %v2536_v13, %v2568_v10  ;;  %v8048_v10 = vld [vmem:[#allocation122_spill] sm:$0xff] }
 0x290   : > { %3135 = vperm.xlu0 %4422, %v2601_v33   ;;  %2736 = vperm.xlu1 %4423, %v2502_v62   ;;  %v8043_v33 = vld [vmem:[#allocation8_spill] sm:$0xff]  ;;  %v3380_v13 = vld [vmem:[%s6466_s14 + $0x40] sm:$0xff] }
 0x291   : > { %v4487_v14 = vpop.eup %4486 }
 0x292   : > { %v2507_v42 = vmul.f32 %v4487_v14, %v2411_v17  ;;  %v8045_v17 = vld [vmem:[#allocation9_spill] sm:$0xff]  ;;  %v8046_v14 = vld [vmem:[#allocation124_spill] sm:$0xff] }
 0x293   : > { %v2607_v61 = vpop.permute.xlu0 %2606 }
 0x294   : > { %3120 = vperm.xlu1 %4423, %v2598_v36   ;;  %2761 = vperm.xlu0 %4422, %v2507_v42   ;;  %v2571_v25 = vmul.f32 %v2507_v42, %v6425_v38  ;;  %v2764_v55 = vmul.f32 %v2607_v61, %v8036_v16  ;;  %v2765_v53 = vmul.f32 %v2607_v61, %v8037_v0  ;;  %v8047_v36 = vld [vmem:[#allocation125_spill] sm:$0xff]  ;;  %v3382_v16 = vld [vmem:[%s6466_s14 + $0x50] sm:$0xff] }
 0x295   : > { %v6472_v38 = vmul.f32 %v6457_v40, %v6421_v35  ;;  %v2766_v58 = vmul.f32 %v2607_v61, %v8038_v28  ;;  %v2767_v19 = vmul.f32 %v2607_v61, %v8039_v11  ;;  %v2768_v62 = vmul.f32 %v2607_v61, %v8040_v50  ;;  %v8044_v35 = vld [vmem:[#allocation7_spill] sm:$0xff]  ;;  %v3383_v11 = vld [vmem:[%s6466_s14 + $0x58] sm:$0xff]  ;;  %v3384_v50 = vld [vmem:[%s6466_s14 + $0x60] sm:$0xff] }
 0x296   : > { %v2603_v8 = vsub.f32 %v2539_v60, %v2571_v25  ;;  %v2769_v30 = vmul.f32 %v2607_v61, %v8041_v2  ;;  %v2770_v7 = vmul.f32 %v2607_v61, %v8046_v14  ;;  %v3385_v2 = vld [vmem:[%s6466_s14 + $0x68] sm:$0xff] }
 0x297   : > { %v2612_v23 = vpop.permute.xlu1 %2611 }
 0x298   : > { %2746 = vperm.xlu1 %4423, %v2504_v15   ;;  %3145 = vperm.xlu0 %4422, %v2603_v8   ;;  %v2771_v39 = vmul.f32 %v2612_v23, %v8042_v46  ;;  %v2772_v26 = vmul.f32 %v2612_v23, %v8043_v33  ;;  %v2773_v24 = vmul.f32 %v2612_v23, %v8044_v35  ;;  %v3379_v15 = vld [vmem:[%s6466_s14 + $0x38] sm:$0xff]  ;;  %v3381_v8 = vld [vmem:[%s6466_s14 + $0x48] sm:$0xff] }
 0x299   : > { %v2774_v34 = vmul.f32 %v2612_v23, %v8045_v17  ;;  %v2775_v42 = vmul.f32 %v2612_v23, %v8047_v36  ;;  %v2776_v60 = vmul.f32 %v2612_v23, %v5606_v20  ;;  %v2777_v25 = vmul.f32 %v8048_v10, %v2612_v23  ;;  %v3372_v36 = vld [vmem:[%s6466_s14] sm:$0xff]  ;;  %v3373_v10 = vld [vmem:[%s6466_s14 + $0x8] sm:$0xff] }
 0x29b   : > { %v2996_v0 = vpop.permute.xlu0 %2995  ;;  %v2991_v28 = vpop.permute.xlu1 %2990 }
 0x29c   : > { %v3155_v46 = vadd.f32 %v2996_v0, %v2771_v39  ;;  %v3156_v61 = vadd.f32 %v2996_v0, %v2772_v26  ;;  %v3157_v33 = vadd.f32 %v2996_v0, %v2773_v24  ;;  %v3158_v35 = vadd.f32 %v2996_v0, %v2774_v34  ;;  %3130 = vperm.xlu1 %4423, %v2600_v6   ;;  %v2538_v39 = vld [vmem:[%s6264_s11 + $0xf0] sm:$0xff] }
 0x29d   : > { %v3159_v20 = vadd.f32 %v2996_v0, %v2775_v42  ;;  %v3160_v23 = vadd.f32 %v2996_v0, %v2776_v60  ;;  %v3161_v17 = vadd.f32 %v2996_v0, %v2777_v25  ;;  %v3148_v14 = vadd.f32 %v2991_v28, %v2764_v55  ;;  %v3375_v60 = vld [vmem:[%s6466_s14 + $0x18] sm:$0xff]  ;;  %v3376_v55 = vld [vmem:[%s6466_s14 + $0x20] sm:$0xff]  ;;  %v3377_v25 = vld [vmem:[%s6466_s14 + $0x28] sm:$0xff] }
 0x29e   : > { %v3603_v26 = vadd.f32 %v3379_v15, %v3155_v46  ;;  %v3604_v24 = vadd.f32 %v3380_v13, %v3156_v61  ;;  %v3605_v6 = vadd.f32 %v3381_v8, %v3157_v33  ;;  %v3606_v34 = vadd.f32 %v3382_v16, %v3158_v35  ;;  %v3378_v13 = vld [vmem:[%s6466_s14 + $0x30] sm:$0xff] }
 0x29f   : > { %v3607_v18 = vadd.f32 %v3383_v11, %v3159_v20  ;;  %v3608_v42 = vadd.f32 %v3384_v50, %v3160_v23  ;;  %v3609_v41 = vadd.f32 %v3385_v2, %v3161_v17  ;;  %v3149_v15 = vadd.f32 %v2991_v28, %v2765_v53  ;;  %v2617_v0 = vpop.permute.xlu1 %2616 }
 0x2a0   : > { %3827 = vst [vmem:[%s6498_s18 + $0x38] sm:$0xff] %v3603_v26  ;;  %3828 = vst [vmem:[%s6498_s18 + $0x40] sm:$0xff] %v3604_v24  ;;  %v3150_v8 = vadd.f32 %v2991_v28, %v2766_v58  ;;  %v3151_v16 = vadd.f32 %v2991_v28, %v2767_v19  ;;  %v3152_v46 = vadd.f32 %v2991_v28, %v2768_v62  ;;  %2756 = vperm.xlu1 %4423, %v6457_v40   ;;  %v8050_v40 = vld [vmem:[#allocation12_spill] sm:$0xff]  ;;  %v3393_v24 = vld [vmem:[%s6466_s14 + $0xa8] sm:$0xff] }
 0x2a1   : > { %3829 = vst [vmem:[%s6498_s18 + $0x48] sm:$0xff] %v3605_v6  ;;  %3830 = vst [vmem:[%s6498_s18 + $0x50] sm:$0xff] %v3606_v34  ;;  %v3153_v11 = vadd.f32 %v2991_v28, %v2769_v30  ;;  %v3154_v53 = vadd.f32 %v2991_v28, %v2770_v7  ;;  %v3596_v50 = vadd.f32 %v3372_v36, %v3148_v14  ;;  %v8051_v28 = vld [vmem:[#allocation11_spill] sm:$0xff]  ;;  %v8053_v14 = vld [vmem:[#allocation14_spill] sm:$0xff] }
 0x2a2   : > { %3831 = vst [vmem:[%s6498_s18 + $0x58] sm:$0xff] %v3607_v18  ;;  %3832 = vst [vmem:[%s6498_s18 + $0x60] sm:$0xff] %v3608_v42  ;;  %v3597_v2 = vadd.f32 %v3373_v10, %v3149_v15  ;;  %v2602_v58 = vsub.f32 %v2538_v39, %v6472_v38  ;;  %v3598_v19 = vadd.f32 %v3374_v51, %v3150_v8  ;;  %v8049_v18 = vld [vmem:[#allocation10_spill] sm:$0xff]  ;;  %v8052_v51 = vld [vmem:[#allocation13_spill] sm:$0xff] }
 0x2a3   : > { %3833 = vst.msk [vmem:[%s6498_s18 + $0x68] sm:$0xff] %vm1968_vm0, %v3609_v41  ;;  %v3599_v61 = vadd.f32 %v3375_v60, %v3151_v16  ;;  %v3600_v62 = vadd.f32 %v3376_v55, %v3152_v46  ;;  %v3601_v33 = vadd.f32 %v3377_v25, %v3153_v11  ;;  %v3602_v30 = vadd.f32 %v3378_v13, %v3154_v53  ;;  %v2622_v20 = vpop.permute.xlu1 %2621  ;;  %v3006_v26 = vpop.permute.xlu0 %3005  ;;  %v3394_v6 = vld [vmem:[%s6466_s14 + $0xb0] sm:$0xff]  ;;  %v8054_v34 = vld [vmem:[#allocation15_spill] sm:$0xff]  ;;  %v8055_v60 = vld [vmem:[#allocation126_spill] sm:$0xff] }
 0x2a4   : > { %3820 = vst [vmem:[%s6498_s18] sm:$0xff] %v3596_v50  ;;  %3821 = vst [vmem:[%s6498_s18 + $0x8] sm:$0xff] %v3597_v2  ;;  %v2778_v41 = vmul.f32 %v2617_v0, %v8049_v18  ;;  %v2779_v7 = vmul.f32 %v2617_v0, %v8050_v40  ;;  %v2780_v35 = vmul.f32 %v2617_v0, %v8051_v28  ;;  %3140 = vperm.xlu1 %4423, %v2602_v58   ;;  %v3395_v55 = vld [vmem:[%s6466_s14 + $0xb8] sm:$0xff]  ;;  %v3396_v25 = vld [vmem:[%s6466_s14 + $0xc0] sm:$0xff] }
 0x2a5   : > { %3822 = vst [vmem:[%s6498_s18 + $0x10] sm:$0xff] %v3598_v19  ;;  %3823 = vst [vmem:[%s6498_s18 + $0x18] sm:$0xff] %v3599_v61  ;;  %v2781_v38 = vmul.f32 %v2617_v0, %v8052_v51  ;;  %v2782_v23 = vmul.f32 %v2617_v0, %v5617_v59  ;;  %v2783_v17 = vmul.f32 %v2617_v0, %v5629_v1  ;;  %v3397_v15 = vld [vmem:[%s6466_s14 + $0xc8] sm:$0xff]  ;;  %v3398_v46 = vld [vmem:[%s6466_s14 + $0xd0] sm:$0xff] }
 0x2a6   : > { %3824 = vst [vmem:[%s6498_s18 + $0x20] sm:$0xff] %v3600_v62  ;;  %3825 = vst [vmem:[%s6498_s18 + $0x28] sm:$0xff] %v3601_v33  ;;  %v2785_v39 = vmul.f32 %v2622_v20, %v8053_v14  ;;  %v2786_v36 = vmul.f32 %v2622_v20, %v8054_v34  ;;  %v2787_v10 = vmul.f32 %v2622_v20, %v5272_v56  ;;  %v3399_v11 = vld [vmem:[%s6466_s14 + $0xd8] sm:$0xff]  ;;  %v3386_v58 = vld [vmem:[%s6466_s14 + $0x70] sm:$0xff] }
 0x2a7   : > { %3826 = vst.msk [vmem:[%s6498_s18 + $0x30] sm:$0xff] %vm1968_vm0, %v3602_v30  ;;  %v2788_v42 = vmul.f32 %v2622_v20, %v5279_v21  ;;  %v2789_v59 = vmul.f32 %v2622_v20, %v5636_v48  ;;  %v2784_v1 = vmul.f32 %v2617_v0, %v8055_v60  ;;  %v2790_v13 = vmul.f32 %v2622_v20, %v5651_v22  ;;  %v3001_v0 = vpop.permute.xlu1 %3000  ;;  %v3387_v30 = vld [vmem:[%s6466_s14 + $0x78] sm:$0xff]  ;;  %v3388_v18 = vld [vmem:[%s6466_s14 + $0x80] sm:$0xff]  ;;  %v3389_v40 = vld [vmem:[%s6466_s14 + $0x88] sm:$0xff] }
 0x2a8   : > { %v2791_v8 = vmul.f32 %v5596_v5, %v2622_v20  ;;  %v3169_v16 = vadd.f32 %v3006_v26, %v2785_v39  ;;  %v3170_v56 = vadd.f32 %v3006_v26, %v2786_v36  ;;  %v3171_v21 = vadd.f32 %v3006_v26, %v2787_v10  ;;  %v3390_v51 = vld [vmem:[%s6466_s14 + $0x90] sm:$0xff]  ;;  %v3391_v14 = vld [vmem:[%s6466_s14 + $0x98] sm:$0xff]  ;;  %v3392_v39 = vld [vmem:[%s6466_s14 + $0xa0] sm:$0xff] }
 0x2a9   : > { %v3172_v53 = vadd.f32 %v3006_v26, %v2788_v42  ;;  %v3173_v48 = vadd.f32 %v3006_v26, %v2789_v59  ;;  %v3174_v50 = vadd.f32 %v3006_v26, %v2790_v13  ;;  %v3162_v5 = vadd.f32 %v3001_v0, %v2778_v41  ;;  %v8058_v13 = vld [vmem:[#allocation17_spill] sm:$0xff] }
 0x2aa   : > { %v3175_v2 = vadd.f32 %v3006_v26, %v2791_v8  ;;  %v3617_v22 = vadd.f32 %v3393_v24, %v3169_v16  ;;  %v3618_v19 = vadd.f32 %v3394_v6, %v3170_v56  ;;  %v3619_v61 = vadd.f32 %v3395_v55, %v3171_v21  ;;  %v3407_v56 = vld [vmem:[%s6466_s14 + $0x118] sm:$0xff]  ;;  %v8059_v21 = vld [vmem:[#allocation19_spill] sm:$0xff] }
 0x2ab   : > { %v3620_v62 = vadd.f32 %v3396_v25, %v3172_v53  ;;  %v3621_v33 = vadd.f32 %v3397_v15, %v3173_v48  ;;  %v3622_v28 = vadd.f32 %v3398_v46, %v3174_v50  ;;  %v3163_v41 = vadd.f32 %v3001_v0, %v2779_v7  ;;  %v2627_v10 = vpop.permute.xlu1 %2626  ;;  %v8057_v25 = vld [vmem:[#allocation18_spill] sm:$0xff]  ;;  %v8060_v48 = vld [vmem:[#allocation21_spill] sm:$0xff]  ;;  %v8061_v50 = vld [vmem:[#allocation20_spill] sm:$0xff] }
 0x2ac   : > { %v3623_v20 = vadd.f32 %v3399_v11, %v3175_v2  ;;  %3841 = vst [vmem:[%s6498_s18 + $0xa8] sm:$0xff] %v3617_v22  ;;  %v3164_v26 = vadd.f32 %v3001_v0, %v2780_v35  ;;  %3842 = vst [vmem:[%s6498_s18 + $0xb0] sm:$0xff] %v3618_v19  ;;  %v3165_v24 = vadd.f32 %v3001_v0, %v2781_v38  ;;  %v3409_v19 = vld [vmem:[%s6466_s14 + $0x128] sm:$0xff] }
 0x2ad   : > { %3843 = vst [vmem:[%s6498_s18 + $0xb8] sm:$0xff] %v3619_v61  ;;  %3844 = vst [vmem:[%s6498_s18 + $0xc0] sm:$0xff] %v3620_v62  ;;  %v3166_v6 = vadd.f32 %v3001_v0, %v2782_v23  ;;  %v3167_v34 = vadd.f32 %v3001_v0, %v2783_v17  ;;  %v3168_v36 = vadd.f32 %v3001_v0, %v2784_v1  ;;  %v8056_v23 = vld [vmem:[#allocation16_spill] sm:$0xff]  ;;  %v3016_v1 = vpop.permute.xlu0 %3015 }
 0x2ae   : > { %3845 = vst [vmem:[%s6498_s18 + $0xc8] sm:$0xff] %v3621_v33  ;;  %3846 = vst [vmem:[%s6498_s18 + $0xd0] sm:$0xff] %v3622_v28  ;;  %v3610_v7 = vadd.f32 %v3386_v58, %v3162_v5  ;;  %v3611_v35 = vadd.f32 %v3387_v30, %v3163_v41  ;;  %v3612_v42 = vadd.f32 %v3388_v18, %v3164_v26  ;;  %v3408_v5 = vld [vmem:[%s6466_s14 + $0x120] sm:$0xff]  ;;  %v3410_v61 = vld [vmem:[%s6466_s14 + $0x130] sm:$0xff] }
 0x2af   : > { %3847 = vst.msk [vmem:[%s6498_s18 + $0xd8] sm:$0xff] %vm1968_vm0, %v3623_v20  ;;  %v3613_v59 = vadd.f32 %v3389_v40, %v3165_v24  ;;  %v3614_v60 = vadd.f32 %v3390_v51, %v3166_v6  ;;  %v3615_v55 = vadd.f32 %v3391_v14, %v3167_v34  ;;  %v3616_v38 = vadd.f32 %v3392_v39, %v3168_v36  ;;  %v2632_v11 = vpop.permute.xlu1 %2631  ;;  %v3411_v33 = vld [vmem:[%s6466_s14 + $0x138] sm:$0xff]  ;;  %v3412_v30 = vld [vmem:[%s6466_s14 + $0x140] sm:$0xff]  ;;  %v3413_v18 = vld [vmem:[%s6466_s14 + $0x148] sm:$0xff] }
 0x2b0   : > { %3834 = vst [vmem:[%s6498_s18 + $0x70] sm:$0xff] %v3610_v7  ;;  %3835 = vst [vmem:[%s6498_s18 + $0x78] sm:$0xff] %v3611_v35  ;;  %v2792_v17 = vmul.f32 %v2627_v10, %v8056_v23  ;;  %v2793_v15 = vmul.f32 %v2627_v10, %v8057_v25  ;;  %v2794_v8 = vmul.f32 %v2627_v10, %v8058_v13  ;;  %v3400_v6 = vld [vmem:[%s6466_s14 + $0xe0] sm:$0xff]  ;;  %v3402_v7 = vld [vmem:[%s6466_s14 + $0xf0] sm:$0xff] }
 0x2b1   : > { %3836 = vst [vmem:[%s6498_s18 + $0x80] sm:$0xff] %v3612_v42  ;;  %3837 = vst [vmem:[%s6498_s18 + $0x88] sm:$0xff] %v3613_v59  ;;  %v2795_v16 = vmul.f32 %v2627_v10, %v5291_v29  ;;  %v2796_v46 = vmul.f32 %v2627_v10, %v5657_v47  ;;  %v2799_v53 = vmul.f32 %v2632_v11, %v8059_v21  ;;  %v3403_v35 = vld [vmem:[%s6466_s14 + $0xf8] sm:$0xff]  ;;  %v3404_v42 = vld [vmem:[%s6466_s14 + $0x100] sm:$0xff] }
 0x2b2   : > { %3838 = vst [vmem:[%s6498_s18 + $0x90] sm:$0xff] %v3614_v60  ;;  %3839 = vst [vmem:[%s6498_s18 + $0x98] sm:$0xff] %v3615_v55  ;;  %v2800_v0 = vmul.f32 %v2632_v11, %v8060_v48  ;;  %v2801_v2 = vmul.f32 %v2632_v11, %v8061_v50  ;;  %v2802_v22 = vmul.f32 %v2632_v11, %v5303_v37  ;;  %v3405_v60 = vld [vmem:[%s6466_s14 + $0x108] sm:$0xff]  ;;  %v3406_v55 = vld [vmem:[%s6466_s14 + $0x110] sm:$0xff] }
 0x2b3   : > { %3840 = vst.msk [vmem:[%s6498_s18 + $0xa0] sm:$0xff] %vm1968_vm0, %v3616_v38  ;;  %v2797_v58 = vmul.f32 %v2627_v10, %v5671_v52  ;;  %v2803_v29 = vmul.f32 %v2632_v11, %v5682_v49  ;;  %v2804_v47 = vmul.f32 %v2632_v11, %v5693_v9  ;;  %v2805_v62 = vmul.f32 %v5623_v43, %v2632_v11  ;;  %v6591_v9 = vpop.permute.xlu0 %3025  ;;  %v3011_v43 = vpop.permute.xlu1 %3010 }
 0x2b4   : > { %v3183_v40 = vadd.f32 %v3016_v1, %v2799_v53  ;;  %v3184_v28 = vadd.f32 %v3016_v1, %v2800_v0  ;;  %v3185_v20 = vadd.f32 %v3016_v1, %v2801_v2  ;;  %v3186_v37 = vadd.f32 %v3016_v1, %v2802_v22 }
 0x2b5   : > { %v2798_v52 = vmul.f32 %v2627_v10, %v5643_v54  ;;  %v3187_v51 = vadd.f32 %v3016_v1, %v2803_v29  ;;  %v3188_v49 = vadd.f32 %v3016_v1, %v2804_v47  ;;  %v3189_v14 = vadd.f32 %v3016_v1, %v2805_v62  ;;  %v3401_v54 = vld [vmem:[%s6466_s14 + $0xe8] sm:$0xff]  ;;  %v3435_v29 = vld [vmem:[%s6466_s14 + $0x1f8] sm:$0xff] }
 0x2b6   : > { %v3631_v39 = vadd.f32 %v3407_v56, %v3183_v40  ;;  %v3632_v41 = vadd.f32 %v3408_v5, %v3184_v28  ;;  %v3633_v26 = vadd.f32 %v3409_v19, %v3185_v20  ;;  %v3634_v24 = vadd.f32 %v3410_v61, %v3186_v37  ;;  %v8064_v61 = vld [vmem:[#allocation23_spill] sm:$0xff]  ;;  %v3436_v40 = vld [vmem:[%s6466_s14 + $0x200] sm:$0xff]  ;;  %v3438_v20 = vld [vmem:[%s6466_s14 + $0x210] sm:$0xff] }
 0x2b7   : > { %v3635_v34 = vadd.f32 %v3411_v33, %v3187_v51  ;;  %v3636_v36 = vadd.f32 %v3412_v30, %v3188_v49  ;;  %v3637_v10 = vadd.f32 %v3413_v18, %v3189_v14  ;;  %v3176_v59 = vadd.f32 %v3011_v43, %v2792_v17  ;;  %v2652_v56 = vpop.permute.xlu0 %2651  ;;  %v2637_v21 = vpop.permute.xlu1 %2636  ;;  %v8065_v30 = vld [vmem:[#allocation128_spill] sm:$0xff]  ;;  %v3437_v28 = vld [vmem:[%s6466_s14 + $0x208] sm:$0xff]  ;;  %v3439_v37 = vld [vmem:[%s6466_s14 + $0x218] sm:$0xff] }
 0x2b8   : > { %3855 = vst [vmem:[%s6498_s18 + $0x118] sm:$0xff] %v3631_v39  ;;  %3856 = vst [vmem:[%s6498_s18 + $0x120] sm:$0xff] %v3632_v41  ;;  %v3177_v38 = vadd.f32 %v3011_v43, %v2793_v15  ;;  %v3178_v23 = vadd.f32 %v3011_v43, %v2794_v8  ;;  %v3179_v1 = vadd.f32 %v3011_v43, %v2795_v16  ;;  %v3441_v51 = vld [vmem:[%s6466_s14 + $0x228] sm:$0xff]  ;;  %v8066_v41 = vld [vmem:[#allocation25_spill] sm:$0xff] }
 0x2b9   : > { %3857 = vst [vmem:[%s6498_s18 + $0x128] sm:$0xff] %v3633_v26  ;;  %3858 = vst [vmem:[%s6498_s18 + $0x130] sm:$0xff] %v3634_v24  ;;  %v3180_v25 = vadd.f32 %v3011_v43, %v2796_v46  ;;  %v3181_v13 = vadd.f32 %v3011_v43, %v2797_v58  ;;  %v3182_v17 = vadd.f32 %v3011_v43, %v2798_v52  ;;  %v3440_v52 = vld [vmem:[%s6466_s14 + $0x220] sm:$0xff] }
 0x2ba   : > { %3859 = vst [vmem:[%s6498_s18 + $0x138] sm:$0xff] %v3635_v34  ;;  %3860 = vst [vmem:[%s6498_s18 + $0x140] sm:$0xff] %v3636_v36  ;;  %v3624_v11 = vadd.f32 %v3400_v6, %v3176_v59  ;;  %v3625_v53 = vadd.f32 %v3401_v54, %v3177_v38  ;;  %v3626_v48 = vadd.f32 %v3402_v7, %v3178_v23  ;;  %v8067_v59 = vld [vmem:[#allocation27_spill] sm:$0xff]  ;;  %v3422_v38 = vld [vmem:[%s6466_s14 + $0x190] sm:$0xff] }
 0x2bb   : > { %3861 = vst.msk [vmem:[%s6498_s18 + $0x148] sm:$0xff] %vm1968_vm0, %v3637_v10  ;;  %v3627_v15 = vadd.f32 %v3403_v35, %v3179_v1  ;;  %v3628_v8 = vadd.f32 %v3404_v42, %v3180_v25  ;;  %v3629_v16 = vadd.f32 %v3405_v60, %v3181_v13  ;;  %v3630_v46 = vadd.f32 %v3406_v55, %v3182_v17  ;;  %v2642_v47 = vpop.permute.xlu1 %2641  ;;  %v3421_v55 = vld [vmem:[%s6466_s14 + $0x188] sm:$0xff]  ;;  %v3423_v23 = vld [vmem:[%s6466_s14 + $0x198] sm:$0xff]  ;;  %v8068_v1 = vld [vmem:[#allocation26_spill] sm:$0xff] }
 0x2bc   : > { %3848 = vst [vmem:[%s6498_s18 + $0xe0] sm:$0xff] %v3624_v11  ;;  %v2827_v0 = vmul.f32 %v2652_v56, %v5342_v31  ;;  %v2828_v50 = vmul.f32 %v2652_v56, %v5349_v3  ;;  %3849 = vst [vmem:[%s6498_s18 + $0xe8] sm:$0xff] %v3625_v53  ;;  %v2829_v2 = vmul.f32 %v2652_v56, %v5344_v32  ;;  %v8062_v3 = vld [vmem:[#allocation22_spill] sm:$0xff]  ;;  %v8063_v32 = vld [vmem:[#allocation24_spill] sm:$0xff] }
 0x2bd   : > { %3850 = vst [vmem:[%s6498_s18 + $0xf0] sm:$0xff] %v3626_v48  ;;  %3851 = vst [vmem:[%s6498_s18 + $0xf8] sm:$0xff] %v3627_v15  ;;  %v2830_v22 = vmul.f32 %v2652_v56, %v5351_v4  ;;  %v2831_v58 = vmul.f32 %v2652_v56, %v5766_v63  ;;  %v2832_v5 = vmul.f32 %v2652_v56, %v5777_v57  ;;  %v3036_v57 = vpop.permute.xlu0 %3035  ;;  %v8069_v13 = vld [vmem:[#allocation28_spill] sm:$0xff]  ;;  %v8070_v11 = vld [vmem:[#allocation129_spill] sm:$0xff] }
 0x2be   : > { %3852 = vst [vmem:[%s6498_s18 + $0x100] sm:$0xff] %v3628_v8  ;;  %3853 = vst [vmem:[%s6498_s18 + $0x108] sm:$0xff] %v3629_v16  ;;  %v2833_v31 = vmul.f32 %v5708_v27, %v2652_v56  ;;  %v6624_v19 = vmul.f32 %v2637_v21, %v8062_v3  ;;  %v6627_v4 = vmul.f32 %v2637_v21, %v8063_v32  ;;  %v3424_v48 = vld [vmem:[%s6466_s14 + $0x1a0] sm:$0xff]  ;;  %v3425_v15 = vld [vmem:[%s6466_s14 + $0x1a8] sm:$0xff] }
 0x2bf   : > { %3854 = vst.msk [vmem:[%s6498_s18 + $0x110] sm:$0xff] %vm1968_vm0, %v3630_v46  ;;  %v6630_v63 = vmul.f32 %v2637_v21, %v8064_v61  ;;  %v6634_v62 = vmul.f32 %v2637_v21, %v5315_v45  ;;  %v6637_v33 = vmul.f32 %v2637_v21, %v5701_v12  ;;  %v6640_v27 = vmul.f32 %v2637_v21, %v5714_v44  ;;  %v6652_v10 = vpop.permute.xlu1 %3020  ;;  %v3426_v8 = vld [vmem:[%s6466_s14 + $0x1b0] sm:$0xff]  ;;  %v8072_v16 = vld [vmem:[#allocation127_spill] sm:$0xff] }
 0x2c0   : > { %v6643_v18 = vmul.f32 %v2637_v21, %v8065_v30  ;;  %v3211_v49 = vadd.f32 %v3036_v57, %v2827_v0  ;;  %v3212_v14 = vadd.f32 %v3036_v57, %v2828_v50  ;;  %v3213_v43 = vadd.f32 %v3036_v57, %v2829_v2  ;;  %v8071_v21 = vld [vmem:[#allocation131_spill] sm:$0xff]  ;;  %v8073_v2 = vld [vmem:[#allocation37_spill] sm:$0xff] }
 0x2c1   : > { %v3214_v45 = vadd.f32 %v3036_v57, %v2830_v22  ;;  %v3215_v12 = vadd.f32 %v3036_v57, %v2831_v58  ;;  %v3216_v39 = vadd.f32 %v3036_v57, %v2832_v5  ;;  %v3217_v44 = vadd.f32 %v3036_v57, %v2833_v31  ;;  %v2662_v36 = vpop.permute.xlu0 %2661  ;;  %v3427_v58 = vld [vmem:[%s6466_s14 + $0x1b8] sm:$0xff] }
 0x2c2   : > { %v2813_v26 = vmul.f32 %v2642_v47, %v8066_v41  ;;  %v3659_v24 = vadd.f32 %v3435_v29, %v3211_v49  ;;  %v3660_v6 = vadd.f32 %v3436_v40, %v3212_v14  ;;  %v3661_v54 = vadd.f32 %v3437_v28, %v3213_v43  ;;  %v8074_v40 = vld [vmem:[#allocation39_spill] sm:$0xff]  ;;  %v8076_v43 = vld [vmem:[#allocation40_spill] sm:$0xff]  ;;  %v3415_v41 = vld [vmem:[%s6466_s14 + $0x158] sm:$0xff] }
 0x2c3   : > { %v3662_v34 = vadd.f32 %v3438_v20, %v3214_v45  ;;  %v3663_v7 = vadd.f32 %v3439_v37, %v3215_v12  ;;  %v3664_v35 = vadd.f32 %v3440_v52, %v3216_v39  ;;  %v3665_v42 = vadd.f32 %v3441_v51, %v3217_v44  ;;  %v6684_v29 = vpop.permute.xlu1 %2646  ;;  %v8077_v12 = vld [vmem:[#allocation139_spill] sm:$0xff]  ;;  %v3414_v44 = vld [vmem:[%s6466_s14 + $0x150] sm:$0xff] }
 0x2c4   : > { %v2814_v60 = vmul.f32 %v2642_v47, %v8067_v59  ;;  %3883 = vst [vmem:[%s6498_s18 + $0x1f8] sm:$0xff] %v3659_v24  ;;  %3884 = vst [vmem:[%s6498_s18 + $0x200] sm:$0xff] %v3660_v6  ;;  %v2815_v25 = vmul.f32 %v2642_v47, %v8068_v1  ;;  %v2816_v17 = vmul.f32 %v2642_v47, %v8069_v13  ;;  %v8078_v24 = vld [vmem:[#allocation141_spill] sm:$0xff] }
 0x2c5   : > { %3885 = vst [vmem:[%s6498_s18 + $0x208] sm:$0xff] %v3661_v54  ;;  %3886 = vst [vmem:[%s6498_s18 + $0x210] sm:$0xff] %v3662_v34  ;;  %v2817_v56 = vmul.f32 %v2642_v47, %v8070_v11  ;;  %v2818_v53 = vmul.f32 %v2642_v47, %v8071_v21  ;;  %v2819_v46 = vmul.f32 %v8072_v16, %v2642_v47  ;;  %v6682_v61 = vpop.permute.xlu0 %3045  ;;  %v8079_v54 = vld [vmem:[#allocation133_spill] sm:$0xff] }
 0x2c6   : > { %3887 = vst [vmem:[%s6498_s18 + $0x218] sm:$0xff] %v3663_v7  ;;  %3888 = vst [vmem:[%s6498_s18 + $0x220] sm:$0xff] %v3664_v35  ;;  %v3197_v0 = vadd.f32 %v6591_v9, %v2813_v26  ;;  %v3198_v50 = vadd.f32 %v6591_v9, %v2814_v60  ;;  %v2841_v22 = vmul.f32 %v2662_v36, %v8073_v2  ;;  %v3416_v26 = vld [vmem:[%s6466_s14 + $0x160] sm:$0xff]  ;;  %v3417_v7 = vld [vmem:[%s6466_s14 + $0x168] sm:$0xff] }
 0x2c7   : > { %3889 = vst.msk [vmem:[%s6498_s18 + $0x228] sm:$0xff] %vm1968_vm0, %v3665_v42  ;;  %v3199_v5 = vadd.f32 %v6591_v9, %v2815_v25  ;;  %v3200_v31 = vadd.f32 %v6591_v9, %v2816_v17  ;;  %v3201_v3 = vadd.f32 %v6591_v9, %v2817_v56  ;;  %v3202_v32 = vadd.f32 %v6591_v9, %v2818_v53  ;;  %v3418_v35 = vld [vmem:[%s6466_s14 + $0x170] sm:$0xff]  ;;  %v3419_v42 = vld [vmem:[%s6466_s14 + $0x178] sm:$0xff] }
 0x2c8   : > { %v3203_v57 = vadd.f32 %v6591_v9, %v2819_v46  ;;  %v3645_v47 = vadd.f32 %v3421_v55, %v3197_v0  ;;  %v3646_v30 = vadd.f32 %v3422_v38, %v3198_v50  ;;  %v2842_v28 = vmul.f32 %v2662_v36, %v8074_v40  ;;  %v8075_v9 = vld [vmem:[#allocation38_spill] sm:$0xff]  ;;  %v6711_v38 = vpop.permute.xlu1 %3030  ;;  %v3450_v53 = vld [vmem:[%s6466_s14 + $0x270] sm:$0xff] }
 0x2c9   : > { %v3647_v20 = vadd.f32 %v3423_v23, %v3199_v5  ;;  %v3648_v37 = vadd.f32 %v3424_v48, %v3200_v31  ;;  %v3649_v52 = vadd.f32 %v3425_v15, %v3201_v3  ;;  %v3650_v51 = vadd.f32 %v3426_v8, %v3202_v32  ;;  %v6709_v55 = vpop.permute.xlu0 %2671  ;;  %v3420_v23 = vld [vmem:[%s6466_s14 + $0x180] sm:$0xff]  ;;  %v3455_v8 = vld [vmem:[%s6466_s14 + $0x298] sm:$0xff] }
 0x2ca   : > { %v3651_v49 = vadd.f32 %v3427_v58, %v3203_v57  ;;  %3869 = vst [vmem:[%s6498_s18 + $0x188] sm:$0xff] %v3645_v47  ;;  %3870 = vst [vmem:[%s6498_s18 + $0x190] sm:$0xff] %v3646_v30  ;;  %v2843_v14 = vmul.f32 %v2662_v36, %v8075_v9  ;;  %v2844_v45 = vmul.f32 %v2662_v36, %v8076_v43  ;;  %v3452_v48 = vld [vmem:[%s6466_s14 + $0x280] sm:$0xff]  ;;  %v8080_v47 = vld [vmem:[#allocation29_spill] sm:$0xff] }
 0x2cb   : > { %v2845_v39 = vmul.f32 %v2662_v36, %v8077_v12  ;;  %3871 = vst [vmem:[%s6498_s18 + $0x198] sm:$0xff] %v3647_v20  ;;  %3872 = vst [vmem:[%s6498_s18 + $0x1a0] sm:$0xff] %v3648_v37  ;;  %v2846_v6 = vmul.f32 %v2662_v36, %v8078_v24  ;;  %v2847_v34 = vmul.f32 %v8079_v54, %v2662_v36  ;;  %v8081_v37 = vld [vmem:[#allocation31_spill] sm:$0xff]  ;;  %v8087_v24 = vld [vmem:[#allocation45_spill] sm:$0xff] }
 0x2cc   : > { %3873 = vst [vmem:[%s6498_s18 + $0x1a8] sm:$0xff] %v3649_v52  ;;  %3874 = vst [vmem:[%s6498_s18 + $0x1b0] sm:$0xff] %v3650_v51  ;;  %v3190_v59 = vadd.f32 %v6652_v10, %v6624_v19  ;;  %v3191_v60 = vadd.f32 %v6652_v10, %v6627_v4  ;;  %v3192_v36 = vadd.f32 %v6652_v10, %v6630_v63  ;;  %v3449_v63 = vld [vmem:[%s6466_s14 + $0x268] sm:$0xff]  ;;  %v6741_v2 = vpop.permute.xlu1 %2656 }
 0x2cd   : > { %3875 = vst.msk [vmem:[%s6498_s18 + $0x1b8] sm:$0xff] %vm1968_vm0, %v3651_v49  ;;  %v3193_v1 = vadd.f32 %v6652_v10, %v6634_v62  ;;  %v3194_v19 = vadd.f32 %v6652_v10, %v6637_v33  ;;  %v3195_v4 = vadd.f32 %v6652_v10, %v6640_v27  ;;  %v3196_v25 = vadd.f32 %v6652_v10, %v6643_v18  ;;  %v3451_v27 = vld [vmem:[%s6466_s14 + $0x278] sm:$0xff]  ;;  %v3453_v18 = vld [vmem:[%s6466_s14 + $0x288] sm:$0xff]  ;;  %v3454_v10 = vld [vmem:[%s6466_s14 + $0x290] sm:$0xff]  ;;  %v6739_v50 = vpop.permute.xlu0 %3055 }
 0x2ce   : > { %v3638_v13 = vadd.f32 %v3414_v44, %v3190_v59  ;;  %v3639_v17 = vadd.f32 %v3415_v41, %v3191_v60  ;;  %v3225_v11 = vadd.f32 %v6682_v61, %v2841_v22  ;;  %v3640_v62 = vadd.f32 %v3416_v26, %v3192_v36  ;;  %v8083_v49 = vld [vmem:[#allocation32_spill] sm:$0xff]  ;;  %v8086_v41 = vld [vmem:[#allocation130_spill] sm:$0xff]  ;;  %v8088_v54 = vld [vmem:[#allocation47_spill] sm:$0xff] }
 0x2cf   : > { %v3641_v56 = vadd.f32 %v3417_v7, %v3193_v1  ;;  %v3642_v21 = vadd.f32 %v3418_v35, %v3194_v19  ;;  %v3643_v33 = vadd.f32 %v3419_v42, %v3195_v4  ;;  %v3644_v15 = vadd.f32 %v3420_v23, %v3196_v25  ;;  %v8089_v7 = vld [vmem:[#allocation46_spill] sm:$0xff]  ;;  %v8090_v59 = vld [vmem:[#allocation48_spill] sm:$0xff]  ;;  %v8091_v23 = vld [vmem:[#allocation145_spill] sm:$0xff] }
 0x2d0   : > { %3862 = vst [vmem:[%s6498_s18 + $0x150] sm:$0xff] %v3638_v13  ;;  %3863 = vst [vmem:[%s6498_s18 + $0x158] sm:$0xff] %v3639_v17  ;;  %v3226_v16 = vadd.f32 %v6682_v61, %v2842_v28  ;;  %v3227_v46 = vadd.f32 %v6682_v61, %v2843_v14  ;;  %v3228_v0 = vadd.f32 %v6682_v61, %v2844_v45  ;;  %v8084_v14 = vld [vmem:[#allocation132_spill] sm:$0xff]  ;;  %v8085_v45 = vld [vmem:[#allocation134_spill] sm:$0xff]  ;;  %v6770_v44 = vpop.permute.xlu1 %3040 }
 0x2d1   : > { %3864 = vst [vmem:[%s6498_s18 + $0x160] sm:$0xff] %v3640_v62  ;;  %3865 = vst [vmem:[%s6498_s18 + $0x168] sm:$0xff] %v3641_v56  ;;  %v3229_v22 = vadd.f32 %v6682_v61, %v2845_v39  ;;  %v3230_v58 = vadd.f32 %v6682_v61, %v2846_v6  ;;  %v3231_v5 = vadd.f32 %v6682_v61, %v2847_v34  ;;  %v8082_v61 = vld [vmem:[#allocation30_spill] sm:$0xff]  ;;  %v6768_v39 = vpop.permute.xlu0 %2681  ;;  %v8092_v1 = vld [vmem:[#allocation147_spill] sm:$0xff] }
 0x2d2   : > { %3866 = vst [vmem:[%s6498_s18 + $0x170] sm:$0xff] %v3642_v21  ;;  %3867 = vst [vmem:[%s6498_s18 + $0x178] sm:$0xff] %v3643_v33  ;;  %v3673_v31 = vadd.f32 %v3449_v63, %v3225_v11  ;;  %v3674_v3 = vadd.f32 %v3450_v53, %v3226_v16  ;;  %v3675_v32 = vadd.f32 %v3451_v27, %v3227_v46  ;;  %v3428_v42 = vld [vmem:[%s6466_s14 + $0x1c0] sm:$0xff]  ;;  %v3429_v25 = vld [vmem:[%s6466_s14 + $0x1c8] sm:$0xff] }
 0x2d3   : > { %3868 = vst.msk [vmem:[%s6498_s18 + $0x180] sm:$0xff] %vm1968_vm0, %v3644_v15  ;;  %v3676_v57 = vadd.f32 %v3452_v48, %v3228_v0  ;;  %v2820_v30 = vmul.f32 %v6684_v29, %v8080_v47  ;;  %v3677_v40 = vadd.f32 %v3453_v18, %v3229_v22  ;;  %v3678_v28 = vadd.f32 %v3454_v10, %v3230_v58  ;;  %v3430_v13 = vld [vmem:[%s6466_s14 + $0x1d0] sm:$0xff]  ;;  %v3431_v17 = vld [vmem:[%s6466_s14 + $0x1d8] sm:$0xff]  ;;  %v3432_v63 = vld [vmem:[%s6466_s14 + $0x1e0] sm:$0xff] }
 0x2d4   : > { %v3679_v20 = vadd.f32 %v3455_v8, %v3231_v5  ;;  %3897 = vst [vmem:[%s6498_s18 + $0x268] sm:$0xff] %v3673_v31  ;;  %v2821_v52 = vmul.f32 %v6684_v29, %v8081_v37  ;;  %3898 = vst [vmem:[%s6498_s18 + $0x270] sm:$0xff] %v3674_v3  ;;  %v2822_v51 = vmul.f32 %v6684_v29, %v8082_v61  ;;  %v3433_v11 = vld [vmem:[%s6466_s14 + $0x1e8] sm:$0xff]  ;;  %v3434_v62 = vld [vmem:[%s6466_s14 + $0x1f0] sm:$0xff]  ;;  %v6809_v10 = vpop.permute.xlu1 %2666 }
 0x2d5   : > { %3899 = vst [vmem:[%s6498_s18 + $0x278] sm:$0xff] %v3675_v32  ;;  %3900 = vst [vmem:[%s6498_s18 + $0x280] sm:$0xff] %v3676_v57  ;;  %v2823_v9 = vmul.f32 %v6684_v29, %v8083_v49  ;;  %v2824_v43 = vmul.f32 %v6684_v29, %v8084_v14  ;;  %v2825_v12 = vmul.f32 %v6684_v29, %v8085_v45  ;;  %v6807_v18 = vpop.permute.xlu0 %3065  ;;  %v3463_v22 = vld [vmem:[%s6466_s14 + $0x2d8] sm:$0xff]  ;;  %v3464_v58 = vld [vmem:[%s6466_s14 + $0x2e0] sm:$0xff] }
 0x2d6   : > { %3901 = vst [vmem:[%s6498_s18 + $0x288] sm:$0xff] %v3677_v40  ;;  %3902 = vst [vmem:[%s6498_s18 + $0x290] sm:$0xff] %v3678_v28  ;;  %v2826_v26 = vmul.f32 %v6684_v29, %v8086_v41  ;;  %v2855_v6 = vmul.f32 %v6709_v55, %v8087_v24  ;;  %v2856_v34 = vmul.f32 %v6709_v55, %v8088_v54  ;;  %v8093_v29 = vld [vmem:[#allocation137_spill] sm:$0xff]  ;;  %v3465_v5 = vld [vmem:[%s6466_s14 + $0x2e8] sm:$0xff] }
 0x2d7   : > { %3903 = vst.msk [vmem:[%s6498_s18 + $0x298] sm:$0xff] %vm1968_vm0, %v3679_v20  ;;  %v2857_v35 = vmul.f32 %v6709_v55, %v8089_v7  ;;  %v2858_v60 = vmul.f32 %v6709_v55, %v8090_v59  ;;  %v2859_v36 = vmul.f32 %v6709_v55, %v8091_v23  ;;  %v2860_v19 = vmul.f32 %v6709_v55, %v8092_v1  ;;  %v3466_v32 = vld [vmem:[%s6466_s14 + $0x2f0] sm:$0xff]  ;;  %v3467_v57 = vld [vmem:[%s6466_s14 + $0x2f8] sm:$0xff]  ;;  %v3468_v47 = vld [vmem:[%s6466_s14 + $0x300] sm:$0xff] }
 0x2d8   : > { %v2861_v4 = vmul.f32 %v8093_v29, %v6709_v55  ;;  %v3204_v56 = vadd.f32 %v6711_v38, %v2820_v30  ;;  %v3205_v21 = vadd.f32 %v6711_v38, %v2821_v52  ;;  %v3206_v33 = vadd.f32 %v6711_v38, %v2822_v51  ;;  %v3469_v40 = vld [vmem:[%s6466_s14 + $0x308] sm:$0xff]  ;;  %v6836_v45 = vpop.permute.xlu1 %3050  ;;  %v8098_v59 = vld [vmem:[#allocation136_spill] sm:$0xff]  ;;  %v8099_v23 = vld [vmem:[#allocation138_spill] sm:$0xff] }
 0x2d9   : > { %v3207_v53 = vadd.f32 %v6711_v38, %v2823_v9  ;;  %v3208_v27 = vadd.f32 %v6711_v38, %v2824_v43  ;;  %v3209_v55 = vadd.f32 %v6711_v38, %v2825_v12  ;;  %v3210_v48 = vadd.f32 %v6711_v38, %v2826_v26  ;;  %v8094_v9 = vld [vmem:[#allocation33_spill] sm:$0xff]  ;;  %v6834_v43 = vpop.permute.xlu0 %2691  ;;  %v8100_v1 = vld [vmem:[#allocation135_spill] sm:$0xff] }
 0x2da   : > { %v3239_v15 = vadd.f32 %v6739_v50, %v2855_v6  ;;  %v3652_v8 = vadd.f32 %v3428_v42, %v3204_v56  ;;  %v3653_v16 = vadd.f32 %v3429_v25, %v3205_v21  ;;  %v3654_v46 = vadd.f32 %v3430_v13, %v3206_v33  ;;  %v8101_v29 = vld [vmem:[#allocation53_spill] sm:$0xff]  ;;  %v8102_v25 = vld [vmem:[#allocation55_spill] sm:$0xff]  ;;  %v3442_v33 = vld [vmem:[%s6466_s14 + $0x230] sm:$0xff] }
 0x2db   : > { %v3655_v0 = vadd.f32 %v3431_v17, %v3207_v53  ;;  %v3656_v38 = vadd.f32 %v3432_v63, %v3208_v27  ;;  %v3657_v31 = vadd.f32 %v3433_v11, %v3209_v55  ;;  %v3658_v3 = vadd.f32 %v3434_v62, %v3210_v48  ;;  %v8103_v17 = vld [vmem:[#allocation54_spill] sm:$0xff]  ;;  %v8104_v11 = vld [vmem:[#allocation56_spill] sm:$0xff]  ;;  %v8105_v56 = vld [vmem:[#allocation151_spill] sm:$0xff] }
 0x2dc   : > { %v3240_v30 = vadd.f32 %v6739_v50, %v2856_v34  ;;  %3876 = vst [vmem:[%s6498_s18 + $0x1c0] sm:$0xff] %v3652_v8  ;;  %3877 = vst [vmem:[%s6498_s18 + $0x1c8] sm:$0xff] %v3653_v16  ;;  %v3241_v28 = vadd.f32 %v6739_v50, %v2857_v35  ;;  %v3242_v20 = vadd.f32 %v6739_v50, %v2858_v60  ;;  %v8096_v34 = vld [vmem:[#allocation34_spill] sm:$0xff]  ;;  %v8097_v35 = vld [vmem:[#allocation36_spill] sm:$0xff]  ;;  %v6871_v27 = vpop.permute.xlu1 %2676 }
 0x2dd   : > { %3878 = vst [vmem:[%s6498_s18 + $0x1d0] sm:$0xff] %v3654_v46  ;;  %3879 = vst [vmem:[%s6498_s18 + $0x1d8] sm:$0xff] %v3655_v0  ;;  %v3243_v37 = vadd.f32 %v6739_v50, %v2859_v36  ;;  %v3244_v52 = vadd.f32 %v6739_v50, %v2860_v19  ;;  %v3245_v61 = vadd.f32 %v6739_v50, %v2861_v4  ;;  %v8095_v50 = vld [vmem:[#allocation35_spill] sm:$0xff]  ;;  %v3444_v53 = vld [vmem:[%s6466_s14 + $0x240] sm:$0xff] }
 0x2de   : > { %3880 = vst [vmem:[%s6498_s18 + $0x1e0] sm:$0xff] %v3656_v38  ;;  %3881 = vst [vmem:[%s6498_s18 + $0x1e8] sm:$0xff] %v3657_v31  ;;  %v3687_v51 = vadd.f32 %v3463_v22, %v3239_v15  ;;  %v3688_v49 = vadd.f32 %v3464_v58, %v3240_v30  ;;  %v2834_v14 = vmul.f32 %v6741_v2, %v8094_v9  ;;  %v8106_v55 = vld [vmem:[#allocation153_spill] sm:$0xff]  ;;  %v8107_v15 = vld [vmem:[#allocation143_spill] sm:$0xff] }
 0x2df   : > { %3882 = vst.msk [vmem:[%s6498_s18 + $0x1f0] sm:$0xff] %vm1968_vm0, %v3658_v3  ;;  %v3689_v12 = vadd.f32 %v3465_v5, %v3241_v28  ;;  %v3690_v41 = vadd.f32 %v3466_v32, %v3242_v20  ;;  %v3691_v26 = vadd.f32 %v3467_v57, %v3243_v37  ;;  %v3692_v24 = vadd.f32 %v3468_v47, %v3244_v52  ;;  %v3445_v16 = vld [vmem:[%s6466_s14 + $0x248] sm:$0xff]  ;;  %v3446_v46 = vld [vmem:[%s6466_s14 + $0x250] sm:$0xff]  ;;  %v3447_v0 = vld [vmem:[%s6466_s14 + $0x258] sm:$0xff]  ;;  %v6882_v5 = vpop.permute.xlu0 %3075 }
 0x2e0   : > { %v3693_v6 = vadd.f32 %v3469_v40, %v3245_v61  ;;  %3911 = vst [vmem:[%s6498_s18 + $0x2d8] sm:$0xff] %v3687_v51  ;;  %3912 = vst [vmem:[%s6498_s18 + $0x2e0] sm:$0xff] %v3688_v49  ;;  %v2835_v54 = vmul.f32 %v6741_v2, %v8095_v50  ;;  %v2836_v7 = vmul.f32 %v6741_v2, %v8096_v34  ;;  %v3448_v38 = vld [vmem:[%s6466_s14 + $0x260] sm:$0xff]  ;;  %v3477_v40 = vld [vmem:[%s6466_s14 + $0x348] sm:$0xff] }
 0x2e1   : > { %v2837_v42 = vmul.f32 %v6741_v2, %v8097_v35  ;;  %3913 = vst [vmem:[%s6498_s18 + $0x2e8] sm:$0xff] %v3689_v12  ;;  %3914 = vst [vmem:[%s6498_s18 + $0x2f0] sm:$0xff] %v3690_v41  ;;  %v2838_v60 = vmul.f32 %v6741_v2, %v8098_v59  ;;  %v2839_v36 = vmul.f32 %v6741_v2, %v8099_v23  ;;  %v3478_v51 = vld [vmem:[%s6466_s14 + $0x350] sm:$0xff]  ;;  %v3479_v49 = vld [vmem:[%s6466_s14 + $0x358] sm:$0xff] }
 0x2e2   : > { %3915 = vst [vmem:[%s6498_s18 + $0x2f8] sm:$0xff] %v3691_v26  ;;  %3916 = vst [vmem:[%s6498_s18 + $0x300] sm:$0xff] %v3692_v24  ;;  %v2840_v19 = vmul.f32 %v6741_v2, %v8100_v1  ;;  %v2869_v4 = vmul.f32 %v6768_v39, %v8101_v29  ;;  %v2870_v13 = vmul.f32 %v6768_v39, %v8102_v25  ;;  %v3443_v2 = vld [vmem:[%s6466_s14 + $0x238] sm:$0xff]  ;;  %v3480_v9 = vld [vmem:[%s6466_s14 + $0x360] sm:$0xff] }
 0x2e3   : > { %3917 = vst.msk [vmem:[%s6498_s18 + $0x308] sm:$0xff] %vm1968_vm0, %v3693_v6  ;;  %v2871_v63 = vmul.f32 %v6768_v39, %v8103_v17  ;;  %v2872_v62 = vmul.f32 %v6768_v39, %v8104_v11  ;;  %v2873_v21 = vmul.f32 %v6768_v39, %v8105_v56  ;;  %v2874_v48 = vmul.f32 %v6768_v39, %v8106_v55  ;;  %v3481_v12 = vld [vmem:[%s6466_s14 + $0x368] sm:$0xff]  ;;  %v3482_v41 = vld [vmem:[%s6466_s14 + $0x370] sm:$0xff]  ;;  %v3483_v26 = vld [vmem:[%s6466_s14 + $0x378] sm:$0xff]  ;;  %v6916_v1 = vpop.permute.xlu0 %2701 }
 0x2e4   : > { %v2875_v8 = vmul.f32 %v8107_v15, %v6768_v39  ;;  %v3218_v22 = vadd.f32 %v6770_v44, %v2834_v14  ;;  %v3219_v58 = vadd.f32 %v6770_v44, %v2835_v54  ;;  %v3220_v31 = vadd.f32 %v6770_v44, %v2836_v7  ;;  %v8108_v23 = vld [vmem:[#allocation41_spill] sm:$0xff]  ;;  %v8110_v17 = vld [vmem:[#allocation42_spill] sm:$0xff]  ;;  %v8111_v11 = vld [vmem:[#allocation44_spill] sm:$0xff] }
 0x2e5   : > { %v3221_v3 = vadd.f32 %v6770_v44, %v2837_v42  ;;  %v3222_v32 = vadd.f32 %v6770_v44, %v2838_v60  ;;  %v3223_v39 = vadd.f32 %v6770_v44, %v2839_v36  ;;  %v3224_v57 = vadd.f32 %v6770_v44, %v2840_v19  ;;  %v6895_v44 = vpop.permute.xlu1 %3060  ;;  %v8112_v56 = vld [vmem:[#allocation142_spill] sm:$0xff] }
 0x2e6   : > { %v3666_v47 = vadd.f32 %v3442_v33, %v3218_v22  ;;  %v3667_v30 = vadd.f32 %v3443_v2, %v3219_v58  ;;  %v3253_v28 = vadd.f32 %v6807_v18, %v2869_v4  ;;  %v3668_v20 = vadd.f32 %v3444_v53, %v3220_v31  ;;  %v8113_v33 = vld [vmem:[#allocation144_spill] sm:$0xff]  ;;  %v3456_v22 = vld [vmem:[%s6466_s14 + $0x2a0] sm:$0xff]  ;;  %v8119_v31 = vld [vmem:[#allocation157_spill] sm:$0xff] }
 0x2e7   : > { %v3669_v37 = vadd.f32 %v3445_v16, %v3221_v3  ;;  %v3670_v52 = vadd.f32 %v3446_v46, %v3222_v32  ;;  %v3671_v61 = vadd.f32 %v3447_v0, %v3223_v39  ;;  %v3672_v14 = vadd.f32 %v3448_v38, %v3224_v57  ;;  %v8114_v53 = vld [vmem:[#allocation140_spill] sm:$0xff]  ;;  %v8117_v46 = vld [vmem:[#allocation62_spill] sm:$0xff]  ;;  %v8120_v32 = vld [vmem:[#allocation159_spill] sm:$0xff] }
 0x2e8   : > { %3890 = vst [vmem:[%s6498_s18 + $0x230] sm:$0xff] %v3666_v47  ;;  %3891 = vst [vmem:[%s6498_s18 + $0x238] sm:$0xff] %v3667_v30  ;;  %v3254_v24 = vadd.f32 %v6807_v18, %v2870_v13  ;;  %v3255_v6 = vadd.f32 %v6807_v18, %v2871_v63  ;;  %v3256_v50 = vadd.f32 %v6807_v18, %v2872_v62  ;;  %v8118_v58 = vld [vmem:[#allocation64_spill] sm:$0xff]  ;;  %v3457_v47 = vld [vmem:[%s6466_s14 + $0x2a8] sm:$0xff] }
 0x2e9   : > { %3892 = vst [vmem:[%s6498_s18 + $0x240] sm:$0xff] %v3668_v20  ;;  %3893 = vst [vmem:[%s6498_s18 + $0x248] sm:$0xff] %v3669_v37  ;;  %v3257_v54 = vadd.f32 %v6807_v18, %v2873_v21  ;;  %v3258_v34 = vadd.f32 %v6807_v18, %v2874_v48  ;;  %v3259_v7 = vadd.f32 %v6807_v18, %v2875_v8  ;;  %v8109_v18 = vld [vmem:[#allocation43_spill] sm:$0xff]  ;;  %v6921_v13 = vpop.permute.xlu1 %2686  ;;  %v8115_v48 = vld [vmem:[#allocation61_spill] sm:$0xff] }
 0x2ea   : > { %3894 = vst [vmem:[%s6498_s18 + $0x250] sm:$0xff] %v3670_v52  ;;  %3895 = vst [vmem:[%s6498_s18 + $0x258] sm:$0xff] %v3671_v61  ;;  %v3701_v35 = vadd.f32 %v3477_v40, %v3253_v28  ;;  %v3702_v42 = vadd.f32 %v3478_v51, %v3254_v24  ;;  %v3703_v59 = vadd.f32 %v3479_v49, %v3255_v6  ;;  %v8116_v8 = vld [vmem:[#allocation63_spill] sm:$0xff]  ;;  %v3458_v30 = vld [vmem:[%s6466_s14 + $0x2b0] sm:$0xff] }
 0x2eb   : > { %3896 = vst.msk [vmem:[%s6498_s18 + $0x260] sm:$0xff] %vm1968_vm0, %v3672_v14  ;;  %v3704_v60 = vadd.f32 %v3480_v9, %v3256_v50  ;;  %v2848_v36 = vmul.f32 %v6809_v10, %v8108_v23  ;;  %v3705_v19 = vadd.f32 %v3481_v12, %v3257_v54  ;;  %v3706_v29 = vadd.f32 %v3482_v41, %v3258_v34  ;;  %v3459_v40 = vld [vmem:[%s6466_s14 + $0x2b8] sm:$0xff]  ;;  %v3460_v28 = vld [vmem:[%s6466_s14 + $0x2c0] sm:$0xff]  ;;  %v3461_v20 = vld [vmem:[%s6466_s14 + $0x2c8] sm:$0xff] }
 0x2ec   : > { %v3707_v4 = vadd.f32 %v3483_v26, %v3259_v7  ;;  %3925 = vst [vmem:[%s6498_s18 + $0x348] sm:$0xff] %v3701_v35  ;;  %v2849_v25 = vmul.f32 %v6809_v10, %v8109_v18  ;;  %3926 = vst [vmem:[%s6498_s18 + $0x350] sm:$0xff] %v3702_v42  ;;  %v2850_v63 = vmul.f32 %v6809_v10, %v8110_v17  ;;  %v3462_v37 = vld [vmem:[%s6466_s14 + $0x2d0] sm:$0xff]  ;;  %v6971_v26 = vpop.permute.xlu0 %3085  ;;  %v3491_v34 = vld [vmem:[%s6466_s14 + $0x3b8] sm:$0xff] }
 0x2ed   : > { %3927 = vst [vmem:[%s6498_s18 + $0x358] sm:$0xff] %v3703_v59  ;;  %3928 = vst [vmem:[%s6498_s18 + $0x360] sm:$0xff] %v3704_v60  ;;  %v2851_v62 = vmul.f32 %v6809_v10, %v8111_v11  ;;  %v2852_v21 = vmul.f32 %v6809_v10, %v8112_v56  ;;  %v2853_v2 = vmul.f32 %v6809_v10, %v8113_v33  ;;  %v6965_v9 = vpop.permute.xlu1 %3070  ;;  %v3492_v7 = vld [vmem:[%s6466_s14 + $0x3c0] sm:$0xff]  ;;  %v3493_v35 = vld [vmem:[%s6466_s14 + $0x3c8] sm:$0xff] }
 0x2ee   : > { %3929 = vst [vmem:[%s6498_s18 + $0x368] sm:$0xff] %v3705_v19  ;;  %3930 = vst [vmem:[%s6498_s18 + $0x370] sm:$0xff] %v3706_v29  ;;  %v2854_v55 = vmul.f32 %v6809_v10, %v8114_v53  ;;  %v2883_v15 = vmul.f32 %v6834_v43, %v8115_v48  ;;  %v2884_v16 = vmul.f32 %v6834_v43, %v8116_v8  ;;  %v8121_v10 = vld [vmem:[#allocation149_spill] sm:$0xff]  ;;  %v3494_v60 = vld [vmem:[%s6466_s14 + $0x3d0] sm:$0xff] }
 0x2ef   : > { %3931 = vst.msk [vmem:[%s6498_s18 + $0x378] sm:$0xff] %vm1968_vm0, %v3707_v4  ;;  %v2885_v0 = vmul.f32 %v6834_v43, %v8117_v46  ;;  %v2886_v38 = vmul.f32 %v6834_v43, %v8118_v58  ;;  %v2887_v3 = vmul.f32 %v6834_v43, %v8119_v31  ;;  %v2888_v39 = vmul.f32 %v6834_v43, %v8120_v32  ;;  %v3495_v23 = vld [vmem:[%s6466_s14 + $0x3d8] sm:$0xff]  ;;  %v3497_v29 = vld [vmem:[%s6466_s14 + $0x3e8] sm:$0xff] }
 0x2f0   : > { %v2889_v57 = vmul.f32 %v8121_v10, %v6834_v43  ;;  %v3232_v52 = vadd.f32 %v6836_v45, %v2848_v36  ;;  %v3233_v61 = vadd.f32 %v6836_v45, %v2849_v25  ;;  %v3234_v51 = vadd.f32 %v6836_v45, %v2850_v63  ;;  %v3496_v36 = vld [vmem:[%s6466_s14 + $0x3e0] sm:$0xff]  ;;  %v8122_v56 = vld [vmem:[#allocation49_spill] sm:$0xff]  ;;  %v7006_v58 = vpop.permute.xlu0 %2711 }
 0x2f1   : > { %v3235_v49 = vadd.f32 %v6836_v45, %v2851_v62  ;;  %v3236_v43 = vadd.f32 %v6836_v45, %v2852_v21  ;;  %v3237_v14 = vadd.f32 %v6836_v45, %v2853_v2  ;;  %v3238_v12 = vadd.f32 %v6836_v45, %v2854_v55  ;;  %v6996_v48 = vpop.permute.xlu1 %2696 }
 0x2f2   : > { %v3267_v41 = vadd.f32 %v6882_v5, %v2883_v15  ;;  %v3680_v24 = vadd.f32 %v3456_v22, %v3232_v52  ;;  %v3681_v6 = vadd.f32 %v3457_v47, %v3233_v61  ;;  %v3682_v50 = vadd.f32 %v3458_v30, %v3234_v51  ;;  %v8130_v30 = vld [vmem:[#allocation71_spill] sm:$0xff] }
 0x2f3   : > { %v3683_v54 = vadd.f32 %v3459_v40, %v3235_v49  ;;  %v3684_v42 = vadd.f32 %v3460_v28, %v3236_v43  ;;  %v3685_v59 = vadd.f32 %v3461_v20, %v3237_v14  ;;  %v3686_v45 = vadd.f32 %v3462_v37, %v3238_v12  ;;  %v8131_v28 = vld [vmem:[#allocation70_spill] sm:$0xff]  ;;  %v8132_v37 = vld [vmem:[#allocation72_spill] sm:$0xff]  ;;  %v8133_v61 = vld [vmem:[#allocation163_spill] sm:$0xff] }
 0x2f4   : > { %v3268_v19 = vadd.f32 %v6882_v5, %v2884_v16  ;;  %3904 = vst [vmem:[%s6498_s18 + $0x2a0] sm:$0xff] %v3680_v24  ;;  %3905 = vst [vmem:[%s6498_s18 + $0x2a8] sm:$0xff] %v3681_v6  ;;  %v3269_v4 = vadd.f32 %v6882_v5, %v2885_v0  ;;  %v3270_v18 = vadd.f32 %v6882_v5, %v2886_v38  ;;  %v8124_v16 = vld [vmem:[#allocation50_spill] sm:$0xff]  ;;  %v8125_v0 = vld [vmem:[#allocation52_spill] sm:$0xff] }
 0x2f5   : > { %3906 = vst [vmem:[%s6498_s18 + $0x2b0] sm:$0xff] %v3682_v50  ;;  %3907 = vst [vmem:[%s6498_s18 + $0x2b8] sm:$0xff] %v3683_v54  ;;  %v3271_v25 = vadd.f32 %v6882_v5, %v2887_v3  ;;  %v3272_v17 = vadd.f32 %v6882_v5, %v2888_v39  ;;  %v3273_v63 = vadd.f32 %v6882_v5, %v2889_v57  ;;  %v8123_v5 = vld [vmem:[#allocation51_spill] sm:$0xff]  ;;  %v8126_v38 = vld [vmem:[#allocation148_spill] sm:$0xff] }
 0x2f6   : > { %3908 = vst [vmem:[%s6498_s18 + $0x2c0] sm:$0xff] %v3684_v42  ;;  %3909 = vst [vmem:[%s6498_s18 + $0x2c8] sm:$0xff] %v3685_v59  ;;  %v3715_v11 = vadd.f32 %v3491_v34, %v3267_v41  ;;  %v3716_v62 = vadd.f32 %v3492_v7, %v3268_v19  ;;  %v2862_v21 = vmul.f32 %v6871_v27, %v8122_v56  ;;  %v8127_v3 = vld [vmem:[#allocation150_spill] sm:$0xff]  ;;  %v8129_v57 = vld [vmem:[#allocation69_spill] sm:$0xff]  ;;  %v7055_v56 = vpop.permute.xlu0 %3095 }
 0x2f7   : > { %3910 = vst.msk [vmem:[%s6498_s18 + $0x2d0] sm:$0xff] %vm1968_vm0, %v3686_v45  ;;  %v3717_v33 = vadd.f32 %v3493_v35, %v3269_v4  ;;  %v3718_v2 = vadd.f32 %v3494_v60, %v3270_v18  ;;  %v3719_v53 = vadd.f32 %v3495_v23, %v3271_v25  ;;  %v3720_v55 = vadd.f32 %v3496_v36, %v3272_v17  ;;  %v8128_v39 = vld [vmem:[#allocation146_spill] sm:$0xff]  ;;  %v3470_v49 = vld [vmem:[%s6466_s14 + $0x310] sm:$0xff]  ;;  %v8134_v14 = vld [vmem:[#allocation165_spill] sm:$0xff]  ;;  %v7050_v4 = vpop.permute.xlu1 %3080 }
 0x2f8   : > { %v3721_v15 = vadd.f32 %v3497_v29, %v3273_v63  ;;  %3939 = vst [vmem:[%s6498_s18 + $0x3b8] sm:$0xff] %v3715_v11  ;;  %3940 = vst [vmem:[%s6498_s18 + $0x3c0] sm:$0xff] %v3716_v62  ;;  %v2863_v8 = vmul.f32 %v6871_v27, %v8123_v5  ;;  %v2864_v46 = vmul.f32 %v6871_v27, %v8124_v16  ;;  %v3472_v43 = vld [vmem:[%s6466_s14 + $0x320] sm:$0xff]  ;;  %v8135_v41 = vld [vmem:[#allocation155_spill] sm:$0xff] }
 0x2f9   : > { %v2865_v22 = vmul.f32 %v6871_v27, %v8125_v0  ;;  %3941 = vst [vmem:[%s6498_s18 + $0x3c8] sm:$0xff] %v3717_v33  ;;  %3942 = vst [vmem:[%s6498_s18 + $0x3d0] sm:$0xff] %v3718_v2  ;;  %v2866_v31 = vmul.f32 %v6871_v27, %v8126_v38  ;;  %v2867_v32 = vmul.f32 %v6871_v27, %v8127_v3  ;;  %v3473_v6 = vld [vmem:[%s6466_s14 + $0x328] sm:$0xff]  ;;  %v3474_v50 = vld [vmem:[%s6466_s14 + $0x330] sm:$0xff] }
 0x2fa   : > { %3943 = vst [vmem:[%s6498_s18 + $0x3d8] sm:$0xff] %v3719_v53  ;;  %3944 = vst [vmem:[%s6498_s18 + $0x3e0] sm:$0xff] %v3720_v55  ;;  %v2868_v10 = vmul.f32 %v6871_v27, %v8128_v39  ;;  %v2897_v47 = vmul.f32 %v6916_v1, %v8129_v57  ;;  %v2898_v40 = vmul.f32 %v6916_v1, %v8130_v30  ;;  %v3471_v27 = vld [vmem:[%s6466_s14 + $0x318] sm:$0xff]  ;;  %v3476_v35 = vld [vmem:[%s6466_s14 + $0x340] sm:$0xff] }
 0x2fb   : > { %3945 = vst.msk [vmem:[%s6498_s18 + $0x3e8] sm:$0xff] %vm1968_vm0, %v3721_v15  ;;  %v2899_v20 = vmul.f32 %v6916_v1, %v8131_v28  ;;  %v2900_v52 = vmul.f32 %v6916_v1, %v8132_v37  ;;  %v2901_v51 = vmul.f32 %v6916_v1, %v8133_v61  ;;  %v2902_v12 = vmul.f32 %v6916_v1, %v8134_v14  ;;  %v3475_v54 = vld [vmem:[%s6466_s14 + $0x338] sm:$0xff]  ;;  %v3505_v19 = vld [vmem:[%s6466_s14 + $0x428] sm:$0xff]  ;;  %v3506_v11 = vld [vmem:[%s6466_s14 + $0x430] sm:$0xff] }
 0x2fc   : > { %v2903_v24 = vmul.f32 %v8135_v41, %v6916_v1  ;;  %v3246_v34 = vadd.f32 %v6895_v44, %v2862_v21  ;;  %v3247_v7 = vadd.f32 %v6895_v44, %v2863_v8  ;;  %v3248_v42 = vadd.f32 %v6895_v44, %v2864_v46  ;;  %v3508_v62 = vld [vmem:[%s6466_s14 + $0x440] sm:$0xff]  ;;  %v3509_v33 = vld [vmem:[%s6466_s14 + $0x448] sm:$0xff]  ;;  %v3510_v2 = vld [vmem:[%s6466_s14 + $0x450] sm:$0xff] }
 0x2fd   : > { %v3249_v59 = vadd.f32 %v6895_v44, %v2865_v22  ;;  %v3250_v45 = vadd.f32 %v6895_v44, %v2866_v31  ;;  %v3251_v60 = vadd.f32 %v6895_v44, %v2867_v32  ;;  %v3252_v1 = vadd.f32 %v6895_v44, %v2868_v10  ;;  %v3507_v44 = vld [vmem:[%s6466_s14 + $0x438] sm:$0xff]  ;;  %v8139_v28 = vld [vmem:[#allocation60_spill] sm:$0xff]  ;;  %v8140_v37 = vld [vmem:[#allocation154_spill] sm:$0xff] }
 0x2fe   : > { %v3694_v23 = vadd.f32 %v3470_v49, %v3246_v34  ;;  %v3695_v36 = vadd.f32 %v3471_v27, %v3247_v7  ;;  %v3281_v29 = vadd.f32 %v6971_v26, %v2897_v47  ;;  %v3696_v18 = vadd.f32 %v3472_v43, %v3248_v42  ;;  %v3511_v53 = vld [vmem:[%s6466_s14 + $0x458] sm:$0xff]  ;;  %v8137_v47 = vld [vmem:[#allocation59_spill] sm:$0xff]  ;;  %v8141_v61 = vld [vmem:[#allocation156_spill] sm:$0xff]  ;;  %v7090_v49 = vpop.permute.xlu1 %2706  ;;  %v7105_v34 = vpop.permute.xlu0 %2721 }
 0x2ff   : > { %v3697_v25 = vadd.f32 %v3473_v6, %v3249_v59  ;;  %v3698_v17 = vadd.f32 %v3474_v50, %v3250_v45  ;;  %v3699_v63 = vadd.f32 %v3475_v54, %v3251_v60  ;;  %v3700_v21 = vadd.f32 %v3476_v35, %v3252_v1  ;;  %v8136_v3 = vld [vmem:[#allocation57_spill] sm:$0xff]  ;;  %v8142_v27 = vld [vmem:[#allocation152_spill] sm:$0xff]  ;;  %v8144_v41 = vld [vmem:[#allocation79_spill] sm:$0xff] }
 0x300   : > { %3918 = vst [vmem:[%s6498_s18 + $0x310] sm:$0xff] %v3694_v23  ;;  %3919 = vst [vmem:[%s6498_s18 + $0x318] sm:$0xff] %v3695_v36  ;;  %v3282_v55 = vadd.f32 %v6971_v26, %v2898_v40  ;;  %v3283_v15 = vadd.f32 %v6971_v26, %v2899_v20  ;;  %v3284_v5 = vadd.f32 %v6971_v26, %v2900_v52  ;;  %v8143_v14 = vld [vmem:[#allocation77_spill] sm:$0xff]  ;;  %v8145_v6 = vld [vmem:[#allocation78_spill] sm:$0xff] }
 0x301   : > { %3920 = vst [vmem:[%s6498_s18 + $0x320] sm:$0xff] %v3696_v18  ;;  %3921 = vst [vmem:[%s6498_s18 + $0x328] sm:$0xff] %v3697_v25  ;;  %v3285_v8 = vadd.f32 %v6971_v26, %v2901_v51  ;;  %v3286_v16 = vadd.f32 %v6971_v26, %v2902_v12  ;;  %v3287_v46 = vadd.f32 %v6971_v26, %v2903_v24  ;;  %v8138_v26 = vld [vmem:[#allocation58_spill] sm:$0xff]  ;;  %v8146_v7 = vld [vmem:[#allocation80_spill] sm:$0xff] }
 0x302   : > { %3922 = vst [vmem:[%s6498_s18 + $0x330] sm:$0xff] %v3698_v17  ;;  %3923 = vst [vmem:[%s6498_s18 + $0x338] sm:$0xff] %v3699_v63  ;;  %v3729_v0 = vadd.f32 %v3505_v19, %v3281_v29  ;;  %v3730_v22 = vadd.f32 %v3506_v11, %v3282_v55  ;;  %v3731_v38 = vadd.f32 %v3507_v44, %v3283_v15  ;;  %v3484_v54 = vld [vmem:[%s6466_s14 + $0x380] sm:$0xff]  ;;  %v8147_v42 = vld [vmem:[#allocation169_spill] sm:$0xff] }
 0x303   : > { %3924 = vst.msk [vmem:[%s6498_s18 + $0x340] sm:$0xff] %vm1968_vm0, %v3700_v21  ;;  %v3732_v31 = vadd.f32 %v3508_v62, %v3284_v5  ;;  %v2876_v32 = vmul.f32 %v6921_v13, %v8136_v3  ;;  %v3733_v39 = vadd.f32 %v3509_v33, %v3285_v8  ;;  %v3734_v10 = vadd.f32 %v3510_v2, %v3286_v16  ;;  %v8148_v45 = vld [vmem:[#allocation171_spill] sm:$0xff]  ;;  %v8149_v60 = vld [vmem:[#allocation161_spill] sm:$0xff]  ;;  %v3486_v36 = vld [vmem:[%s6466_s14 + $0x390] sm:$0xff] }
 0x304   : > { %v3735_v57 = vadd.f32 %v3511_v53, %v3287_v46  ;;  %3953 = vst [vmem:[%s6498_s18 + $0x428] sm:$0xff] %v3729_v0  ;;  %v2877_v30 = vmul.f32 %v6921_v13, %v8137_v47  ;;  %3954 = vst [vmem:[%s6498_s18 + $0x430] sm:$0xff] %v3730_v22  ;;  %v2878_v40 = vmul.f32 %v6921_v13, %v8138_v26  ;;  %v3485_v23 = vld [vmem:[%s6466_s14 + $0x388] sm:$0xff]  ;;  %v3487_v19 = vld [vmem:[%s6466_s14 + $0x398] sm:$0xff]  ;;  %v7147_v26 = vpop.permute.xlu0 %3105 }
 0x305   : > { %3955 = vst [vmem:[%s6498_s18 + $0x438] sm:$0xff] %v3731_v38  ;;  %3956 = vst [vmem:[%s6498_s18 + $0x440] sm:$0xff] %v3732_v31  ;;  %v2879_v20 = vmul.f32 %v6921_v13, %v8139_v28  ;;  %v2880_v52 = vmul.f32 %v6921_v13, %v8140_v37  ;;  %v2881_v51 = vmul.f32 %v6921_v13, %v8141_v61  ;;  %v3488_v29 = vld [vmem:[%s6466_s14 + $0x3a0] sm:$0xff]  ;;  %v3489_v18 = vld [vmem:[%s6466_s14 + $0x3a8] sm:$0xff] }
 0x306   : > { %3957 = vst [vmem:[%s6498_s18 + $0x448] sm:$0xff] %v3733_v39  ;;  %3958 = vst [vmem:[%s6498_s18 + $0x450] sm:$0xff] %v3734_v10  ;;  %v2882_v43 = vmul.f32 %v6921_v13, %v8142_v27  ;;  %v2911_v12 = vmul.f32 %v7006_v58, %v8143_v14  ;;  %v2912_v24 = vmul.f32 %v7006_v58, %v8144_v41  ;;  %v3490_v25 = vld [vmem:[%s6466_s14 + $0x3b0] sm:$0xff]  ;;  %v3519_v5 = vld [vmem:[%s6466_s14 + $0x498] sm:$0xff] }
 0x307   : > { %3959 = vst.msk [vmem:[%s6498_s18 + $0x458] sm:$0xff] %vm1968_vm0, %v3735_v57  ;;  %v2913_v50 = vmul.f32 %v7006_v58, %v8145_v6  ;;  %v2914_v35 = vmul.f32 %v7006_v58, %v8146_v7  ;;  %v2915_v59 = vmul.f32 %v7006_v58, %v8147_v42  ;;  %v2916_v13 = vmul.f32 %v7006_v58, %v8148_v45  ;;  %v3520_v8 = vld [vmem:[%s6466_s14 + $0x4a0] sm:$0xff]  ;;  %v3521_v16 = vld [vmem:[%s6466_s14 + $0x4a8] sm:$0xff]  ;;  %v3522_v38 = vld [vmem:[%s6466_s14 + $0x4b0] sm:$0xff] }
 0x308   : > { %v2917_v1 = vmul.f32 %v8149_v60, %v7006_v58  ;;  %v3260_v17 = vadd.f32 %v6965_v9, %v2876_v32  ;;  %v3261_v63 = vadd.f32 %v6965_v9, %v2877_v30  ;;  %v3262_v11 = vadd.f32 %v6965_v9, %v2878_v40  ;;  %v3524_v31 = vld [vmem:[%s6466_s14 + $0x4c0] sm:$0xff]  ;;  %v7136_v32 = vpop.permute.xlu1 %3090  ;;  %v3525_v39 = vld [vmem:[%s6466_s14 + $0x4c8] sm:$0xff]  ;;  %v8150_v37 = vld [vmem:[#allocation65_spill] sm:$0xff] }
 0x309   : > { %v3263_v44 = vadd.f32 %v6965_v9, %v2879_v20  ;;  %v3264_v58 = vadd.f32 %v6965_v9, %v2880_v52  ;;  %v3265_v62 = vadd.f32 %v6965_v9, %v2881_v51  ;;  %v3266_v21 = vadd.f32 %v6965_v9, %v2882_v43  ;;  %v3523_v9 = vld [vmem:[%s6466_s14 + $0x4b8] sm:$0xff]  ;;  %v8153_v6 = vld [vmem:[#allocation68_spill] sm:$0xff] }
 0x30a   : > { %v3295_v33 = vadd.f32 %v7055_v56, %v2911_v12  ;;  %v3708_v2 = vadd.f32 %v3484_v54, %v3260_v17  ;;  %v3709_v53 = vadd.f32 %v3485_v23, %v3261_v63  ;;  %v3710_v55 = vadd.f32 %v3486_v36, %v3262_v11  ;;  %v8151_v12 = vld [vmem:[#allocation67_spill] sm:$0xff]  ;;  %v8154_v54 = vld [vmem:[#allocation160_spill] sm:$0xff]  ;;  %v8159_v36 = vld [vmem:[#allocation86_spill] sm:$0xff] }
 0x30b   : > { %v3711_v15 = vadd.f32 %v3487_v19, %v3263_v44  ;;  %v3712_v46 = vadd.f32 %v3488_v29, %v3264_v58  ;;  %v3713_v0 = vadd.f32 %v3489_v18, %v3265_v62  ;;  %v3714_v22 = vadd.f32 %v3490_v25, %v3266_v21  ;;  %v8160_v29 = vld [vmem:[#allocation88_spill] sm:$0xff]  ;;  %v8161_v25 = vld [vmem:[#allocation175_spill] sm:$0xff]  ;;  %v3500_v11 = vld [vmem:[%s6466_s14 + $0x400] sm:$0xff] }
 0x30c   : > { %v3296_v3 = vadd.f32 %v7055_v56, %v2912_v24  ;;  %3932 = vst [vmem:[%s6498_s18 + $0x380] sm:$0xff] %v3708_v2  ;;  %3933 = vst [vmem:[%s6498_s18 + $0x388] sm:$0xff] %v3709_v53  ;;  %v3297_v10 = vadd.f32 %v7055_v56, %v2913_v50  ;;  %v3298_v57 = vadd.f32 %v7055_v56, %v2914_v35  ;;  %v8152_v24 = vld [vmem:[#allocation66_spill] sm:$0xff]  ;;  %v3498_v63 = vld [vmem:[%s6466_s14 + $0x3f0] sm:$0xff]  ;;  %v7189_v44 = vpop.permute.xlu1 %2716 }
 0x30d   : > { %3934 = vst [vmem:[%s6498_s18 + $0x390] sm:$0xff] %v3710_v55  ;;  %3935 = vst [vmem:[%s6498_s18 + $0x398] sm:$0xff] %v3711_v15  ;;  %v3299_v47 = vadd.f32 %v7055_v56, %v2915_v59  ;;  %v3300_v30 = vadd.f32 %v7055_v56, %v2916_v13  ;;  %v3301_v40 = vadd.f32 %v7055_v56, %v2917_v1  ;;  %v8155_v35 = vld [vmem:[#allocation162_spill] sm:$0xff]  ;;  %v8157_v13 = vld [vmem:[#allocation85_spill] sm:$0xff] }
 0x30e   : > { %3936 = vst [vmem:[%s6498_s18 + $0x3a0] sm:$0xff] %v3712_v46  ;;  %3937 = vst [vmem:[%s6498_s18 + $0x3a8] sm:$0xff] %v3713_v0  ;;  %v3743_v28 = vadd.f32 %v3519_v5, %v3295_v33  ;;  %v3744_v20 = vadd.f32 %v3520_v8, %v3296_v3  ;;  %v2890_v52 = vmul.f32 %v6996_v48, %v8150_v37  ;;  %v8156_v59 = vld [vmem:[#allocation158_spill] sm:$0xff]  ;;  %v8158_v1 = vld [vmem:[#allocation87_spill] sm:$0xff]  ;;  %v7200_v8 = vpop.permute.xlu0 %2731 }
 0x30f   : > { %3938 = vst.msk [vmem:[%s6498_s18 + $0x3b0] sm:$0xff] %vm1968_vm0, %v3714_v22  ;;  %v3745_v61 = vadd.f32 %v3521_v16, %v3297_v10  ;;  %v3746_v51 = vadd.f32 %v3522_v38, %v3298_v57  ;;  %v3747_v27 = vadd.f32 %v3523_v9, %v3299_v47  ;;  %v3748_v43 = vadd.f32 %v3524_v31, %v3300_v30  ;;  %v8162_v58 = vld [vmem:[#allocation177_spill] sm:$0xff]  ;;  %v8163_v21 = vld [vmem:[#allocation167_spill] sm:$0xff]  ;;  %v3502_v53 = vld [vmem:[%s6466_s14 + $0x410] sm:$0xff] }
 0x310   : > { %v3749_v14 = vadd.f32 %v3525_v39, %v3301_v40  ;;  %3967 = vst [vmem:[%s6498_s18 + $0x498] sm:$0xff] %v3743_v28  ;;  %3968 = vst [vmem:[%s6498_s18 + $0x4a0] sm:$0xff] %v3744_v20  ;;  %v2891_v41 = vmul.f32 %v6996_v48, %v8151_v12  ;;  %v2892_v56 = vmul.f32 %v6996_v48, %v8152_v24  ;;  %v3501_v2 = vld [vmem:[%s6466_s14 + $0x408] sm:$0xff]  ;;  %v3503_v55 = vld [vmem:[%s6466_s14 + $0x418] sm:$0xff] }
 0x311   : > { %v2893_v50 = vmul.f32 %v6996_v48, %v8153_v6  ;;  %3969 = vst [vmem:[%s6498_s18 + $0x4a8] sm:$0xff] %v3745_v61  ;;  %3970 = vst [vmem:[%s6498_s18 + $0x4b0] sm:$0xff] %v3746_v51  ;;  %v2894_v7 = vmul.f32 %v6996_v48, %v8154_v54  ;;  %v2895_v42 = vmul.f32 %v6996_v48, %v8155_v35  ;;  %v3504_v16 = vld [vmem:[%s6466_s14 + $0x420] sm:$0xff]  ;;  %v3533_v3 = vld [vmem:[%s6466_s14 + $0x508] sm:$0xff] }
 0x312   : > { %3971 = vst [vmem:[%s6498_s18 + $0x4b8] sm:$0xff] %v3747_v27  ;;  %3972 = vst [vmem:[%s6498_s18 + $0x4c0] sm:$0xff] %v3748_v43  ;;  %v2896_v45 = vmul.f32 %v6996_v48, %v8156_v59  ;;  %v2925_v60 = vmul.f32 %v7105_v34, %v8157_v13  ;;  %v2926_v23 = vmul.f32 %v7105_v34, %v8158_v1  ;;  %v3499_v48 = vld [vmem:[%s6466_s14 + $0x3f8] sm:$0xff]  ;;  %v3534_v40 = vld [vmem:[%s6466_s14 + $0x510] sm:$0xff] }
 0x313   : > { %3973 = vst.msk [vmem:[%s6498_s18 + $0x4c8] sm:$0xff] %vm1968_vm0, %v3749_v14  ;;  %v2927_v19 = vmul.f32 %v7105_v34, %v8159_v36  ;;  %v2928_v18 = vmul.f32 %v7105_v34, %v8160_v29  ;;  %v2929_v17 = vmul.f32 %v7105_v34, %v8161_v25  ;;  %v2930_v62 = vmul.f32 %v7105_v34, %v8162_v58  ;;  %v3535_v28 = vld [vmem:[%s6466_s14 + $0x518] sm:$0xff]  ;;  %v3536_v20 = vld [vmem:[%s6466_s14 + $0x520] sm:$0xff]  ;;  %v8165_v13 = vld [vmem:[#allocation75_spill] sm:$0xff] }
 0x314   : > { %v2931_v33 = vmul.f32 %v8163_v21, %v7105_v34  ;;  %v3274_v15 = vadd.f32 %v7050_v4, %v2890_v52  ;;  %v3275_v5 = vadd.f32 %v7050_v4, %v2891_v41  ;;  %v3276_v46 = vadd.f32 %v7050_v4, %v2892_v56  ;;  %v3538_v52 = vld [vmem:[%s6466_s14 + $0x530] sm:$0xff]  ;;  %v3539_v61 = vld [vmem:[%s6466_s14 + $0x538] sm:$0xff]  ;;  %v7228_v56 = vpop.permute.xlu1 %3100  ;;  %v8166_v1 = vld [vmem:[#allocation74_spill] sm:$0xff] }
 0x315   : > { %v3277_v0 = vadd.f32 %v7050_v4, %v2893_v50  ;;  %v3278_v34 = vadd.f32 %v7050_v4, %v2894_v7  ;;  %v3279_v22 = vadd.f32 %v7050_v4, %v2895_v42  ;;  %v3280_v38 = vadd.f32 %v7050_v4, %v2896_v45  ;;  %v3537_v4 = vld [vmem:[%s6466_s14 + $0x528] sm:$0xff]  ;;  %v8164_v7 = vld [vmem:[#allocation73_spill] sm:$0xff]  ;;  %v7234_v42 = vpop.permute.xlu0 %3115  ;;  %v8167_v36 = vld [vmem:[#allocation76_spill] sm:$0xff] }
 0x316   : > { %v3722_v9 = vadd.f32 %v3498_v63, %v3274_v15  ;;  %v3723_v31 = vadd.f32 %v3499_v48, %v3275_v5  ;;  %v3309_v39 = vadd.f32 %v7147_v26, %v2925_v60  ;;  %v3724_v10 = vadd.f32 %v3500_v11, %v3276_v46  ;;  %v8168_v29 = vld [vmem:[#allocation166_spill] sm:$0xff]  ;;  %v8169_v25 = vld [vmem:[#allocation168_spill] sm:$0xff]  ;;  %v8171_v11 = vld [vmem:[#allocation93_spill] sm:$0xff] }
 0x317   : > { %v3725_v57 = vadd.f32 %v3501_v2, %v3277_v0  ;;  %v3726_v47 = vadd.f32 %v3502_v53, %v3278_v34  ;;  %v3727_v30 = vadd.f32 %v3503_v55, %v3279_v22  ;;  %v3728_v37 = vadd.f32 %v3504_v16, %v3280_v38  ;;  %v8170_v63 = vld [vmem:[#allocation164_spill] sm:$0xff]  ;;  %v3512_v53 = vld [vmem:[%s6466_s14 + $0x460] sm:$0xff]  ;;  %v8175_v5 = vld [vmem:[#allocation181_spill] sm:$0xff] }
 0x318   : > { %3946 = vst [vmem:[%s6498_s18 + $0x3f0] sm:$0xff] %v3722_v9  ;;  %3947 = vst [vmem:[%s6498_s18 + $0x3f8] sm:$0xff] %v3723_v31  ;;  %v3310_v51 = vadd.f32 %v7147_v26, %v2926_v23  ;;  %v3311_v27 = vadd.f32 %v7147_v26, %v2927_v19  ;;  %v3312_v43 = vadd.f32 %v7147_v26, %v2928_v18  ;;  %v8174_v55 = vld [vmem:[#allocation96_spill] sm:$0xff]  ;;  %v8176_v46 = vld [vmem:[#allocation183_spill] sm:$0xff] }
 0x319   : > { %3948 = vst [vmem:[%s6498_s18 + $0x400] sm:$0xff] %v3724_v10  ;;  %3949 = vst [vmem:[%s6498_s18 + $0x408] sm:$0xff] %v3725_v57  ;;  %v3313_v14 = vadd.f32 %v7147_v26, %v2929_v17  ;;  %v3314_v12 = vadd.f32 %v7147_v26, %v2930_v62  ;;  %v3315_v41 = vadd.f32 %v7147_v26, %v2931_v33  ;;  %v8172_v62 = vld [vmem:[#allocation95_spill] sm:$0xff]  ;;  %v8173_v33 = vld [vmem:[#allocation94_spill] sm:$0xff] }
 0x31a   : > { %3950 = vst [vmem:[%s6498_s18 + $0x410] sm:$0xff] %v3726_v47  ;;  %3951 = vst [vmem:[%s6498_s18 + $0x418] sm:$0xff] %v3727_v30  ;;  %v3757_v24 = vadd.f32 %v3533_v3, %v3309_v39  ;;  %v3758_v6 = vadd.f32 %v3534_v40, %v3310_v51  ;;  %v3759_v50 = vadd.f32 %v3535_v28, %v3311_v27  ;;  %v3513_v22 = vld [vmem:[%s6466_s14 + $0x468] sm:$0xff]  ;;  %v3514_v38 = vld [vmem:[%s6466_s14 + $0x470] sm:$0xff]  ;;  %v7281_v40 = vpop.permute.xlu1 %2726 }
 0x31b   : > { %3952 = vst.msk [vmem:[%s6498_s18 + $0x420] sm:$0xff] %vm1968_vm0, %v3728_v37  ;;  %v3760_v54 = vadd.f32 %v3536_v20, %v3312_v43  ;;  %v2904_v35 = vmul.f32 %v7090_v49, %v8164_v7  ;;  %v3761_v59 = vadd.f32 %v3537_v4, %v3313_v14  ;;  %v3762_v45 = vadd.f32 %v3538_v52, %v3314_v12  ;;  %v3515_v9 = vld [vmem:[%s6466_s14 + $0x478] sm:$0xff]  ;;  %v3516_v31 = vld [vmem:[%s6466_s14 + $0x480] sm:$0xff]  ;;  %v3517_v3 = vld [vmem:[%s6466_s14 + $0x488] sm:$0xff]  ;;  %v2742_v4 = vpop.permute.xlu0 %2741 }
 0x31c   : > { %v3763_v26 = vadd.f32 %v3539_v61, %v3315_v41  ;;  %3981 = vst [vmem:[%s6498_s18 + $0x508] sm:$0xff] %v3757_v24  ;;  %v2905_v60 = vmul.f32 %v7090_v49, %v8165_v13  ;;  %3982 = vst [vmem:[%s6498_s18 + $0x510] sm:$0xff] %v3758_v6  ;;  %v2906_v23 = vmul.f32 %v7090_v49, %v8166_v1  ;;  %v3518_v39 = vld [vmem:[%s6466_s14 + $0x490] sm:$0xff]  ;;  %v3547_v43 = vld [vmem:[%s6466_s14 + $0x578] sm:$0xff] }
 0x31d   : > { %3983 = vst [vmem:[%s6498_s18 + $0x518] sm:$0xff] %v3759_v50  ;;  %3984 = vst [vmem:[%s6498_s18 + $0x520] sm:$0xff] %v3760_v54  ;;  %v2907_v19 = vmul.f32 %v7090_v49, %v8167_v36  ;;  %v2908_v18 = vmul.f32 %v7090_v49, %v8168_v29  ;;  %v2909_v17 = vmul.f32 %v7090_v49, %v8169_v25  ;;  %v3548_v14 = vld [vmem:[%s6466_s14 + $0x580] sm:$0xff]  ;;  %v3549_v12 = vld [vmem:[%s6466_s14 + $0x588] sm:$0xff] }
 0x31e   : > { %3985 = vst [vmem:[%s6498_s18 + $0x528] sm:$0xff] %v3761_v59  ;;  %3986 = vst [vmem:[%s6498_s18 + $0x530] sm:$0xff] %v3762_v45  ;;  %v2910_v48 = vmul.f32 %v7090_v49, %v8170_v63  ;;  %v2939_v58 = vmul.f32 %v7200_v8, %v8171_v11  ;;  %v2940_v21 = vmul.f32 %v7200_v8, %v8172_v62  ;;  %v8177_v49 = vld [vmem:[#allocation173_spill] sm:$0xff]  ;;  %v3550_v6 = vld [vmem:[%s6466_s14 + $0x590] sm:$0xff]  ;;  %v7310_v63 = vpop.permute.xlu1 %3110 }
 0x31f   : > { %3987 = vst.msk [vmem:[%s6498_s18 + $0x538] sm:$0xff] %vm1968_vm0, %v3763_v26  ;;  %v2941_v2 = vmul.f32 %v7200_v8, %v8173_v33  ;;  %v2942_v15 = vmul.f32 %v7200_v8, %v8174_v55  ;;  %v2943_v16 = vmul.f32 %v7200_v8, %v8175_v5  ;;  %v2944_v0 = vmul.f32 %v7200_v8, %v8176_v46  ;;  %v3551_v50 = vld [vmem:[%s6466_s14 + $0x598] sm:$0xff]  ;;  %v3552_v54 = vld [vmem:[%s6466_s14 + $0x5a0] sm:$0xff] }
 0x320   : > { %v2945_v34 = vmul.f32 %v8177_v49, %v7200_v8  ;;  %v3288_v10 = vadd.f32 %v7136_v32, %v2904_v35  ;;  %v3289_v57 = vadd.f32 %v7136_v32, %v2905_v60  ;;  %v3290_v47 = vadd.f32 %v7136_v32, %v2906_v23  ;;  %v3553_v35 = vld [vmem:[%s6466_s14 + $0x5a8] sm:$0xff]  ;;  %v8178_v36 = vld [vmem:[#allocation81_spill] sm:$0xff] }
 0x321   : > { %v3291_v30 = vadd.f32 %v7136_v32, %v2907_v19  ;;  %v3292_v8 = vadd.f32 %v7136_v32, %v2908_v18  ;;  %v3293_v28 = vadd.f32 %v7136_v32, %v2909_v17  ;;  %v3294_v20 = vadd.f32 %v7136_v32, %v2910_v48 }
 0x322   : > { %v3323_v37 = vadd.f32 %v7234_v42, %v2939_v58  ;;  %v3736_v52 = vadd.f32 %v3512_v53, %v3288_v10  ;;  %v3737_v61 = vadd.f32 %v3513_v22, %v3289_v57  ;;  %v3738_v51 = vadd.f32 %v3514_v38, %v3290_v47  ;;  %v8180_v58 = vld [vmem:[#allocation82_spill] sm:$0xff]  ;;  %v8182_v53 = vld [vmem:[#allocation172_spill] sm:$0xff]  ;;  %v3527_v47 = vld [vmem:[%s6466_s14 + $0x4d8] sm:$0xff] }
 0x323   : > { %v3739_v27 = vadd.f32 %v3515_v9, %v3291_v30  ;;  %v3740_v41 = vadd.f32 %v3516_v31, %v3292_v8  ;;  %v3741_v24 = vadd.f32 %v3517_v3, %v3293_v28  ;;  %v3742_v32 = vadd.f32 %v3518_v39, %v3294_v20  ;;  %v8187_v38 = vld [vmem:[#allocation102_spill] sm:$0xff]  ;;  %v8188_v31 = vld [vmem:[#allocation104_spill] sm:$0xff]  ;;  %v8189_v39 = vld [vmem:[#allocation187_spill] sm:$0xff] }
 0x324   : > { %v3324_v7 = vadd.f32 %v7234_v42, %v2940_v21  ;;  %3960 = vst [vmem:[%s6498_s18 + $0x460] sm:$0xff] %v3736_v52  ;;  %3961 = vst [vmem:[%s6498_s18 + $0x468] sm:$0xff] %v3737_v61  ;;  %v3325_v59 = vadd.f32 %v7234_v42, %v2941_v2  ;;  %v3326_v45 = vadd.f32 %v7234_v42, %v2942_v15  ;;  %v8181_v21 = vld [vmem:[#allocation84_spill] sm:$0xff]  ;;  %v3126_v2 = vpop.permute.xlu0 %3125  ;;  %v8183_v15 = vld [vmem:[#allocation174_spill] sm:$0xff] }
 0x325   : > { %3962 = vst [vmem:[%s6498_s18 + $0x470] sm:$0xff] %v3738_v51  ;;  %3963 = vst [vmem:[%s6498_s18 + $0x478] sm:$0xff] %v3739_v27  ;;  %v3327_v26 = vadd.f32 %v7234_v42, %v2943_v16  ;;  %v3328_v13 = vadd.f32 %v7234_v42, %v2944_v0  ;;  %v3329_v60 = vadd.f32 %v7234_v42, %v2945_v34  ;;  %v8179_v42 = vld [vmem:[#allocation83_spill] sm:$0xff]  ;;  %v8184_v16 = vld [vmem:[#allocation170_spill] sm:$0xff] }
 0x326   : > { %3964 = vst [vmem:[%s6498_s18 + $0x480] sm:$0xff] %v3740_v41  ;;  %3965 = vst [vmem:[%s6498_s18 + $0x488] sm:$0xff] %v3741_v24  ;;  %v3771_v1 = vadd.f32 %v3547_v43, %v3323_v37  ;;  %v3772_v23 = vadd.f32 %v3548_v14, %v3324_v7  ;;  %v2918_v19 = vmul.f32 %v7189_v44, %v8178_v36  ;;  %v8185_v0 = vld [vmem:[#allocation101_spill] sm:$0xff]  ;;  %v8186_v34 = vld [vmem:[#allocation103_spill] sm:$0xff]  ;;  %v7354_v7 = vpop.permute.xlu1 %2736 }
 0x327   : > { %3966 = vst.msk [vmem:[%s6498_s18 + $0x490] sm:$0xff] %vm1968_vm0, %v3742_v32  ;;  %v3773_v29 = vadd.f32 %v3549_v12, %v3325_v59  ;;  %v3774_v18 = vadd.f32 %v3550_v6, %v3326_v45  ;;  %v3775_v25 = vadd.f32 %v3551_v50, %v3327_v26  ;;  %v3776_v17 = vadd.f32 %v3552_v54, %v3328_v13  ;;  %v3526_v57 = vld [vmem:[%s6466_s14 + $0x4d0] sm:$0xff]  ;;  %v3528_v30 = vld [vmem:[%s6466_s14 + $0x4e0] sm:$0xff]  ;;  %v8190_v8 = vld [vmem:[#allocation189_spill] sm:$0xff] }
 0x328   : > { %v3777_v48 = vadd.f32 %v3553_v35, %v3329_v60  ;;  %3995 = vst [vmem:[%s6498_s18 + $0x578] sm:$0xff] %v3771_v1  ;;  %3996 = vst [vmem:[%s6498_s18 + $0x580] sm:$0xff] %v3772_v23  ;;  %v2919_v11 = vmul.f32 %v7189_v44, %v8179_v42  ;;  %v2920_v62 = vmul.f32 %v7189_v44, %v8180_v58  ;;  %v3529_v37 = vld [vmem:[%s6466_s14 + $0x4e8] sm:$0xff]  ;;  %v3530_v52 = vld [vmem:[%s6466_s14 + $0x4f0] sm:$0xff]  ;;  %v2752_v1 = vpop.permute.xlu0 %2751 }
 0x329   : > { %v2921_v33 = vmul.f32 %v7189_v44, %v8181_v21  ;;  %3997 = vst [vmem:[%s6498_s18 + $0x588] sm:$0xff] %v3773_v29  ;;  %3998 = vst [vmem:[%s6498_s18 + $0x590] sm:$0xff] %v3774_v18  ;;  %v2922_v55 = vmul.f32 %v7189_v44, %v8182_v53  ;;  %v2923_v5 = vmul.f32 %v7189_v44, %v8183_v15  ;;  %v3531_v61 = vld [vmem:[%s6466_s14 + $0x4f8] sm:$0xff]  ;;  %v3532_v43 = vld [vmem:[%s6466_s14 + $0x500] sm:$0xff] }
 0x32a   : > { %3999 = vst [vmem:[%s6498_s18 + $0x598] sm:$0xff] %v3775_v25  ;;  %4000 = vst [vmem:[%s6498_s18 + $0x5a0] sm:$0xff] %v3776_v17  ;;  %v2924_v46 = vmul.f32 %v7189_v44, %v8184_v16  ;;  %v2953_v49 = vmul.f32 %v2742_v4, %v8185_v0  ;;  %v2954_v22 = vmul.f32 %v2742_v4, %v8186_v34  ;;  %v8191_v44 = vld [vmem:[#allocation179_spill] sm:$0xff]  ;;  %v3562_v13 = vld [vmem:[%s6466_s14 + $0x5f0] sm:$0xff] }
 0x32b   : > { %4001 = vst.msk [vmem:[%s6498_s18 + $0x5a8] sm:$0xff] %vm1968_vm0, %v3777_v48  ;;  %v2955_v9 = vmul.f32 %v2742_v4, %v8187_v38  ;;  %v2956_v3 = vmul.f32 %v2742_v4, %v8188_v31  ;;  %v2957_v10 = vmul.f32 %v2742_v4, %v8189_v39  ;;  %v2958_v28 = vmul.f32 %v2742_v4, %v8190_v8  ;;  %v3561_v50 = vld [vmem:[%s6466_s14 + $0x5e8] sm:$0xff]  ;;  %v3564_v60 = vld [vmem:[%s6466_s14 + $0x600] sm:$0xff]  ;;  %v3567_v29 = vld [vmem:[%s6466_s14 + $0x618] sm:$0xff]  ;;  %v7386_v39 = vpop.permute.xlu1 %3120 }
 0x32c   : > { %v2959_v20 = vmul.f32 %v8191_v44, %v2742_v4  ;;  %v3302_v51 = vadd.f32 %v7228_v56, %v2918_v19  ;;  %v3303_v27 = vadd.f32 %v7228_v56, %v2919_v11  ;;  %v3304_v14 = vadd.f32 %v7228_v56, %v2920_v62  ;;  %v3565_v36 = vld [vmem:[%s6466_s14 + $0x608] sm:$0xff]  ;;  %v3566_v19 = vld [vmem:[%s6466_s14 + $0x610] sm:$0xff]  ;;  %v8192_v53 = vld [vmem:[#allocation89_spill] sm:$0xff] }
 0x32d   : > { %v3305_v12 = vadd.f32 %v7228_v56, %v2921_v33  ;;  %v3306_v41 = vadd.f32 %v7228_v56, %v2922_v55  ;;  %v3307_v24 = vadd.f32 %v7228_v56, %v2923_v5  ;;  %v3308_v4 = vadd.f32 %v7228_v56, %v2924_v46  ;;  %v3563_v56 = vld [vmem:[%s6466_s14 + $0x5f8] sm:$0xff]  ;;  %v8193_v46 = vld [vmem:[#allocation91_spill] sm:$0xff]  ;;  %v8195_v34 = vld [vmem:[#allocation92_spill] sm:$0xff] }
 0x32e   : > { %v3750_v32 = vadd.f32 %v3526_v57, %v3302_v51  ;;  %v3751_v6 = vadd.f32 %v3527_v47, %v3303_v27  ;;  %v3337_v54 = vadd.f32 %v3126_v2, %v2953_v49  ;;  %v3752_v35 = vadd.f32 %v3528_v30, %v3304_v14  ;;  %v8196_v38 = vld [vmem:[#allocation178_spill] sm:$0xff]  ;;  %v8197_v31 = vld [vmem:[#allocation180_spill] sm:$0xff]  ;;  %v8199_v47 = vld [vmem:[#allocation109_spill] sm:$0xff] }
 0x32f   : > { %v3753_v59 = vadd.f32 %v3529_v37, %v3305_v12  ;;  %v3754_v45 = vadd.f32 %v3530_v52, %v3306_v41  ;;  %v3755_v26 = vadd.f32 %v3531_v61, %v3307_v24  ;;  %v3756_v23 = vadd.f32 %v3532_v43, %v3308_v4  ;;  %v8200_v8 = vld [vmem:[#allocation111_spill] sm:$0xff]  ;;  %v8201_v44 = vld [vmem:[#allocation110_spill] sm:$0xff]  ;;  %v3136_v52 = vpop.permute.xlu0 %3135  ;;  %v8202_v61 = vld [vmem:[#allocation112_spill] sm:$0xff] }
 0x330   : > { %3974 = vst [vmem:[%s6498_s18 + $0x4d0] sm:$0xff] %v3750_v32  ;;  %3975 = vst [vmem:[%s6498_s18 + $0x4d8] sm:$0xff] %v3751_v6  ;;  %v3338_v18 = vadd.f32 %v3126_v2, %v2954_v22  ;;  %v3339_v25 = vadd.f32 %v3126_v2, %v2955_v9  ;;  %v3340_v17 = vadd.f32 %v3126_v2, %v2956_v3  ;;  %v3540_v37 = vld [vmem:[%s6466_s14 + $0x540] sm:$0xff]  ;;  %v8203_v27 = vld [vmem:[#allocation193_spill] sm:$0xff] }
 0x331   : > { %3976 = vst [vmem:[%s6498_s18 + $0x4e0] sm:$0xff] %v3752_v35  ;;  %3977 = vst [vmem:[%s6498_s18 + $0x4e8] sm:$0xff] %v3753_v59  ;;  %v3341_v48 = vadd.f32 %v3126_v2, %v2957_v10  ;;  %v3342_v42 = vadd.f32 %v3126_v2, %v2958_v28  ;;  %v3343_v11 = vadd.f32 %v3126_v2, %v2959_v20  ;;  %v8194_v2 = vld [vmem:[#allocation90_spill] sm:$0xff]  ;;  %v8198_v10 = vld [vmem:[#allocation176_spill] sm:$0xff] }
 0x332   : > { %3978 = vst [vmem:[%s6498_s18 + $0x4f0] sm:$0xff] %v3754_v45  ;;  %3979 = vst [vmem:[%s6498_s18 + $0x4f8] sm:$0xff] %v3755_v26  ;;  %v3785_v58 = vadd.f32 %v3561_v50, %v3337_v54  ;;  %v3786_v62 = vadd.f32 %v3562_v13, %v3338_v18  ;;  %v3787_v21 = vadd.f32 %v3563_v56, %v3339_v25  ;;  %v8204_v14 = vld [vmem:[#allocation195_spill] sm:$0xff]  ;;  %v8205_v41 = vld [vmem:[#allocation185_spill] sm:$0xff] }
 0x333   : > { %3980 = vst.msk [vmem:[%s6498_s18 + $0x500] sm:$0xff] %vm1968_vm0, %v3756_v23  ;;  %v3788_v33 = vadd.f32 %v3564_v60, %v3340_v17  ;;  %v2932_v55 = vmul.f32 %v7281_v40, %v8192_v53  ;;  %v3789_v15 = vadd.f32 %v3565_v36, %v3341_v48  ;;  %v3790_v5 = vadd.f32 %v3566_v19, %v3342_v42  ;;  %v3541_v4 = vld [vmem:[%s6466_s14 + $0x548] sm:$0xff]  ;;  %v3542_v32 = vld [vmem:[%s6466_s14 + $0x550] sm:$0xff]  ;;  %v3543_v6 = vld [vmem:[%s6466_s14 + $0x558] sm:$0xff] }
 0x334   : > { %v3791_v16 = vadd.f32 %v3567_v29, %v3343_v11  ;;  %4009 = vst [vmem:[%s6498_s18 + $0x5e8] sm:$0xff] %v3785_v58  ;;  %v2933_v0 = vmul.f32 %v7281_v40, %v8193_v46  ;;  %4010 = vst [vmem:[%s6498_s18 + $0x5f0] sm:$0xff] %v3786_v62  ;;  %v2934_v49 = vmul.f32 %v7281_v40, %v8194_v2  ;;  %v3545_v50 = vld [vmem:[%s6466_s14 + $0x568] sm:$0xff]  ;;  %v3546_v54 = vld [vmem:[%s6466_s14 + $0x570] sm:$0xff] }
 0x335   : > { %4011 = vst [vmem:[%s6498_s18 + $0x5f8] sm:$0xff] %v3787_v21  ;;  %4012 = vst [vmem:[%s6498_s18 + $0x600] sm:$0xff] %v3788_v33  ;;  %v2935_v22 = vmul.f32 %v7281_v40, %v8195_v34  ;;  %v2936_v9 = vmul.f32 %v7281_v40, %v8196_v38  ;;  %v2937_v3 = vmul.f32 %v7281_v40, %v8197_v31  ;;  %v3575_v18 = vld [vmem:[%s6466_s14 + $0x658] sm:$0xff]  ;;  %v3576_v25 = vld [vmem:[%s6466_s14 + $0x660] sm:$0xff]  ;;  %v7421_v33 = vpop.permute.xlu1 %2746 }
 0x336   : > { %4013 = vst [vmem:[%s6498_s18 + $0x608] sm:$0xff] %v3789_v15  ;;  %4014 = vst [vmem:[%s6498_s18 + $0x610] sm:$0xff] %v3790_v5  ;;  %v2938_v57 = vmul.f32 %v7281_v40, %v8198_v10  ;;  %v2967_v30 = vmul.f32 %v2752_v1, %v8199_v47  ;;  %v2968_v28 = vmul.f32 %v2752_v1, %v8200_v8  ;;  %v3544_v40 = vld [vmem:[%s6466_s14 + $0x560] sm:$0xff]  ;;  %v3577_v17 = vld [vmem:[%s6466_s14 + $0x668] sm:$0xff] }
 0x337   : > { %4015 = vst.msk [vmem:[%s6498_s18 + $0x618] sm:$0xff] %vm1968_vm0, %v3791_v16  ;;  %v2969_v20 = vmul.f32 %v2752_v1, %v8201_v44  ;;  %v2970_v51 = vmul.f32 %v2752_v1, %v8202_v61  ;;  %v2971_v43 = vmul.f32 %v2752_v1, %v8203_v27  ;;  %v2972_v12 = vmul.f32 %v2752_v1, %v8204_v14  ;;  %v3578_v58 = vld [vmem:[%s6466_s14 + $0x670] sm:$0xff]  ;;  %v3580_v62 = vld [vmem:[%s6466_s14 + $0x680] sm:$0xff]  ;;  %v3581_v53 = vld [vmem:[%s6466_s14 + $0x688] sm:$0xff] }
 0x338   : > { %v2973_v24 = vmul.f32 %v8205_v41, %v2752_v1  ;;  %v3316_v35 = vadd.f32 %v7310_v63, %v2932_v55  ;;  %v3317_v59 = vadd.f32 %v7310_v63, %v2933_v0  ;;  %v3318_v45 = vadd.f32 %v7310_v63, %v2934_v49  ;;  %v8206_v49 = vld [vmem:[#allocation97_spill] sm:$0xff]  ;;  %v8211_v61 = vld [vmem:[#allocation186_spill] sm:$0xff]  ;;  %v3557_v41 = vld [vmem:[%s6466_s14 + $0x5c8] sm:$0xff] }
 0x339   : > { %v3319_v26 = vadd.f32 %v7310_v63, %v2935_v22  ;;  %v3320_v13 = vadd.f32 %v7310_v63, %v2936_v9  ;;  %v3321_v56 = vadd.f32 %v7310_v63, %v2937_v3  ;;  %v3322_v60 = vadd.f32 %v7310_v63, %v2938_v57  ;;  %v3579_v63 = vld [vmem:[%s6466_s14 + $0x678] sm:$0xff]  ;;  %v2762_v22 = vpop.permute.xlu0 %2761  ;;  %v8207_v57 = vld [vmem:[#allocation99_spill] sm:$0xff]  ;;  %v8212_v27 = vld [vmem:[#allocation182_spill] sm:$0xff] }
 0x33a   : > { %v3351_v1 = vadd.f32 %v3136_v52, %v2967_v30  ;;  %v3764_v23 = vadd.f32 %v3540_v37, %v3316_v35  ;;  %v3765_v36 = vadd.f32 %v3541_v4, %v3317_v59  ;;  %v3766_v19 = vadd.f32 %v3542_v32, %v3318_v45  ;;  %v8208_v30 = vld [vmem:[#allocation98_spill] sm:$0xff]  ;;  %v8210_v37 = vld [vmem:[#allocation184_spill] sm:$0xff]  ;;  %v3555_v14 = vld [vmem:[%s6466_s14 + $0x5b8] sm:$0xff] }
 0x33b   : > { %v3767_v29 = vadd.f32 %v3543_v6, %v3319_v26  ;;  %v3768_v48 = vadd.f32 %v3544_v40, %v3320_v13  ;;  %v3769_v42 = vadd.f32 %v3545_v50, %v3321_v56  ;;  %v3770_v11 = vadd.f32 %v3546_v54, %v3322_v60  ;;  %v3558_v4 = vld [vmem:[%s6466_s14 + $0x5d0] sm:$0xff]  ;;  %v3559_v32 = vld [vmem:[%s6466_s14 + $0x5d8] sm:$0xff]  ;;  %v3560_v6 = vld [vmem:[%s6466_s14 + $0x5e0] sm:$0xff] }
 0x33c   : > { %v3352_v21 = vadd.f32 %v3136_v52, %v2968_v28  ;;  %3988 = vst [vmem:[%s6498_s18 + $0x540] sm:$0xff] %v3764_v23  ;;  %3989 = vst [vmem:[%s6498_s18 + $0x548] sm:$0xff] %v3765_v36  ;;  %v3353_v55 = vadd.f32 %v3136_v52, %v2969_v20  ;;  %v3354_v15 = vadd.f32 %v3136_v52, %v2970_v51  ;;  %v8209_v28 = vld [vmem:[#allocation100_spill] sm:$0xff]  ;;  %v8213_v35 = vld [vmem:[#allocation117_spill] sm:$0xff] }
 0x33d   : > { %3990 = vst [vmem:[%s6498_s18 + $0x550] sm:$0xff] %v3766_v19  ;;  %3991 = vst [vmem:[%s6498_s18 + $0x558] sm:$0xff] %v3767_v29  ;;  %v3355_v5 = vadd.f32 %v3136_v52, %v2971_v43  ;;  %v3356_v16 = vadd.f32 %v3136_v52, %v2972_v12  ;;  %v3357_v46 = vadd.f32 %v3136_v52, %v2973_v24  ;;  %v3554_v20 = vld [vmem:[%s6466_s14 + $0x5b0] sm:$0xff]  ;;  %v3556_v12 = vld [vmem:[%s6466_s14 + $0x5c0] sm:$0xff]  ;;  %v3146_v29 = vpop.permute.xlu0 %3145 }
 0x33e   : > { %3992 = vst [vmem:[%s6498_s18 + $0x560] sm:$0xff] %v3768_v48  ;;  %3993 = vst [vmem:[%s6498_s18 + $0x568] sm:$0xff] %v3769_v42  ;;  %v3799_v0 = vadd.f32 %v3575_v18, %v3351_v1  ;;  %v3800_v2 = vadd.f32 %v3576_v25, %v3352_v21  ;;  %v2946_v34 = vmul.f32 %v7354_v7, %v8206_v49  ;;  %v8214_v36 = vld [vmem:[#allocation119_spill] sm:$0xff]  ;;  %v8215_v48 = vld [vmem:[#allocation118_spill] sm:$0xff] }
 0x33f   : > { %3994 = vst.msk [vmem:[%s6498_s18 + $0x570] sm:$0xff] %vm1968_vm0, %v3770_v11  ;;  %v3801_v38 = vadd.f32 %v3577_v17, %v3353_v55  ;;  %v3802_v9 = vadd.f32 %v3578_v58, %v3354_v15  ;;  %v3803_v31 = vadd.f32 %v3579_v63, %v3355_v5  ;;  %v3804_v3 = vadd.f32 %v3580_v62, %v3356_v16  ;;  %v3589_v42 = vld [vmem:[%s6466_s14 + $0x6c8] sm:$0xff]  ;;  %v8216_v11 = vld [vmem:[#allocation120_spill] sm:$0xff]  ;;  %v8217_v63 = vld [vmem:[#allocation198_spill] sm:$0xff] }
 0x340   : > { %v3805_v10 = vadd.f32 %v3581_v53, %v3357_v46  ;;  %4023 = vst [vmem:[%s6498_s18 + $0x658] sm:$0xff] %v3799_v0  ;;  %4024 = vst [vmem:[%s6498_s18 + $0x660] sm:$0xff] %v3800_v2  ;;  %v2947_v47 = vmul.f32 %v7354_v7, %v8207_v57  ;;  %v2948_v8 = vmul.f32 %v7354_v7, %v8208_v30  ;;  %v8218_v21 = vld [vmem:[#allocation199_spill] sm:$0xff]  ;;  %v3590_v5 = vld [vmem:[%s6466_s14 + $0x6d0] sm:$0xff] }
 0x341   : > { %v2949_v44 = vmul.f32 %v7354_v7, %v8209_v28  ;;  %4025 = vst [vmem:[%s6498_s18 + $0x668] sm:$0xff] %v3801_v38  ;;  %4026 = vst [vmem:[%s6498_s18 + $0x670] sm:$0xff] %v3802_v9  ;;  %v2950_v52 = vmul.f32 %v7354_v7, %v8210_v37  ;;  %v2951_v51 = vmul.f32 %v7354_v7, %v8211_v61  ;;  %v8219_v55 = vld [vmem:[#allocation191_spill] sm:$0xff]  ;;  %v3591_v16 = vld [vmem:[%s6466_s14 + $0x6d8] sm:$0xff] }
 0x342   : > { %4027 = vst [vmem:[%s6498_s18 + $0x678] sm:$0xff] %v3803_v31  ;;  %4028 = vst [vmem:[%s6498_s18 + $0x680] sm:$0xff] %v3804_v3  ;;  %v2952_v43 = vmul.f32 %v7354_v7, %v8212_v27  ;;  %v3330_v24 = vadd.f32 %v7386_v39, %v2946_v34  ;;  %v3331_v40 = vadd.f32 %v7386_v39, %v2947_v47  ;;  %v7466_v7 = vpop.permute.xlu1 %3130  ;;  %v3592_v46 = vld [vmem:[%s6466_s14 + $0x6e0] sm:$0xff]  ;;  %v3593_v0 = vld [vmem:[%s6466_s14 + $0x6e8] sm:$0xff] }
 0x343   : > { %4029 = vst.msk [vmem:[%s6498_s18 + $0x688] sm:$0xff] %vm1968_vm0, %v3805_v10  ;;  %v3332_v50 = vadd.f32 %v7386_v39, %v2948_v8  ;;  %v3333_v54 = vadd.f32 %v7386_v39, %v2949_v44  ;;  %v2981_v59 = vmul.f32 %v2762_v22, %v8213_v35  ;;  %v3334_v45 = vadd.f32 %v7386_v39, %v2950_v52  ;;  %v3594_v2 = vld [vmem:[%s6466_s14 + $0x6f0] sm:$0xff]  ;;  %v3595_v49 = vld [vmem:[%s6466_s14 + $0x6f8] sm:$0xff] }
 0x344   : > { %v3335_v26 = vadd.f32 %v7386_v39, %v2951_v51  ;;  %v3336_v13 = vadd.f32 %v7386_v39, %v2952_v43  ;;  %v3778_v56 = vadd.f32 %v3554_v20, %v3330_v24  ;;  %v3779_v60 = vadd.f32 %v3555_v14, %v3331_v40  ;;  %v8220_v31 = vld [vmem:[#allocation105_spill] sm:$0xff]  ;;  %v8221_v20 = vld [vmem:[#allocation107_spill] sm:$0xff]  ;;  %v8222_v43 = vld [vmem:[#allocation106_spill] sm:$0xff] }
 0x345   : > { %v3780_v1 = vadd.f32 %v3556_v12, %v3332_v50  ;;  %v3781_v23 = vadd.f32 %v3557_v41, %v3333_v54  ;;  %v2982_v19 = vmul.f32 %v2762_v22, %v8214_v36  ;;  %v3782_v18 = vadd.f32 %v3558_v4, %v3334_v45  ;;  %v8223_v12 = vld [vmem:[#allocation108_spill] sm:$0xff]  ;;  %v8224_v24 = vld [vmem:[#allocation190_spill] sm:$0xff]  ;;  %v3569_v50 = vld [vmem:[%s6466_s14 + $0x628] sm:$0xff] }
 0x346   : > { %v3783_v25 = vadd.f32 %v3559_v32, %v3335_v26  ;;  %v3784_v17 = vadd.f32 %v3560_v6, %v3336_v13  ;;  %4002 = vst [vmem:[%s6498_s18 + $0x5b0] sm:$0xff] %v3778_v56  ;;  %v2983_v39 = vmul.f32 %v2762_v22, %v8215_v48  ;;  %4003 = vst [vmem:[%s6498_s18 + $0x5b8] sm:$0xff] %v3779_v60  ;;  %v2757_v30 = vpop.permute.xlu1 %2756  ;;  %v8225_v32 = vld [vmem:[#allocation192_spill] sm:$0xff]  ;;  %v3568_v40 = vld [vmem:[%s6466_s14 + $0x620] sm:$0xff] }
 0x347   : > { %4004 = vst [vmem:[%s6498_s18 + $0x5c0] sm:$0xff] %v3780_v1  ;;  %4005 = vst [vmem:[%s6498_s18 + $0x5c8] sm:$0xff] %v3781_v23  ;;  %v2984_v58 = vmul.f32 %v2762_v22, %v8216_v11  ;;  %v2985_v62 = vmul.f32 %v2762_v22, %v8217_v63  ;;  %v2986_v53 = vmul.f32 %v2762_v22, %v8218_v21  ;;  %v3570_v54 = vld [vmem:[%s6466_s14 + $0x630] sm:$0xff]  ;;  %v3571_v45 = vld [vmem:[%s6466_s14 + $0x638] sm:$0xff] }
 0x348   : > { %v2987_v15 = vmul.f32 %v8219_v55, %v2762_v22  ;;  %4006 = vst [vmem:[%s6498_s18 + $0x5d0] sm:$0xff] %v3782_v18  ;;  %4007 = vst [vmem:[%s6498_s18 + $0x5d8] sm:$0xff] %v3783_v25  ;;  %v3365_v34 = vadd.f32 %v3146_v29, %v2981_v59  ;;  %v3366_v38 = vadd.f32 %v3146_v29, %v2982_v19  ;;  %v8226_v35 = vld [vmem:[#allocation188_spill] sm:$0xff]  ;;  %v3572_v26 = vld [vmem:[%s6466_s14 + $0x640] sm:$0xff] }
 0x349   : > { %4008 = vst.msk [vmem:[%s6498_s18 + $0x5e0] sm:$0xff] %vm1968_vm0, %v3784_v17  ;;  %v3367_v9 = vadd.f32 %v3146_v29, %v2983_v39  ;;  %v2960_v3 = vmul.f32 %v7421_v33, %v8220_v31  ;;  %v3368_v22 = vadd.f32 %v3146_v29, %v2984_v58  ;;  %v3369_v10 = vadd.f32 %v3146_v29, %v2985_v62  ;;  %v3573_v13 = vld [vmem:[%s6466_s14 + $0x648] sm:$0xff]  ;;  %v8227_v1 = vld [vmem:[#allocation113_spill] sm:$0xff]  ;;  %v3574_v36 = vld [vmem:[%s6466_s14 + $0x650] sm:$0xff] }
 0x34a   : > { %v3370_v57 = vadd.f32 %v3146_v29, %v2986_v53  ;;  %v3371_v47 = vadd.f32 %v3146_v29, %v2987_v15  ;;  %v3813_v8 = vadd.f32 %v3589_v42, %v3365_v34  ;;  %v3814_v28 = vadd.f32 %v3590_v5, %v3366_v38  ;;  %v8228_v39 = vld [vmem:[#allocation115_spill] sm:$0xff]  ;;  %v3141_v11 = vpop.permute.xlu1 %3140  ;;  %v8230_v15 = vld [vmem:[#allocation116_spill] sm:$0xff]  ;;  %v8233_v38 = vld [vmem:[#allocation194_spill] sm:$0xff] }
 0x34b   : > { %v3815_v44 = vadd.f32 %v3591_v16, %v3367_v9  ;;  %v2961_v37 = vmul.f32 %v7421_v33, %v8221_v20  ;;  %v3816_v52 = vadd.f32 %v3592_v46, %v3368_v22  ;;  %v3817_v61 = vadd.f32 %v3593_v0, %v3369_v10  ;;  %v8231_v16 = vld [vmem:[#allocation196_spill] sm:$0xff]  ;;  %v3584_v31 = vld [vmem:[%s6466_s14 + $0x6a0] sm:$0xff] }
 0x34c   : > { %v3818_v51 = vadd.f32 %v3594_v2, %v3370_v57  ;;  %v3819_v27 = vadd.f32 %v3595_v49, %v3371_v47  ;;  %4037 = vst [vmem:[%s6498_s18 + $0x6c8] sm:$0xff] %v3813_v8  ;;  %4038 = vst [vmem:[%s6498_s18 + $0x6d0] sm:$0xff] %v3814_v28  ;;  %v2962_v14 = vmul.f32 %v7421_v33, %v8222_v43  ;;  %v3582_v0 = vld [vmem:[%s6466_s14 + $0x690] sm:$0xff]  ;;  %v3583_v2 = vld [vmem:[%s6466_s14 + $0x698] sm:$0xff] }
 0x34d   : > { %4039 = vst [vmem:[%s6498_s18 + $0x6d8] sm:$0xff] %v3815_v44  ;;  %v2963_v41 = vmul.f32 %v7421_v33, %v8223_v12  ;;  %v2964_v4 = vmul.f32 %v7421_v33, %v8224_v24  ;;  %v2965_v6 = vmul.f32 %v7421_v33, %v8225_v32  ;;  %4040 = vst [vmem:[%s6498_s18 + $0x6e0] sm:$0xff] %v3816_v52  ;;  %v8232_v49 = vld [vmem:[#allocation197_spill] sm:$0xff]  ;;  %v3586_v22 = vld [vmem:[%s6466_s14 + $0x6b0] sm:$0xff] }
 0x34e   : > { %4041 = vst [vmem:[%s6498_s18 + $0x6e8] sm:$0xff] %v3817_v61  ;;  %4042 = vst [vmem:[%s6498_s18 + $0x6f0] sm:$0xff] %v3818_v51  ;;  %v2966_v59 = vmul.f32 %v7421_v33, %v8226_v35  ;;  %v3344_v56 = vadd.f32 %v7466_v7, %v2960_v3  ;;  %v3345_v60 = vadd.f32 %v7466_v7, %v2961_v37  ;;  %v3585_v3 = vld [vmem:[%s6466_s14 + $0x6a8] sm:$0xff]  ;;  %v3587_v47 = vld [vmem:[%s6466_s14 + $0x6b8] sm:$0xff] }
 0x34f   : > { %4043 = vst.msk [vmem:[%s6498_s18 + $0x6f8] sm:$0xff] %vm1968_vm0, %v3819_v27  ;;  %v2974_v23 = vmul.f32 %v2757_v30, %v8227_v1  ;;  %v3346_v19 = vadd.f32 %v7466_v7, %v2962_v14  ;;  %v3347_v29 = vadd.f32 %v7466_v7, %v2963_v41  ;;  %v3348_v18 = vadd.f32 %v7466_v7, %v2964_v4  ;;  %v3588_v8 = vld [vmem:[%s6466_s14 + $0x6c0] sm:$0xff] }
 0x350   : > { %v3349_v33 = vadd.f32 %v7466_v7, %v2965_v6  ;;  %v3350_v25 = vadd.f32 %v7466_v7, %v2966_v59  ;;  %v3792_v17 = vadd.f32 %v3568_v40, %v3344_v56  ;;  %v3793_v48 = vadd.f32 %v3569_v50, %v3345_v60  ;;  %v8229_v7 = vld [vmem:[#allocation114_spill] sm:$0xff] }
 0x351   : > { %v2975_v42 = vmul.f32 %v2757_v30, %v8228_v39  ;;  %v3794_v58 = vadd.f32 %v3570_v54, %v3346_v19  ;;  %v3795_v63 = vadd.f32 %v3571_v45, %v3347_v29  ;;  %v3796_v62 = vadd.f32 %v3572_v26, %v3348_v18 }
 0x352   : > { %v3797_v21 = vadd.f32 %v3573_v13, %v3349_v33  ;;  %v3798_v53 = vadd.f32 %v3574_v36, %v3350_v25  ;;  %4016 = vst [vmem:[%s6498_s18 + $0x620] sm:$0xff] %v3792_v17  ;;  %4017 = vst [vmem:[%s6498_s18 + $0x628] sm:$0xff] %v3793_v48  ;;  %v2976_v55 = vmul.f32 %v2757_v30, %v8229_v7 }
 0x353   : > { %v2977_v5 = vmul.f32 %v2757_v30, %v8230_v15  ;;  %v2978_v46 = vmul.f32 %v2757_v30, %v8231_v16  ;;  %4018 = vst [vmem:[%s6498_s18 + $0x630] sm:$0xff] %v3794_v58  ;;  %4019 = vst [vmem:[%s6498_s18 + $0x638] sm:$0xff] %v3795_v63  ;;  %v2979_v34 = vmul.f32 %v2757_v30, %v8232_v49 }
 0x354   : > { %4020 = vst [vmem:[%s6498_s18 + $0x640] sm:$0xff] %v3796_v62  ;;  %4021 = vst [vmem:[%s6498_s18 + $0x648] sm:$0xff] %v3797_v21  ;;  %v2980_v9 = vmul.f32 %v2757_v30, %v8233_v38  ;;  %v3358_v10 = vadd.f32 %v3141_v11, %v2974_v23  ;;  %v3359_v57 = vadd.f32 %v3141_v11, %v2975_v42 }
 0x355   : > { %4022 = vst.msk [vmem:[%s6498_s18 + $0x650] sm:$0xff] %vm1968_vm0, %v3798_v53  ;;  %v3360_v28 = vadd.f32 %v3141_v11, %v2976_v55  ;;  %v3361_v44 = vadd.f32 %v3141_v11, %v2977_v5  ;;  %v3362_v20 = vadd.f32 %v3141_v11, %v2978_v46  ;;  %v3363_v30 = vadd.f32 %v3141_v11, %v2979_v34 }
 0x356   : > { %v3364_v37 = vadd.f32 %v3141_v11, %v2980_v9  ;;  %v3806_v52 = vadd.f32 %v3582_v0, %v3358_v10  ;;  %v3807_v61 = vadd.f32 %v3583_v2, %v3359_v57 }
 0x357   : > { %v3808_v51 = vadd.f32 %v3584_v31, %v3360_v28  ;;  %v3809_v27 = vadd.f32 %v3585_v3, %v3361_v44  ;;  %v3810_v43 = vadd.f32 %v3586_v22, %v3362_v20  ;;  %v3811_v14 = vadd.f32 %v3587_v47, %v3363_v30 }
 0x358   : > { %v3812_v12 = vadd.f32 %v3588_v8, %v3364_v37  ;;  %4030 = vst [vmem:[%s6498_s18 + $0x690] sm:$0xff] %v3806_v52  ;;  %4031 = vst [vmem:[%s6498_s18 + $0x698] sm:$0xff] %v3807_v61 }
 0x359   : > { %4032 = vst [vmem:[%s6498_s18 + $0x6a0] sm:$0xff] %v3808_v51  ;;  %4033 = vst [vmem:[%s6498_s18 + $0x6a8] sm:$0xff] %v3809_v27 }
 0x35a   : > { %4034 = vst [vmem:[%s6498_s18 + $0x6b0] sm:$0xff] %v3810_v43  ;;  %4035 = vst [vmem:[%s6498_s18 + $0x6b8] sm:$0xff] %v3811_v14 }
 0x35b   : > { %4036 = vst.msk [vmem:[%s6498_s18 + $0x6c0] sm:$0xff] %vm1968_vm0, %v3812_v12 }
 0x35c PF: > { %s16_s21 = sadd.s32 1, %s4494_s21  }
 0x35d   : > { %p13_p4 = scmp.ge.s32.totalorder %s16_s21, 4  }
 0x35f   :  { %15 = sbr.rel (!%p13_p4) target bundleno = 1 (0x1), region = 83 }

</bundles_post_ra>
